<compile_context>
chip_gen: v7x
topology: tpu7x:2x2x1
jax: 0.10.0
libtpu: 0.0.40
codegen_flags: <defaults>
</compile_context>

<pallas_src>
import functools

import jax
import jax.numpy as jnp
from jax import lax
from jax.experimental import pallas as pl
from jax.experimental.pallas import tpu as pltpu


# ----------------------------------------------------------------------------
# Fused Pallas kernel: one batch element per grid program, weights resident
# ----------------------------------------------------------------------------
def _fused_gnn_kernel(x_ref, wslab_ref, bslab_ref, out_ref, qkv_ref, *,
                      F, n_heads, num_layers, w_meta, b_meta):
    d = F // n_heads
    wit = iter(w_meta)   # (row_offset, rows, cols) per weight, in consumption order
    bit = iter(b_meta)   # (row_index, cols) per bias, in consumption order

    def dense(x_bf, act=None):
        # 1x1 Conv1d as bf16 MXU matmul with f32 accumulation; bias/act in f32.
        off, rows, cols = next(wit)
        bidx, bcols = next(bit)
        y = jnp.dot(x_bf, wslab_ref[off:off + rows, 0:cols],
                    preferred_element_type=jnp.float32)
        y = y + bslab_ref[bidx:bidx + 1, 0:bcols]
        if act == "relu":
            y = jnp.maximum(y, 0.0)
        return y

    # conv_init: Conv+BN+ReLU, Conv+BN+ReLU, Conv  (BN folded into weights)
    x_bf = x_ref[...].astype(jnp.bfloat16)            # (N, c0_pad)
    x = dense(x_bf, "relu")
    x = dense(x.astype(jnp.bfloat16), "relu")
    x = dense(x.astype(jnp.bfloat16))                 # (N, F) f32

    # AttentionalPropagation layers: x = x + mlp(cat([x, merge(attn(x,x,x))]))
    # with merge already fused into mlp1's msg-half.
    for _ in range(num_layers):
        x_bf = x.astype(jnp.bfloat16)
        q = dense(x_bf)                               # scale folded into Wq/bq
        k = dense(x_bf)
        v = dense(x_bf)
        qkv_ref[0] = q.astype(jnp.bfloat16)           # one (N, F) store each
        qkv_ref[1] = k.astype(jnp.bfloat16)
        qkv_ref[2] = v.astype(jnp.bfloat16)

        # mlp1 x-part + fused bias (b1 + bm @ W1m); msg contributions accumulate below.
        h1 = dense(x_bf)                              # (N, 2F) f32
        m_off, m_rows, m_cols = next(wit)             # fused merge∘mlp1 msg weight (F, 2F)

        for h in range(n_heads):
            c = h * d
            qh = qkv_ref[0, :, c:c + d]               # (N, d) bf16 ref loads
            kh = qkv_ref[1, :, c:c + d]
            vh = qkv_ref[2, :, c:c + d]
            s = lax.dot_general(qh, kh, (((1,), (1,)), ((), ())),
                                preferred_element_type=jnp.float32)
            s = s - jnp.max(s, axis=-1, keepdims=True)
            p = jnp.exp(s)
            p = p * pl.reciprocal(jnp.sum(p, axis=-1, keepdims=True), approx=True)
            o = jnp.dot(p.astype(jnp.bfloat16), vh,
                        preferred_element_type=jnp.float32)
            h1 = h1 + jnp.dot(
                o.astype(jnp.bfloat16),
                wslab_ref[m_off + c:m_off + c + d, 0:m_cols],
                preferred_element_type=jnp.float32)

        h1 = jnp.maximum(h1, 0.0)                     # Conv+BN+ReLU (BN folded)
        x = x + dense(h1.astype(jnp.bfloat16))        # mlp2 + residual (f32)

    # conv_desc / conv_offset heads: (Conv+BN+ReLU) x 2 each
    x_bf = x.astype(jnp.bfloat16)
    dd = dense(x_bf, "relu")
    dd = dense(dd.astype(jnp.bfloat16), "relu")
    oo = dense(x_bf, "relu")
    oo = dense(oo.astype(jnp.bfloat16), "relu")
    out_ref[:, 0:F] = dd
    out_ref[:, F:2 * F] = oo


# ----------------------------------------------------------------------------
# Parameter construction (deterministic, synthetic) — "PyTorch layout" params
# ----------------------------------------------------------------------------
def _init_conv(key, cin, cout, scale=0.1):
    k1, k2 = jax.random.split(key)
    w = jax.random.normal(k1, (cin, cout), jnp.float32) * scale
    b = jax.random.normal(k2, (cout,), jnp.float32) * scale
    return w, b


def _init_bn(key, c):
    k1, k2 = jax.random.split(key)
    gamma = 1.0 + 0.1 * jax.random.normal(k1, (c,), jnp.float32)
    beta = 0.1 * jax.random.normal(k2, (c,), jnp.float32)
    return gamma, beta


def _fold_bn(w, b, gamma, beta, eps=1e-5):
    # eval-mode BN with running_mean=0, running_var=1
    s = gamma / jnp.sqrt(1.0 + eps)
    return w * s[None, :], b * s + beta


def build_params(key, first_dim, feature_dim, num_layers):
    F = feature_dim
    keys = iter(jax.random.split(key, 64))

    def conv(cin, cout):
        return _init_conv(next(keys), cin, cout)

    def conv_bn(cin, cout):
        w, b = _init_conv(next(keys), cin, cout)
        g, be = _init_bn(next(keys), cout)
        return _fold_bn(w, b, g, be)

    params = {}
    params["init"] = [conv_bn(first_dim + 2, F), conv_bn(F, F), conv(F, F)]
    layers = []
    for _ in range(num_layers):
        lp = {
            "q": conv(F, F),
            "k": conv(F, F),
            "v": conv(F, F),
            "merge": conv(F, F),
            "mlp1": conv_bn(2 * F, 2 * F),
        }
        w2, _ = _init_conv(next(keys), 2 * F, F)
        lp["mlp2"] = (w2, jnp.zeros((F,), jnp.float32))  # nn.init.constant_(mlp[-1].bias, 0)
        layers.append(lp)
    params["layers"] = layers
    params["desc"] = [conv_bn(F, F), conv_bn(F, F)]
    params["offset"] = [conv_bn(F, F), conv_bn(F, F), conv(F, 2)]
    return params


# ----------------------------------------------------------------------------
# Parameter packing: head permutation, scale fold, merge∘mlp1 fusion, 2 slabs
# ----------------------------------------------------------------------------
def _prepare_packed_params(params, n_heads, c0):
    F = params["init"][0][0].shape[1]
    d = F // n_heads
    W = 2 * F                                  # slab lane width
    # Torch .view(b, dim, heads, n): channel c = j*H + h. In-kernel we want
    # head-contiguous channels c' = h*d + j  =>  perm[c'] = j*H + h.
    perm = jnp.arange(F).reshape(d, n_heads).T.reshape(-1)
    scale = 1.0 / (d ** 0.5)

    w_blocks, b_rows = [], []
    w_meta, b_meta = [], []

    def add_w(w):
        w = jnp.asarray(w, jnp.float32)
        rows, cols = w.shape
        rpad = (-rows) % 8                     # keep row offsets sublane-aligned
        if rpad:
            w = jnp.pad(w, ((0, rpad), (0, 0)))
        off = sum(blk.shape[0] for blk in w_blocks)
        w_blocks.append(jnp.pad(w, ((0, 0), (0, W - cols))))
        w_meta.append((off, rows, cols))

    def add_b(b):
        b = jnp.asarray(b, jnp.float32).reshape(-1)
        cols = b.shape[0]
        b_meta.append((len(b_rows), cols))
        b_rows.append(jnp.pad(b, (0, W - cols)))

    def add_linear(w, b):
        add_w(w)
        add_b(b)

    # conv_init (pad first conv's input rows so the kernel input K is 8-aligned)
    c0_pad = ((c0 + 7) // 8) * 8
    w0, b0 = params["init"][0]
    add_linear(jnp.pad(w0, ((0, c0_pad - c0), (0, 0))), b0)
    add_linear(*params["init"][1])
    add_linear(*params["init"][2])

    for lp in params["layers"]:
        wq, bq = lp["q"]
        add_linear(scale * wq[:, perm], scale * bq[perm])     # scale folded into q
        wk, bk = lp["k"]
        add_linear(wk[:, perm], bk[perm])
        wv, bv = lp["v"]
        add_linear(wv[:, perm], bv[perm])
        wm, bm = lp["merge"]
        w1, b1 = lp["mlp1"]
        w1x, w1m = w1[:F, :], w1[F:, :]
        w1m_fused = wm[perm, :] @ w1m                         # compose in f32
        b1_fused = b1 + bm @ w1m
        add_linear(w1x, b1_fused)                             # mlp1 x-part + fused bias
        add_w(w1m_fused)                                      # msg weight (no bias)
        add_linear(*lp["mlp2"])

    for w, b in params["desc"]:
        add_linear(w, b)
    for w, b in params["offset"][:2]:
        add_linear(w, b)

    w_slab = jnp.concatenate(w_blocks, axis=0).astype(jnp.bfloat16)
    b_slab = jnp.stack(b_rows, axis=0)
    brpad = (-b_slab.shape[0]) % 8
    if brpad:
        b_slab = jnp.pad(b_slab, ((0, brpad), (0, 0)))

    w_off2, b_off2 = params["offset"][2]
    return (w_slab, b_slab, tuple(w_meta), tuple(b_meta), c0_pad,
            (w_off2.astype(jnp.float32), b_off2.astype(jnp.float32)))


# ----------------------------------------------------------------------------
# Forward pass (wrapper)
# ----------------------------------------------------------------------------
def attentional_gnn(feat, graph, params, n_heads=4):
    # feat: (B, first_dim, N), graph: (B, 2, N)   [PyTorch NCL convention]
    B, first_dim, N = feat.shape
    F = params["init"][0][0].shape[1]
    num_layers = len(params["layers"])
    c0 = first_dim + graph.shape[1]
    d = F // n_heads
    assert F % n_heads == 0 and N % 8 == 0 and d % 8 == 0, (F, n_heads, N)

    (w_slab, b_slab, w_meta, b_meta, c0_pad,
     (w_off2, b_off2)) = _prepare_packed_params(params, n_heads, c0)

    x0 = jnp.concatenate([feat, graph], axis=1)                  # (B, C0, N)
    x0 = jnp.transpose(x0, (0, 2, 1)).reshape(B * N, c0)         # (B*N, C0)
    x0 = jnp.pad(x0, ((0, 0), (0, c0_pad - c0))).astype(jnp.float32)

    kernel = functools.partial(_fused_gnn_kernel, F=F, n_heads=n_heads,
                               num_layers=num_layers, w_meta=w_meta, b_meta=b_meta)

    out = pl.pallas_call(
        kernel,
        grid=(B,),
        out_shape=jax.ShapeDtypeStruct((B * N, 2 * F), jnp.float32),
        in_specs=[
            pl.BlockSpec((N, c0_pad), lambda b: (b, 0)),          # per-batch rows
            pl.BlockSpec(w_slab.shape, lambda b: (0, 0)),         # weight slab, resident
            pl.BlockSpec(b_slab.shape, lambda b: (0, 0)),         # bias slab, resident
        ],
        out_specs=pl.BlockSpec((N, 2 * F), lambda b: (b, 0)),
        scratch_shapes=[pltpu.VMEM((3, N, F), jnp.bfloat16)],     # q/k/v per layer
        compiler_params=pltpu.CompilerParams(dimension_semantics=("parallel",)),
    )(x0, w_slab, b_slab)

    desc_flat = out[:, :F]
    off_feat = out[:, F:]
    desc = jnp.transpose(desc_flat.reshape(B, N, F), (0, 2, 1))   # (B, F, N)
    # Final Conv1d(F->2) + Hardtanh: 2-lane output, kept in plain XLA on purpose.
    offset = jnp.clip(off_feat @ w_off2 + b_off2, -1.0, 1.0).reshape(B, N, 2)
    return desc, offset


# ----------------------------------------------------------------------------
# Pure-JAX reference (f32, mirrors the PyTorch module exactly, BN folded)
# ----------------------------------------------------------------------------
def _reference_forward(feat, graph, params, n_heads):
    B, _, N = feat.shape
    F = params["init"][0][0].shape[1]
    d = F // n_heads

    def conv(x, w, b, act=None):
        y = x @ w + b
        if act == "relu":
            y = jnp.maximum(y, 0.0)
        return y

    x = jnp.transpose(jnp.concatenate([feat, graph], axis=1), (0, 2, 1))
    x = conv(x, *params["init"][0], "relu")
    x = conv(x, *params["init"][1], "relu")
    x = conv(x, *params["init"][2])

    for lp in params["layers"]:
        q = conv(x, *lp["q"]); k = conv(x, *lp["k"]); v = conv(x, *lp["v"])

        def split(t):  # (B,N,F) -> (B,H,N,d); channel c -> (j=c//H, h=c%H)
            return jnp.transpose(t.reshape(B, N, d, n_heads), (0, 3, 1, 2))

        qh, kh, vh = split(q), split(k), split(v)
        s = jnp.einsum("bhnd,bhmd->bhnm", qh, kh) / (d ** 0.5)
        p = jax.nn.softmax(s, axis=-1)
        o = jnp.einsum("bhnm,bhmd->bhnd", p, vh)
        msg = jnp.transpose(o, (0, 2, 3, 1)).reshape(B, N, F)    # channel = j*H + h
        msg = conv(msg, *lp["merge"])
        h = conv(jnp.concatenate([x, msg], axis=-1), *lp["mlp1"], "relu")
        h = conv(h, *lp["mlp2"])
        x = x + h

    dsc = conv(conv(x, *params["desc"][0], "relu"), *params["desc"][1], "relu")
    off = conv(conv(x, *params["offset"][0], "relu"), *params["offset"][1], "relu")
    off = jnp.clip(conv(off, *params["offset"][2]), -1.0, 1.0)
    return jnp.transpose(dsc, (0, 2, 1)), off


# ----------------------------------------------------------------------------
# Demo
# ----------------------------------------------------------------------------
if __name__ == "__main__":
    key = jax.random.PRNGKey(0)
    kp, kf, kg = jax.random.split(key, 3)

    B, first_dim, N = 2, 4, 64
    feature_dim, num_layers, n_heads = 32, 2, 4

    params = build_params(kp, first_dim, feature_dim, num_layers)
    feat = jax.random.normal(kf, (B, first_dim, N), jnp.float32)
    graph = jax.random.normal(kg, (B, 2, N), jnp.float32)

    fwd = jax.jit(functools.partial(attentional_gnn, n_heads=n_heads))
    desc, offset = fwd(feat, graph, params)
    jax.block_until_ready((desc, offset))

    assert desc.shape == (B, feature_dim, N), desc.shape
    assert offset.shape == (B, N, 2), offset.shape
    assert bool(jnp.all(jnp.isfinite(desc))) and bool(jnp.all(jnp.isfinite(offset)))
    assert bool(jnp.all(offset >= -1.0)) and bool(jnp.all(offset <= 1.0))  # Hardtanh range

    # Numerical check vs f32 pure-JAX reference (bf16 MXU + approx reciprocal tolerance).
    desc_ref, offset_ref = _reference_forward(feat, graph, params, n_heads)
    assert bool(jnp.allclose(desc, desc_ref, atol=5e-2, rtol=5e-2)), \
        float(jnp.max(jnp.abs(desc - desc_ref)))
    assert bool(jnp.allclose(offset, offset_ref, atol=5e-2, rtol=5e-2)), \
        float(jnp.max(jnp.abs(offset - offset_ref)))

    print("KERNEL_OK")
</pallas_src>

<mosaic_0001>
module attributes {stable_mosaic.version = 11 : i64} {
  func.func @_fused_gnn_kernel(%arg0: i32, %arg1: memref<64x8xf32, #tpu.memory_space<vmem>>, %arg2: memref<648x64xbf16, #tpu.memory_space<vmem>>, %arg3: memref<24x64xf32, #tpu.memory_space<vmem>>, %arg4: memref<64x64xf32, #tpu.memory_space<vmem>>, %arg5: memref<3x64x32xbf16, #tpu.memory_space<vmem>>) attributes {dimension_semantics = [#tpu.dimension_semantics<parallel>], iteration_bounds = array<i64: 2>, scalar_prefetch = 0 : i64, scratch_operands = 1 : i64, tpu.core_type = #tpu.core_type<tc>, window_params = [{transform_indices = @transform_0, window_bounds = array<i64: 64, 8>}, {pipeline_mode = #tpu.pipeline_mode<synchronous>, transform_indices = @transform_1, window_bounds = array<i64: 648, 64>}, {pipeline_mode = #tpu.pipeline_mode<synchronous>, transform_indices = @transform_2, window_bounds = array<i64: 24, 64>}, {transform_indices = @transform_3, window_bounds = array<i64: 64, 64>}]} {
    %c0 = arith.constant 0 : index
    %c0_0 = arith.constant 0 : index
    %0 = vector.load %arg1[%c0, %c0_0] : memref<64x8xf32, #tpu.memory_space<vmem>>, vector<64x8xf32>
    %1 = arith.truncf %0 : vector<64x8xf32> to vector<64x8xbf16>
    %c0_1 = arith.constant 0 : index
    %c0_2 = arith.constant 0 : index
    %2 = vector.load %arg2[%c0_1, %c0_2] : memref<648x64xbf16, #tpu.memory_space<vmem>>, vector<8x32xbf16>
    %cst = arith.constant dense<0.000000e+00> : vector<64x32xf32>
    %3 = tpu.matmul %1, %2, %cst {dimension_numbers = #tpu.dot_dimension_numbers<[1], [0], [0], [1], [0, 0, 1, 1], [], []>} : vector<64x8xbf16>, vector<8x32xbf16>, vector<64x32xf32> -> vector<64x32xf32>
    %c0_3 = arith.constant 0 : index
    %c0_4 = arith.constant 0 : index
    %4 = vector.load %arg3[%c0_3, %c0_4] : memref<24x64xf32, #tpu.memory_space<vmem>>, vector<1x32xf32>
    %5 = vector.broadcast %4 : vector<1x32xf32> to vector<64x32xf32>
    %6 = arith.addf %3, %5 : vector<64x32xf32>
    %cst_5 = arith.constant 0.000000e+00 : f32
    %7 = vector.broadcast %cst_5 : f32 to vector<64x32xf32>
    %8 = arith.maximumf %6, %7 : vector<64x32xf32>
    %9 = arith.truncf %8 : vector<64x32xf32> to vector<64x32xbf16>
    %c8 = arith.constant 8 : index
    %c0_6 = arith.constant 0 : index
    %10 = vector.load %arg2[%c8, %c0_6] : memref<648x64xbf16, #tpu.memory_space<vmem>>, vector<32x32xbf16>
    %cst_7 = arith.constant dense<0.000000e+00> : vector<64x32xf32>
    %11 = tpu.matmul %9, %10, %cst_7 {dimension_numbers = #tpu.dot_dimension_numbers<[1], [0], [0], [1], [0, 0, 1, 1], [], []>} : vector<64x32xbf16>, vector<32x32xbf16>, vector<64x32xf32> -> vector<64x32xf32>
    %c1 = arith.constant 1 : index
    %c0_8 = arith.constant 0 : index
    %12 = vector.load %arg3[%c1, %c0_8] : memref<24x64xf32, #tpu.memory_space<vmem>>, vector<1x32xf32>
    %13 = vector.broadcast %12 : vector<1x32xf32> to vector<64x32xf32>
    %14 = arith.addf %11, %13 : vector<64x32xf32>
    %cst_9 = arith.constant 0.000000e+00 : f32
    %15 = vector.broadcast %cst_9 : f32 to vector<64x32xf32>
    %16 = arith.maximumf %14, %15 : vector<64x32xf32>
    %17 = arith.truncf %16 : vector<64x32xf32> to vector<64x32xbf16>
    %c40 = arith.constant 40 : index
    %c0_10 = arith.constant 0 : index
    %18 = vector.load %arg2[%c40, %c0_10] : memref<648x64xbf16, #tpu.memory_space<vmem>>, vector<32x32xbf16>
    %cst_11 = arith.constant dense<0.000000e+00> : vector<64x32xf32>
    %19 = tpu.matmul %17, %18, %cst_11 {dimension_numbers = #tpu.dot_dimension_numbers<[1], [0], [0], [1], [0, 0, 1, 1], [], []>} : vector<64x32xbf16>, vector<32x32xbf16>, vector<64x32xf32> -> vector<64x32xf32>
    %c2 = arith.constant 2 : index
    %c0_12 = arith.constant 0 : index
    %20 = vector.load %arg3[%c2, %c0_12] : memref<24x64xf32, #tpu.memory_space<vmem>>, vector<1x32xf32>
    %21 = vector.broadcast %20 : vector<1x32xf32> to vector<64x32xf32>
    %22 = arith.addf %19, %21 : vector<64x32xf32>
    %23 = arith.truncf %22 : vector<64x32xf32> to vector<64x32xbf16>
    %c72 = arith.constant 72 : index
    %c0_13 = arith.constant 0 : index
    %24 = vector.load %arg2[%c72, %c0_13] : memref<648x64xbf16, #tpu.memory_space<vmem>>, vector<32x32xbf16>
    %cst_14 = arith.constant dense<0.000000e+00> : vector<64x32xf32>
    %25 = tpu.matmul %23, %24, %cst_14 {dimension_numbers = #tpu.dot_dimension_numbers<[1], [0], [0], [1], [0, 0, 1, 1], [], []>} : vector<64x32xbf16>, vector<32x32xbf16>, vector<64x32xf32> -> vector<64x32xf32>
    %c3 = arith.constant 3 : index
    %c0_15 = arith.constant 0 : index
    %26 = vector.load %arg3[%c3, %c0_15] : memref<24x64xf32, #tpu.memory_space<vmem>>, vector<1x32xf32>
    %27 = vector.broadcast %26 : vector<1x32xf32> to vector<64x32xf32>
    %28 = arith.addf %25, %27 : vector<64x32xf32>
    %c104 = arith.constant 104 : index
    %c0_16 = arith.constant 0 : index
    %29 = vector.load %arg2[%c104, %c0_16] : memref<648x64xbf16, #tpu.memory_space<vmem>>, vector<32x32xbf16>
    %cst_17 = arith.constant dense<0.000000e+00> : vector<64x32xf32>
    %30 = tpu.matmul %23, %29, %cst_17 {dimension_numbers = #tpu.dot_dimension_numbers<[1], [0], [0], [1], [0, 0, 1, 1], [], []>} : vector<64x32xbf16>, vector<32x32xbf16>, vector<64x32xf32> -> vector<64x32xf32>
    %c4 = arith.constant 4 : index
    %c0_18 = arith.constant 0 : index
    %31 = vector.load %arg3[%c4, %c0_18] : memref<24x64xf32, #tpu.memory_space<vmem>>, vector<1x32xf32>
    %32 = vector.broadcast %31 : vector<1x32xf32> to vector<64x32xf32>
    %33 = arith.addf %30, %32 : vector<64x32xf32>
    %c136 = arith.constant 136 : index
    %c0_19 = arith.constant 0 : index
    %34 = vector.load %arg2[%c136, %c0_19] : memref<648x64xbf16, #tpu.memory_space<vmem>>, vector<32x32xbf16>
    %cst_20 = arith.constant dense<0.000000e+00> : vector<64x32xf32>
    %35 = tpu.matmul %23, %34, %cst_20 {dimension_numbers = #tpu.dot_dimension_numbers<[1], [0], [0], [1], [0, 0, 1, 1], [], []>} : vector<64x32xbf16>, vector<32x32xbf16>, vector<64x32xf32> -> vector<64x32xf32>
    %c5 = arith.constant 5 : index
    %c0_21 = arith.constant 0 : index
    %36 = vector.load %arg3[%c5, %c0_21] : memref<24x64xf32, #tpu.memory_space<vmem>>, vector<1x32xf32>
    %37 = vector.broadcast %36 : vector<1x32xf32> to vector<64x32xf32>
    %38 = arith.addf %35, %37 : vector<64x32xf32>
    %39 = arith.truncf %28 : vector<64x32xf32> to vector<64x32xbf16>
    %c0_22 = arith.constant 0 : index
    %c0_23 = arith.constant 0 : index
    %c0_24 = arith.constant 0 : index
    %40 = vector.load %arg5[%c0_22, %c0_23, %c0_24] : memref<3x64x32xbf16, #tpu.memory_space<vmem>>, vector<1x64x32xbf16>
    %41 = vector.shape_cast %40 : vector<1x64x32xbf16> to vector<64x32xbf16>
    %42 = vector.shape_cast %39 : vector<64x32xbf16> to vector<1x64x32xbf16>
    tpu.vector_store %arg5[%c0_22, %c0_23, %c0_24], %42 {strides = array<i32>} : memref<3x64x32xbf16, #tpu.memory_space<vmem>>, vector<1x64x32xbf16>,
    %43 = arith.truncf %33 : vector<64x32xf32> to vector<64x32xbf16>
    %c1_25 = arith.constant 1 : index
    %c0_26 = arith.constant 0 : index
    %c0_27 = arith.constant 0 : index
    %44 = vector.load %arg5[%c1_25, %c0_26, %c0_27] : memref<3x64x32xbf16, #tpu.memory_space<vmem>>, vector<1x64x32xbf16>
    %45 = vector.shape_cast %44 : vector<1x64x32xbf16> to vector<64x32xbf16>
    %46 = vector.shape_cast %43 : vector<64x32xbf16> to vector<1x64x32xbf16>
    tpu.vector_store %arg5[%c1_25, %c0_26, %c0_27], %46 {strides = array<i32>} : memref<3x64x32xbf16, #tpu.memory_space<vmem>>, vector<1x64x32xbf16>,
    %47 = arith.truncf %38 : vector<64x32xf32> to vector<64x32xbf16>
    %c2_28 = arith.constant 2 : index
    %c0_29 = arith.constant 0 : index
    %c0_30 = arith.constant 0 : index
    %48 = vector.load %arg5[%c2_28, %c0_29, %c0_30] : memref<3x64x32xbf16, #tpu.memory_space<vmem>>, vector<1x64x32xbf16>
    %49 = vector.shape_cast %48 : vector<1x64x32xbf16> to vector<64x32xbf16>
    %50 = vector.shape_cast %47 : vector<64x32xbf16> to vector<1x64x32xbf16>
    tpu.vector_store %arg5[%c2_28, %c0_29, %c0_30], %50 {strides = array<i32>} : memref<3x64x32xbf16, #tpu.memory_space<vmem>>, vector<1x64x32xbf16>,
    %c168 = arith.constant 168 : index
    %c0_31 = arith.constant 0 : index
    %51 = vector.load %arg2[%c168, %c0_31] : memref<648x64xbf16, #tpu.memory_space<vmem>>, vector<32x64xbf16>
    %cst_32 = arith.constant dense<0.000000e+00> : vector<64x64xf32>
    %52 = tpu.matmul %23, %51, %cst_32 {dimension_numbers = #tpu.dot_dimension_numbers<[1], [0], [0], [1], [0, 0, 1, 1], [], []>} : vector<64x32xbf16>, vector<32x64xbf16>, vector<64x64xf32> -> vector<64x64xf32>
    %c6 = arith.constant 6 : index
    %c0_33 = arith.constant 0 : index
    %53 = vector.load %arg3[%c6, %c0_33] : memref<24x64xf32, #tpu.memory_space<vmem>>, vector<1x64xf32>
    %54 = vector.broadcast %53 : vector<1x64xf32> to vector<64x64xf32>
    %55 = arith.addf %52, %54 : vector<64x64xf32>
    %c0_34 = arith.constant 0 : index
    %c0_35 = arith.constant 0 : index
    %c0_36 = arith.constant 0 : index
    %56 = vector.load %arg5[%c0_34, %c0_35, %c0_36] : memref<3x64x32xbf16, #tpu.memory_space<vmem>>, vector<1x64x8xbf16>
    %57 = vector.shape_cast %56 : vector<1x64x8xbf16> to vector<64x8xbf16>
    %c1_37 = arith.constant 1 : index
    %c0_38 = arith.constant 0 : index
    %c0_39 = arith.constant 0 : index
    %58 = vector.load %arg5[%c1_37, %c0_38, %c0_39] : memref<3x64x32xbf16, #tpu.memory_space<vmem>>, vector<1x64x8xbf16>
    %59 = vector.shape_cast %58 : vector<1x64x8xbf16> to vector<64x8xbf16>
    %c2_40 = arith.constant 2 : index
    %c0_41 = arith.constant 0 : index
    %c0_42 = arith.constant 0 : index
    %60 = vector.load %arg5[%c2_40, %c0_41, %c0_42] : memref<3x64x32xbf16, #tpu.memory_space<vmem>>, vector<1x64x8xbf16>
    %61 = vector.shape_cast %60 : vector<1x64x8xbf16> to vector<64x8xbf16>
    %cst_43 = arith.constant dense<0.000000e+00> : vector<64x64xf32>
    %62 = tpu.matmul %57, %59, %cst_43 {dimension_numbers = #tpu.dot_dimension_numbers<[1], [1], [0], [0], [0, 0, 1, 0], [], []>} : vector<64x8xbf16>, vector<64x8xbf16>, vector<64x64xf32> -> vector<64x64xf32>
    %cst_44 = arith.constant dense<0xFF800000> : vector<64xf32>
    %63 = vector.multi_reduction <maximumf>, %62, %cst_44 [1] : vector<64x64xf32> to vector<64xf32>
    %64 = vector.shape_cast %63 : vector<64xf32> to vector<64x1xf32>
    %65 = vector.broadcast %64 : vector<64x1xf32> to vector<64x64xf32>
    %66 = arith.subf %62, %65 : vector<64x64xf32>
    %67 = math.exp %66 : vector<64x64xf32>
    %cst_45 = arith.constant dense<0.000000e+00> : vector<64xf32>
    %68 = vector.multi_reduction <add>, %67, %cst_45 [1] : vector<64x64xf32> to vector<64xf32>
    %69 = vector.shape_cast %68 : vector<64xf32> to vector<64x1xf32>
    %70 = tpu.reciprocal %69 {approx = true} : vector<64x1xf32> -> vector<64x1xf32>
    %71 = vector.broadcast %70 : vector<64x1xf32> to vector<64x64xf32>
    %72 = arith.mulf %67, %71 : vector<64x64xf32>
    %73 = arith.truncf %72 : vector<64x64xf32> to vector<64x64xbf16>
    %cst_46 = arith.constant dense<0.000000e+00> : vector<64x8xf32>
    %74 = tpu.matmul %73, %61, %cst_46 {dimension_numbers = #tpu.dot_dimension_numbers<[1], [0], [0], [1], [0, 0, 1, 1], [], []>} : vector<64x64xbf16>, vector<64x8xbf16>, vector<64x8xf32> -> vector<64x8xf32>
    %75 = arith.truncf %74 : vector<64x8xf32> to vector<64x8xbf16>
    %c200 = arith.constant 200 : index
    %c0_47 = arith.constant 0 : index
    %76 = vector.load %arg2[%c200, %c0_47] : memref<648x64xbf16, #tpu.memory_space<vmem>>, vector<8x64xbf16>
    %cst_48 = arith.constant dense<0.000000e+00> : vector<64x64xf32>
    %77 = tpu.matmul %75, %76, %cst_48 {dimension_numbers = #tpu.dot_dimension_numbers<[1], [0], [0], [1], [0, 0, 1, 1], [], []>} : vector<64x8xbf16>, vector<8x64xbf16>, vector<64x64xf32> -> vector<64x64xf32>
    %78 = arith.addf %55, %77 : vector<64x64xf32>
    %c0_49 = arith.constant 0 : index
    %c0_50 = arith.constant 0 : index
    %c8_51 = arith.constant 8 : index
    %79 = vector.load %arg5[%c0_49, %c0_50, %c8_51] : memref<3x64x32xbf16, #tpu.memory_space<vmem>>, vector<1x64x8xbf16>
    %80 = vector.shape_cast %79 : vector<1x64x8xbf16> to vector<64x8xbf16>
    %c1_52 = arith.constant 1 : index
    %c0_53 = arith.constant 0 : index
    %c8_54 = arith.constant 8 : index
    %81 = vector.load %arg5[%c1_52, %c0_53, %c8_54] : memref<3x64x32xbf16, #tpu.memory_space<vmem>>, vector<1x64x8xbf16>
    %82 = vector.shape_cast %81 : vector<1x64x8xbf16> to vector<64x8xbf16>
    %c2_55 = arith.constant 2 : index
    %c0_56 = arith.constant 0 : index
    %c8_57 = arith.constant 8 : index
    %83 = vector.load %arg5[%c2_55, %c0_56, %c8_57] : memref<3x64x32xbf16, #tpu.memory_space<vmem>>, vector<1x64x8xbf16>
    %84 = vector.shape_cast %83 : vector<1x64x8xbf16> to vector<64x8xbf16>
    %cst_58 = arith.constant dense<0.000000e+00> : vector<64x64xf32>
    %85 = tpu.matmul %80, %82, %cst_58 {dimension_numbers = #tpu.dot_dimension_numbers<[1], [1], [0], [0], [0, 0, 1, 0], [], []>} : vector<64x8xbf16>, vector<64x8xbf16>, vector<64x64xf32> -> vector<64x64xf32>
    %cst_59 = arith.constant dense<0xFF800000> : vector<64xf32>
    %86 = vector.multi_reduction <maximumf>, %85, %cst_59 [1] : vector<64x64xf32> to vector<64xf32>
    %87 = vector.shape_cast %86 : vector<64xf32> to vector<64x1xf32>
    %88 = vector.broadcast %87 : vector<64x1xf32> to vector<64x64xf32>
    %89 = arith.subf %85, %88 : vector<64x64xf32>
    %90 = math.exp %89 : vector<64x64xf32>
    %cst_60 = arith.constant dense<0.000000e+00> : vector<64xf32>
    %91 = vector.multi_reduction <add>, %90, %cst_60 [1] : vector<64x64xf32> to vector<64xf32>
    %92 = vector.shape_cast %91 : vector<64xf32> to vector<64x1xf32>
    %93 = tpu.reciprocal %92 {approx = true} : vector<64x1xf32> -> vector<64x1xf32>
    %94 = vector.broadcast %93 : vector<64x1xf32> to vector<64x64xf32>
    %95 = arith.mulf %90, %94 : vector<64x64xf32>
    %96 = arith.truncf %95 : vector<64x64xf32> to vector<64x64xbf16>
    %cst_61 = arith.constant dense<0.000000e+00> : vector<64x8xf32>
    %97 = tpu.matmul %96, %84, %cst_61 {dimension_numbers = #tpu.dot_dimension_numbers<[1], [0], [0], [1], [0, 0, 1, 1], [], []>} : vector<64x64xbf16>, vector<64x8xbf16>, vector<64x8xf32> -> vector<64x8xf32>
    %98 = arith.truncf %97 : vector<64x8xf32> to vector<64x8xbf16>
    %c208 = arith.constant 208 : index
    %c0_62 = arith.constant 0 : index
    %99 = vector.load %arg2[%c208, %c0_62] : memref<648x64xbf16, #tpu.memory_space<vmem>>, vector<8x64xbf16>
    %cst_63 = arith.constant dense<0.000000e+00> : vector<64x64xf32>
    %100 = tpu.matmul %98, %99, %cst_63 {dimension_numbers = #tpu.dot_dimension_numbers<[1], [0], [0], [1], [0, 0, 1, 1], [], []>} : vector<64x8xbf16>, vector<8x64xbf16>, vector<64x64xf32> -> vector<64x64xf32>
    %101 = arith.addf %78, %100 : vector<64x64xf32>
    %c0_64 = arith.constant 0 : index
    %c0_65 = arith.constant 0 : index
    %c16 = arith.constant 16 : index
    %102 = vector.load %arg5[%c0_64, %c0_65, %c16] : memref<3x64x32xbf16, #tpu.memory_space<vmem>>, vector<1x64x8xbf16>
    %103 = vector.shape_cast %102 : vector<1x64x8xbf16> to vector<64x8xbf16>
    %c1_66 = arith.constant 1 : index
    %c0_67 = arith.constant 0 : index
    %c16_68 = arith.constant 16 : index
    %104 = vector.load %arg5[%c1_66, %c0_67, %c16_68] : memref<3x64x32xbf16, #tpu.memory_space<vmem>>, vector<1x64x8xbf16>
    %105 = vector.shape_cast %104 : vector<1x64x8xbf16> to vector<64x8xbf16>
    %c2_69 = arith.constant 2 : index
    %c0_70 = arith.constant 0 : index
    %c16_71 = arith.constant 16 : index
    %106 = vector.load %arg5[%c2_69, %c0_70, %c16_71] : memref<3x64x32xbf16, #tpu.memory_space<vmem>>, vector<1x64x8xbf16>
    %107 = vector.shape_cast %106 : vector<1x64x8xbf16> to vector<64x8xbf16>
    %cst_72 = arith.constant dense<0.000000e+00> : vector<64x64xf32>
    %108 = tpu.matmul %103, %105, %cst_72 {dimension_numbers = #tpu.dot_dimension_numbers<[1], [1], [0], [0], [0, 0, 1, 0], [], []>} : vector<64x8xbf16>, vector<64x8xbf16>, vector<64x64xf32> -> vector<64x64xf32>
    %cst_73 = arith.constant dense<0xFF800000> : vector<64xf32>
    %109 = vector.multi_reduction <maximumf>, %108, %cst_73 [1] : vector<64x64xf32> to vector<64xf32>
    %110 = vector.shape_cast %109 : vector<64xf32> to vector<64x1xf32>
    %111 = vector.broadcast %110 : vector<64x1xf32> to vector<64x64xf32>
    %112 = arith.subf %108, %111 : vector<64x64xf32>
    %113 = math.exp %112 : vector<64x64xf32>
    %cst_74 = arith.constant dense<0.000000e+00> : vector<64xf32>
    %114 = vector.multi_reduction <add>, %113, %cst_74 [1] : vector<64x64xf32> to vector<64xf32>
    %115 = vector.shape_cast %114 : vector<64xf32> to vector<64x1xf32>
    %116 = tpu.reciprocal %115 {approx = true} : vector<64x1xf32> -> vector<64x1xf32>
    %117 = vector.broadcast %116 : vector<64x1xf32> to vector<64x64xf32>
    %118 = arith.mulf %113, %117 : vector<64x64xf32>
    %119 = arith.truncf %118 : vector<64x64xf32> to vector<64x64xbf16>
    %cst_75 = arith.constant dense<0.000000e+00> : vector<64x8xf32>
    %120 = tpu.matmul %119, %107, %cst_75 {dimension_numbers = #tpu.dot_dimension_numbers<[1], [0], [0], [1], [0, 0, 1, 1], [], []>} : vector<64x64xbf16>, vector<64x8xbf16>, vector<64x8xf32> -> vector<64x8xf32>
    %121 = arith.truncf %120 : vector<64x8xf32> to vector<64x8xbf16>
    %c216 = arith.constant 216 : index
    %c0_76 = arith.constant 0 : index
    %122 = vector.load %arg2[%c216, %c0_76] : memref<648x64xbf16, #tpu.memory_space<vmem>>, vector<8x64xbf16>
    %cst_77 = arith.constant dense<0.000000e+00> : vector<64x64xf32>
    %123 = tpu.matmul %121, %122, %cst_77 {dimension_numbers = #tpu.dot_dimension_numbers<[1], [0], [0], [1], [0, 0, 1, 1], [], []>} : vector<64x8xbf16>, vector<8x64xbf16>, vector<64x64xf32> -> vector<64x64xf32>
    %124 = arith.addf %101, %123 : vector<64x64xf32>
    %c0_78 = arith.constant 0 : index
    %c0_79 = arith.constant 0 : index
    %c24 = arith.constant 24 : index
    %125 = vector.load %arg5[%c0_78, %c0_79, %c24] : memref<3x64x32xbf16, #tpu.memory_space<vmem>>, vector<1x64x8xbf16>
    %126 = vector.shape_cast %125 : vector<1x64x8xbf16> to vector<64x8xbf16>
    %c1_80 = arith.constant 1 : index
    %c0_81 = arith.constant 0 : index
    %c24_82 = arith.constant 24 : index
    %127 = vector.load %arg5[%c1_80, %c0_81, %c24_82] : memref<3x64x32xbf16, #tpu.memory_space<vmem>>, vector<1x64x8xbf16>
    %128 = vector.shape_cast %127 : vector<1x64x8xbf16> to vector<64x8xbf16>
    %c2_83 = arith.constant 2 : index
    %c0_84 = arith.constant 0 : index
    %c24_85 = arith.constant 24 : index
    %129 = vector.load %arg5[%c2_83, %c0_84, %c24_85] : memref<3x64x32xbf16, #tpu.memory_space<vmem>>, vector<1x64x8xbf16>
    %130 = vector.shape_cast %129 : vector<1x64x8xbf16> to vector<64x8xbf16>
    %cst_86 = arith.constant dense<0.000000e+00> : vector<64x64xf32>
    %131 = tpu.matmul %126, %128, %cst_86 {dimension_numbers = #tpu.dot_dimension_numbers<[1], [1], [0], [0], [0, 0, 1, 0], [], []>} : vector<64x8xbf16>, vector<64x8xbf16>, vector<64x64xf32> -> vector<64x64xf32>
    %cst_87 = arith.constant dense<0xFF800000> : vector<64xf32>
    %132 = vector.multi_reduction <maximumf>, %131, %cst_87 [1] : vector<64x64xf32> to vector<64xf32>
    %133 = vector.shape_cast %132 : vector<64xf32> to vector<64x1xf32>
    %134 = vector.broadcast %133 : vector<64x1xf32> to vector<64x64xf32>
    %135 = arith.subf %131, %134 : vector<64x64xf32>
    %136 = math.exp %135 : vector<64x64xf32>
    %cst_88 = arith.constant dense<0.000000e+00> : vector<64xf32>
    %137 = vector.multi_reduction <add>, %136, %cst_88 [1] : vector<64x64xf32> to vector<64xf32>
    %138 = vector.shape_cast %137 : vector<64xf32> to vector<64x1xf32>
    %139 = tpu.reciprocal %138 {approx = true} : vector<64x1xf32> -> vector<64x1xf32>
    %140 = vector.broadcast %139 : vector<64x1xf32> to vector<64x64xf32>
    %141 = arith.mulf %136, %140 : vector<64x64xf32>
    %142 = arith.truncf %141 : vector<64x64xf32> to vector<64x64xbf16>
    %cst_89 = arith.constant dense<0.000000e+00> : vector<64x8xf32>
    %143 = tpu.matmul %142, %130, %cst_89 {dimension_numbers = #tpu.dot_dimension_numbers<[1], [0], [0], [1], [0, 0, 1, 1], [], []>} : vector<64x64xbf16>, vector<64x8xbf16>, vector<64x8xf32> -> vector<64x8xf32>
    %144 = arith.truncf %143 : vector<64x8xf32> to vector<64x8xbf16>
    %c224 = arith.constant 224 : index
    %c0_90 = arith.constant 0 : index
    %145 = vector.load %arg2[%c224, %c0_90] : memref<648x64xbf16, #tpu.memory_space<vmem>>, vector<8x64xbf16>
    %cst_91 = arith.constant dense<0.000000e+00> : vector<64x64xf32>
    %146 = tpu.matmul %144, %145, %cst_91 {dimension_numbers = #tpu.dot_dimension_numbers<[1], [0], [0], [1], [0, 0, 1, 1], [], []>} : vector<64x8xbf16>, vector<8x64xbf16>, vector<64x64xf32> -> vector<64x64xf32>
    %147 = arith.addf %124, %146 : vector<64x64xf32>
    %cst_92 = arith.constant 0.000000e+00 : f32
    %148 = vector.broadcast %cst_92 : f32 to vector<64x64xf32>
    %149 = arith.maximumf %147, %148 : vector<64x64xf32>
    %150 = arith.truncf %149 : vector<64x64xf32> to vector<64x64xbf16>
    %c232 = arith.constant 232 : index
    %c0_93 = arith.constant 0 : index
    %151 = vector.load %arg2[%c232, %c0_93] : memref<648x64xbf16, #tpu.memory_space<vmem>>, vector<64x32xbf16>
    %cst_94 = arith.constant dense<0.000000e+00> : vector<64x32xf32>
    %152 = tpu.matmul %150, %151, %cst_94 {dimension_numbers = #tpu.dot_dimension_numbers<[1], [0], [0], [1], [0, 0, 1, 1], [], []>} : vector<64x64xbf16>, vector<64x32xbf16>, vector<64x32xf32> -> vector<64x32xf32>
    %c7 = arith.constant 7 : index
    %c0_95 = arith.constant 0 : index
    %153 = vector.load %arg3[%c7, %c0_95] : memref<24x64xf32, #tpu.memory_space<vmem>>, vector<1x32xf32>
    %154 = vector.broadcast %153 : vector<1x32xf32> to vector<64x32xf32>
    %155 = arith.addf %152, %154 : vector<64x32xf32>
    %156 = arith.addf %22, %155 : vector<64x32xf32>
    %157 = arith.truncf %156 : vector<64x32xf32> to vector<64x32xbf16>
    %c296 = arith.constant 296 : index
    %c0_96 = arith.constant 0 : index
    %158 = vector.load %arg2[%c296, %c0_96] : memref<648x64xbf16, #tpu.memory_space<vmem>>, vector<32x32xbf16>
    %cst_97 = arith.constant dense<0.000000e+00> : vector<64x32xf32>
    %159 = tpu.matmul %157, %158, %cst_97 {dimension_numbers = #tpu.dot_dimension_numbers<[1], [0], [0], [1], [0, 0, 1, 1], [], []>} : vector<64x32xbf16>, vector<32x32xbf16>, vector<64x32xf32> -> vector<64x32xf32>
    %c8_98 = arith.constant 8 : index
    %c0_99 = arith.constant 0 : index
    %160 = vector.load %arg3[%c8_98, %c0_99] : memref<24x64xf32, #tpu.memory_space<vmem>>, vector<1x32xf32>
    %161 = vector.broadcast %160 : vector<1x32xf32> to vector<64x32xf32>
    %162 = arith.addf %159, %161 : vector<64x32xf32>
    %c328 = arith.constant 328 : index
    %c0_100 = arith.constant 0 : index
    %163 = vector.load %arg2[%c328, %c0_100] : memref<648x64xbf16, #tpu.memory_space<vmem>>, vector<32x32xbf16>
    %cst_101 = arith.constant dense<0.000000e+00> : vector<64x32xf32>
    %164 = tpu.matmul %157, %163, %cst_101 {dimension_numbers = #tpu.dot_dimension_numbers<[1], [0], [0], [1], [0, 0, 1, 1], [], []>} : vector<64x32xbf16>, vector<32x32xbf16>, vector<64x32xf32> -> vector<64x32xf32>
    %c9 = arith.constant 9 : index
    %c0_102 = arith.constant 0 : index
    %165 = vector.load %arg3[%c9, %c0_102] : memref<24x64xf32, #tpu.memory_space<vmem>>, vector<1x32xf32>
    %166 = vector.broadcast %165 : vector<1x32xf32> to vector<64x32xf32>
    %167 = arith.addf %164, %166 : vector<64x32xf32>
    %c360 = arith.constant 360 : index
    %c0_103 = arith.constant 0 : index
    %168 = vector.load %arg2[%c360, %c0_103] : memref<648x64xbf16, #tpu.memory_space<vmem>>, vector<32x32xbf16>
    %cst_104 = arith.constant dense<0.000000e+00> : vector<64x32xf32>
    %169 = tpu.matmul %157, %168, %cst_104 {dimension_numbers = #tpu.dot_dimension_numbers<[1], [0], [0], [1], [0, 0, 1, 1], [], []>} : vector<64x32xbf16>, vector<32x32xbf16>, vector<64x32xf32> -> vector<64x32xf32>
    %c10 = arith.constant 10 : index
    %c0_105 = arith.constant 0 : index
    %170 = vector.load %arg3[%c10, %c0_105] : memref<24x64xf32, #tpu.memory_space<vmem>>, vector<1x32xf32>
    %171 = vector.broadcast %170 : vector<1x32xf32> to vector<64x32xf32>
    %172 = arith.addf %169, %171 : vector<64x32xf32>
    %173 = arith.truncf %162 : vector<64x32xf32> to vector<64x32xbf16>
    %c0_106 = arith.constant 0 : index
    %c0_107 = arith.constant 0 : index
    %c0_108 = arith.constant 0 : index
    %174 = vector.load %arg5[%c0_106, %c0_107, %c0_108] : memref<3x64x32xbf16, #tpu.memory_space<vmem>>, vector<1x64x32xbf16>
    %175 = vector.shape_cast %174 : vector<1x64x32xbf16> to vector<64x32xbf16>
    %176 = vector.shape_cast %173 : vector<64x32xbf16> to vector<1x64x32xbf16>
    tpu.vector_store %arg5[%c0_106, %c0_107, %c0_108], %176 {strides = array<i32>} : memref<3x64x32xbf16, #tpu.memory_space<vmem>>, vector<1x64x32xbf16>,
    %177 = arith.truncf %167 : vector<64x32xf32> to vector<64x32xbf16>
    %c1_109 = arith.constant 1 : index
    %c0_110 = arith.constant 0 : index
    %c0_111 = arith.constant 0 : index
    %178 = vector.load %arg5[%c1_109, %c0_110, %c0_111] : memref<3x64x32xbf16, #tpu.memory_space<vmem>>, vector<1x64x32xbf16>
    %179 = vector.shape_cast %178 : vector<1x64x32xbf16> to vector<64x32xbf16>
    %180 = vector.shape_cast %177 : vector<64x32xbf16> to vector<1x64x32xbf16>
    tpu.vector_store %arg5[%c1_109, %c0_110, %c0_111], %180 {strides = array<i32>} : memref<3x64x32xbf16, #tpu.memory_space<vmem>>, vector<1x64x32xbf16>,
    %181 = arith.truncf %172 : vector<64x32xf32> to vector<64x32xbf16>
    %c2_112 = arith.constant 2 : index
    %c0_113 = arith.constant 0 : index
    %c0_114 = arith.constant 0 : index
    %182 = vector.load %arg5[%c2_112, %c0_113, %c0_114] : memref<3x64x32xbf16, #tpu.memory_space<vmem>>, vector<1x64x32xbf16>
    %183 = vector.shape_cast %182 : vector<1x64x32xbf16> to vector<64x32xbf16>
    %184 = vector.shape_cast %181 : vector<64x32xbf16> to vector<1x64x32xbf16>
    tpu.vector_store %arg5[%c2_112, %c0_113, %c0_114], %184 {strides = array<i32>} : memref<3x64x32xbf16, #tpu.memory_space<vmem>>, vector<1x64x32xbf16>,
    %c392 = arith.constant 392 : index
    %c0_115 = arith.constant 0 : index
    %185 = vector.load %arg2[%c392, %c0_115] : memref<648x64xbf16, #tpu.memory_space<vmem>>, vector<32x64xbf16>
    %cst_116 = arith.constant dense<0.000000e+00> : vector<64x64xf32>
    %186 = tpu.matmul %157, %185, %cst_116 {dimension_numbers = #tpu.dot_dimension_numbers<[1], [0], [0], [1], [0, 0, 1, 1], [], []>} : vector<64x32xbf16>, vector<32x64xbf16>, vector<64x64xf32> -> vector<64x64xf32>
    %c11 = arith.constant 11 : index
    %c0_117 = arith.constant 0 : index
    %187 = vector.load %arg3[%c11, %c0_117] : memref<24x64xf32, #tpu.memory_space<vmem>>, vector<1x64xf32>
    %188 = vector.broadcast %187 : vector<1x64xf32> to vector<64x64xf32>
    %189 = arith.addf %186, %188 : vector<64x64xf32>
    %c0_118 = arith.constant 0 : index
    %c0_119 = arith.constant 0 : index
    %c0_120 = arith.constant 0 : index
    %190 = vector.load %arg5[%c0_118, %c0_119, %c0_120] : memref<3x64x32xbf16, #tpu.memory_space<vmem>>, vector<1x64x8xbf16>
    %191 = vector.shape_cast %190 : vector<1x64x8xbf16> to vector<64x8xbf16>
    %c1_121 = arith.constant 1 : index
    %c0_122 = arith.constant 0 : index
    %c0_123 = arith.constant 0 : index
    %192 = vector.load %arg5[%c1_121, %c0_122, %c0_123] : memref<3x64x32xbf16, #tpu.memory_space<vmem>>, vector<1x64x8xbf16>
    %193 = vector.shape_cast %192 : vector<1x64x8xbf16> to vector<64x8xbf16>
    %c2_124 = arith.constant 2 : index
    %c0_125 = arith.constant 0 : index
    %c0_126 = arith.constant 0 : index
    %194 = vector.load %arg5[%c2_124, %c0_125, %c0_126] : memref<3x64x32xbf16, #tpu.memory_space<vmem>>, vector<1x64x8xbf16>
    %195 = vector.shape_cast %194 : vector<1x64x8xbf16> to vector<64x8xbf16>
    %cst_127 = arith.constant dense<0.000000e+00> : vector<64x64xf32>
    %196 = tpu.matmul %191, %193, %cst_127 {dimension_numbers = #tpu.dot_dimension_numbers<[1], [1], [0], [0], [0, 0, 1, 0], [], []>} : vector<64x8xbf16>, vector<64x8xbf16>, vector<64x64xf32> -> vector<64x64xf32>
    %cst_128 = arith.constant dense<0xFF800000> : vector<64xf32>
    %197 = vector.multi_reduction <maximumf>, %196, %cst_128 [1] : vector<64x64xf32> to vector<64xf32>
    %198 = vector.shape_cast %197 : vector<64xf32> to vector<64x1xf32>
    %199 = vector.broadcast %198 : vector<64x1xf32> to vector<64x64xf32>
    %200 = arith.subf %196, %199 : vector<64x64xf32>
    %201 = math.exp %200 : vector<64x64xf32>
    %cst_129 = arith.constant dense<0.000000e+00> : vector<64xf32>
    %202 = vector.multi_reduction <add>, %201, %cst_129 [1] : vector<64x64xf32> to vector<64xf32>
    %203 = vector.shape_cast %202 : vector<64xf32> to vector<64x1xf32>
    %204 = tpu.reciprocal %203 {approx = true} : vector<64x1xf32> -> vector<64x1xf32>
    %205 = vector.broadcast %204 : vector<64x1xf32> to vector<64x64xf32>
    %206 = arith.mulf %201, %205 : vector<64x64xf32>
    %207 = arith.truncf %206 : vector<64x64xf32> to vector<64x64xbf16>
    %cst_130 = arith.constant dense<0.000000e+00> : vector<64x8xf32>
    %208 = tpu.matmul %207, %195, %cst_130 {dimension_numbers = #tpu.dot_dimension_numbers<[1], [0], [0], [1], [0, 0, 1, 1], [], []>} : vector<64x64xbf16>, vector<64x8xbf16>, vector<64x8xf32> -> vector<64x8xf32>
    %209 = arith.truncf %208 : vector<64x8xf32> to vector<64x8xbf16>
    %c424 = arith.constant 424 : index
    %c0_131 = arith.constant 0 : index
    %210 = vector.load %arg2[%c424, %c0_131] : memref<648x64xbf16, #tpu.memory_space<vmem>>, vector<8x64xbf16>
    %cst_132 = arith.constant dense<0.000000e+00> : vector<64x64xf32>
    %211 = tpu.matmul %209, %210, %cst_132 {dimension_numbers = #tpu.dot_dimension_numbers<[1], [0], [0], [1], [0, 0, 1, 1], [], []>} : vector<64x8xbf16>, vector<8x64xbf16>, vector<64x64xf32> -> vector<64x64xf32>
    %212 = arith.addf %189, %211 : vector<64x64xf32>
    %c0_133 = arith.constant 0 : index
    %c0_134 = arith.constant 0 : index
    %c8_135 = arith.constant 8 : index
    %213 = vector.load %arg5[%c0_133, %c0_134, %c8_135] : memref<3x64x32xbf16, #tpu.memory_space<vmem>>, vector<1x64x8xbf16>
    %214 = vector.shape_cast %213 : vector<1x64x8xbf16> to vector<64x8xbf16>
    %c1_136 = arith.constant 1 : index
    %c0_137 = arith.constant 0 : index
    %c8_138 = arith.constant 8 : index
    %215 = vector.load %arg5[%c1_136, %c0_137, %c8_138] : memref<3x64x32xbf16, #tpu.memory_space<vmem>>, vector<1x64x8xbf16>
    %216 = vector.shape_cast %215 : vector<1x64x8xbf16> to vector<64x8xbf16>
    %c2_139 = arith.constant 2 : index
    %c0_140 = arith.constant 0 : index
    %c8_141 = arith.constant 8 : index
    %217 = vector.load %arg5[%c2_139, %c0_140, %c8_141] : memref<3x64x32xbf16, #tpu.memory_space<vmem>>, vector<1x64x8xbf16>
    %218 = vector.shape_cast %217 : vector<1x64x8xbf16> to vector<64x8xbf16>
    %cst_142 = arith.constant dense<0.000000e+00> : vector<64x64xf32>
    %219 = tpu.matmul %214, %216, %cst_142 {dimension_numbers = #tpu.dot_dimension_numbers<[1], [1], [0], [0], [0, 0, 1, 0], [], []>} : vector<64x8xbf16>, vector<64x8xbf16>, vector<64x64xf32> -> vector<64x64xf32>
    %cst_143 = arith.constant dense<0xFF800000> : vector<64xf32>
    %220 = vector.multi_reduction <maximumf>, %219, %cst_143 [1] : vector<64x64xf32> to vector<64xf32>
    %221 = vector.shape_cast %220 : vector<64xf32> to vector<64x1xf32>
    %222 = vector.broadcast %221 : vector<64x1xf32> to vector<64x64xf32>
    %223 = arith.subf %219, %222 : vector<64x64xf32>
    %224 = math.exp %223 : vector<64x64xf32>
    %cst_144 = arith.constant dense<0.000000e+00> : vector<64xf32>
    %225 = vector.multi_reduction <add>, %224, %cst_144 [1] : vector<64x64xf32> to vector<64xf32>
    %226 = vector.shape_cast %225 : vector<64xf32> to vector<64x1xf32>
    %227 = tpu.reciprocal %226 {approx = true} : vector<64x1xf32> -> vector<64x1xf32>
    %228 = vector.broadcast %227 : vector<64x1xf32> to vector<64x64xf32>
    %229 = arith.mulf %224, %228 : vector<64x64xf32>
    %230 = arith.truncf %229 : vector<64x64xf32> to vector<64x64xbf16>
    %cst_145 = arith.constant dense<0.000000e+00> : vector<64x8xf32>
    %231 = tpu.matmul %230, %218, %cst_145 {dimension_numbers = #tpu.dot_dimension_numbers<[1], [0], [0], [1], [0, 0, 1, 1], [], []>} : vector<64x64xbf16>, vector<64x8xbf16>, vector<64x8xf32> -> vector<64x8xf32>
    %232 = arith.truncf %231 : vector<64x8xf32> to vector<64x8xbf16>
    %c432 = arith.constant 432 : index
    %c0_146 = arith.constant 0 : index
    %233 = vector.load %arg2[%c432, %c0_146] : memref<648x64xbf16, #tpu.memory_space<vmem>>, vector<8x64xbf16>
    %cst_147 = arith.constant dense<0.000000e+00> : vector<64x64xf32>
    %234 = tpu.matmul %232, %233, %cst_147 {dimension_numbers = #tpu.dot_dimension_numbers<[1], [0], [0], [1], [0, 0, 1, 1], [], []>} : vector<64x8xbf16>, vector<8x64xbf16>, vector<64x64xf32> -> vector<64x64xf32>
    %235 = arith.addf %212, %234 : vector<64x64xf32>
    %c0_148 = arith.constant 0 : index
    %c0_149 = arith.constant 0 : index
    %c16_150 = arith.constant 16 : index
    %236 = vector.load %arg5[%c0_148, %c0_149, %c16_150] : memref<3x64x32xbf16, #tpu.memory_space<vmem>>, vector<1x64x8xbf16>
    %237 = vector.shape_cast %236 : vector<1x64x8xbf16> to vector<64x8xbf16>
    %c1_151 = arith.constant 1 : index
    %c0_152 = arith.constant 0 : index
    %c16_153 = arith.constant 16 : index
    %238 = vector.load %arg5[%c1_151, %c0_152, %c16_153] : memref<3x64x32xbf16, #tpu.memory_space<vmem>>, vector<1x64x8xbf16>
    %239 = vector.shape_cast %238 : vector<1x64x8xbf16> to vector<64x8xbf16>
    %c2_154 = arith.constant 2 : index
    %c0_155 = arith.constant 0 : index
    %c16_156 = arith.constant 16 : index
    %240 = vector.load %arg5[%c2_154, %c0_155, %c16_156] : memref<3x64x32xbf16, #tpu.memory_space<vmem>>, vector<1x64x8xbf16>
    %241 = vector.shape_cast %240 : vector<1x64x8xbf16> to vector<64x8xbf16>
    %cst_157 = arith.constant dense<0.000000e+00> : vector<64x64xf32>
    %242 = tpu.matmul %237, %239, %cst_157 {dimension_numbers = #tpu.dot_dimension_numbers<[1], [1], [0], [0], [0, 0, 1, 0], [], []>} : vector<64x8xbf16>, vector<64x8xbf16>, vector<64x64xf32> -> vector<64x64xf32>
    %cst_158 = arith.constant dense<0xFF800000> : vector<64xf32>
    %243 = vector.multi_reduction <maximumf>, %242, %cst_158 [1] : vector<64x64xf32> to vector<64xf32>
    %244 = vector.shape_cast %243 : vector<64xf32> to vector<64x1xf32>
    %245 = vector.broadcast %244 : vector<64x1xf32> to vector<64x64xf32>
    %246 = arith.subf %242, %245 : vector<64x64xf32>
    %247 = math.exp %246 : vector<64x64xf32>
    %cst_159 = arith.constant dense<0.000000e+00> : vector<64xf32>
    %248 = vector.multi_reduction <add>, %247, %cst_159 [1] : vector<64x64xf32> to vector<64xf32>
    %249 = vector.shape_cast %248 : vector<64xf32> to vector<64x1xf32>
    %250 = tpu.reciprocal %249 {approx = true} : vector<64x1xf32> -> vector<64x1xf32>
    %251 = vector.broadcast %250 : vector<64x1xf32> to vector<64x64xf32>
    %252 = arith.mulf %247, %251 : vector<64x64xf32>
    %253 = arith.truncf %252 : vector<64x64xf32> to vector<64x64xbf16>
    %cst_160 = arith.constant dense<0.000000e+00> : vector<64x8xf32>
    %254 = tpu.matmul %253, %241, %cst_160 {dimension_numbers = #tpu.dot_dimension_numbers<[1], [0], [0], [1], [0, 0, 1, 1], [], []>} : vector<64x64xbf16>, vector<64x8xbf16>, vector<64x8xf32> -> vector<64x8xf32>
    %255 = arith.truncf %254 : vector<64x8xf32> to vector<64x8xbf16>
    %c440 = arith.constant 440 : index
    %c0_161 = arith.constant 0 : index
    %256 = vector.load %arg2[%c440, %c0_161] : memref<648x64xbf16, #tpu.memory_space<vmem>>, vector<8x64xbf16>
    %cst_162 = arith.constant dense<0.000000e+00> : vector<64x64xf32>
    %257 = tpu.matmul %255, %256, %cst_162 {dimension_numbers = #tpu.dot_dimension_numbers<[1], [0], [0], [1], [0, 0, 1, 1], [], []>} : vector<64x8xbf16>, vector<8x64xbf16>, vector<64x64xf32> -> vector<64x64xf32>
    %258 = arith.addf %235, %257 : vector<64x64xf32>
    %c0_163 = arith.constant 0 : index
    %c0_164 = arith.constant 0 : index
    %c24_165 = arith.constant 24 : index
    %259 = vector.load %arg5[%c0_163, %c0_164, %c24_165] : memref<3x64x32xbf16, #tpu.memory_space<vmem>>, vector<1x64x8xbf16>
    %260 = vector.shape_cast %259 : vector<1x64x8xbf16> to vector<64x8xbf16>
    %c1_166 = arith.constant 1 : index
    %c0_167 = arith.constant 0 : index
    %c24_168 = arith.constant 24 : index
    %261 = vector.load %arg5[%c1_166, %c0_167, %c24_168] : memref<3x64x32xbf16, #tpu.memory_space<vmem>>, vector<1x64x8xbf16>
    %262 = vector.shape_cast %261 : vector<1x64x8xbf16> to vector<64x8xbf16>
    %c2_169 = arith.constant 2 : index
    %c0_170 = arith.constant 0 : index
    %c24_171 = arith.constant 24 : index
    %263 = vector.load %arg5[%c2_169, %c0_170, %c24_171] : memref<3x64x32xbf16, #tpu.memory_space<vmem>>, vector<1x64x8xbf16>
    %264 = vector.shape_cast %263 : vector<1x64x8xbf16> to vector<64x8xbf16>
    %cst_172 = arith.constant dense<0.000000e+00> : vector<64x64xf32>
    %265 = tpu.matmul %260, %262, %cst_172 {dimension_numbers = #tpu.dot_dimension_numbers<[1], [1], [0], [0], [0, 0, 1, 0], [], []>} : vector<64x8xbf16>, vector<64x8xbf16>, vector<64x64xf32> -> vector<64x64xf32>
    %cst_173 = arith.constant dense<0xFF800000> : vector<64xf32>
    %266 = vector.multi_reduction <maximumf>, %265, %cst_173 [1] : vector<64x64xf32> to vector<64xf32>
    %267 = vector.shape_cast %266 : vector<64xf32> to vector<64x1xf32>
    %268 = vector.broadcast %267 : vector<64x1xf32> to vector<64x64xf32>
    %269 = arith.subf %265, %268 : vector<64x64xf32>
    %270 = math.exp %269 : vector<64x64xf32>
    %cst_174 = arith.constant dense<0.000000e+00> : vector<64xf32>
    %271 = vector.multi_reduction <add>, %270, %cst_174 [1] : vector<64x64xf32> to vector<64xf32>
    %272 = vector.shape_cast %271 : vector<64xf32> to vector<64x1xf32>
    %273 = tpu.reciprocal %272 {approx = true} : vector<64x1xf32> -> vector<64x1xf32>
    %274 = vector.broadcast %273 : vector<64x1xf32> to vector<64x64xf32>
    %275 = arith.mulf %270, %274 : vector<64x64xf32>
    %276 = arith.truncf %275 : vector<64x64xf32> to vector<64x64xbf16>
    %cst_175 = arith.constant dense<0.000000e+00> : vector<64x8xf32>
    %277 = tpu.matmul %276, %264, %cst_175 {dimension_numbers = #tpu.dot_dimension_numbers<[1], [0], [0], [1], [0, 0, 1, 1], [], []>} : vector<64x64xbf16>, vector<64x8xbf16>, vector<64x8xf32> -> vector<64x8xf32>
    %278 = arith.truncf %277 : vector<64x8xf32> to vector<64x8xbf16>
    %c448 = arith.constant 448 : index
    %c0_176 = arith.constant 0 : index
    %279 = vector.load %arg2[%c448, %c0_176] : memref<648x64xbf16, #tpu.memory_space<vmem>>, vector<8x64xbf16>
    %cst_177 = arith.constant dense<0.000000e+00> : vector<64x64xf32>
    %280 = tpu.matmul %278, %279, %cst_177 {dimension_numbers = #tpu.dot_dimension_numbers<[1], [0], [0], [1], [0, 0, 1, 1], [], []>} : vector<64x8xbf16>, vector<8x64xbf16>, vector<64x64xf32> -> vector<64x64xf32>
    %281 = arith.addf %258, %280 : vector<64x64xf32>
    %cst_178 = arith.constant 0.000000e+00 : f32
    %282 = vector.broadcast %cst_178 : f32 to vector<64x64xf32>
    %283 = arith.maximumf %281, %282 : vector<64x64xf32>
    %284 = arith.truncf %283 : vector<64x64xf32> to vector<64x64xbf16>
    %c456 = arith.constant 456 : index
    %c0_179 = arith.constant 0 : index
    %285 = vector.load %arg2[%c456, %c0_179] : memref<648x64xbf16, #tpu.memory_space<vmem>>, vector<64x32xbf16>
    %cst_180 = arith.constant dense<0.000000e+00> : vector<64x32xf32>
    %286 = tpu.matmul %284, %285, %cst_180 {dimension_numbers = #tpu.dot_dimension_numbers<[1], [0], [0], [1], [0, 0, 1, 1], [], []>} : vector<64x64xbf16>, vector<64x32xbf16>, vector<64x32xf32> -> vector<64x32xf32>
    %c12 = arith.constant 12 : index
    %c0_181 = arith.constant 0 : index
    %287 = vector.load %arg3[%c12, %c0_181] : memref<24x64xf32, #tpu.memory_space<vmem>>, vector<1x32xf32>
    %288 = vector.broadcast %287 : vector<1x32xf32> to vector<64x32xf32>
    %289 = arith.addf %286, %288 : vector<64x32xf32>
    %290 = arith.addf %156, %289 : vector<64x32xf32>
    %291 = arith.truncf %290 : vector<64x32xf32> to vector<64x32xbf16>
    %c520 = arith.constant 520 : index
    %c0_182 = arith.constant 0 : index
    %292 = vector.load %arg2[%c520, %c0_182] : memref<648x64xbf16, #tpu.memory_space<vmem>>, vector<32x32xbf16>
    %cst_183 = arith.constant dense<0.000000e+00> : vector<64x32xf32>
    %293 = tpu.matmul %291, %292, %cst_183 {dimension_numbers = #tpu.dot_dimension_numbers<[1], [0], [0], [1], [0, 0, 1, 1], [], []>} : vector<64x32xbf16>, vector<32x32xbf16>, vector<64x32xf32> -> vector<64x32xf32>
    %c13 = arith.constant 13 : index
    %c0_184 = arith.constant 0 : index
    %294 = vector.load %arg3[%c13, %c0_184] : memref<24x64xf32, #tpu.memory_space<vmem>>, vector<1x32xf32>
    %295 = vector.broadcast %294 : vector<1x32xf32> to vector<64x32xf32>
    %296 = arith.addf %293, %295 : vector<64x32xf32>
    %cst_185 = arith.constant 0.000000e+00 : f32
    %297 = vector.broadcast %cst_185 : f32 to vector<64x32xf32>
    %298 = arith.maximumf %296, %297 : vector<64x32xf32>
    %299 = arith.truncf %298 : vector<64x32xf32> to vector<64x32xbf16>
    %c552 = arith.constant 552 : index
    %c0_186 = arith.constant 0 : index
    %300 = vector.load %arg2[%c552, %c0_186] : memref<648x64xbf16, #tpu.memory_space<vmem>>, vector<32x32xbf16>
    %cst_187 = arith.constant dense<0.000000e+00> : vector<64x32xf32>
    %301 = tpu.matmul %299, %300, %cst_187 {dimension_numbers = #tpu.dot_dimension_numbers<[1], [0], [0], [1], [0, 0, 1, 1], [], []>} : vector<64x32xbf16>, vector<32x32xbf16>, vector<64x32xf32> -> vector<64x32xf32>
    %c14 = arith.constant 14 : index
    %c0_188 = arith.constant 0 : index
    %302 = vector.load %arg3[%c14, %c0_188] : memref<24x64xf32, #tpu.memory_space<vmem>>, vector<1x32xf32>
    %303 = vector.broadcast %302 : vector<1x32xf32> to vector<64x32xf32>
    %304 = arith.addf %301, %303 : vector<64x32xf32>
    %cst_189 = arith.constant 0.000000e+00 : f32
    %305 = vector.broadcast %cst_189 : f32 to vector<64x32xf32>
    %306 = arith.maximumf %304, %305 : vector<64x32xf32>
    %c584 = arith.constant 584 : index
    %c0_190 = arith.constant 0 : index
    %307 = vector.load %arg2[%c584, %c0_190] : memref<648x64xbf16, #tpu.memory_space<vmem>>, vector<32x32xbf16>
    %cst_191 = arith.constant dense<0.000000e+00> : vector<64x32xf32>
    %308 = tpu.matmul %291, %307, %cst_191 {dimension_numbers = #tpu.dot_dimension_numbers<[1], [0], [0], [1], [0, 0, 1, 1], [], []>} : vector<64x32xbf16>, vector<32x32xbf16>, vector<64x32xf32> -> vector<64x32xf32>
    %c15 = arith.constant 15 : index
    %c0_192 = arith.constant 0 : index
    %309 = vector.load %arg3[%c15, %c0_192] : memref<24x64xf32, #tpu.memory_space<vmem>>, vector<1x32xf32>
    %310 = vector.broadcast %309 : vector<1x32xf32> to vector<64x32xf32>
    %311 = arith.addf %308, %310 : vector<64x32xf32>
    %cst_193 = arith.constant 0.000000e+00 : f32
    %312 = vector.broadcast %cst_193 : f32 to vector<64x32xf32>
    %313 = arith.maximumf %311, %312 : vector<64x32xf32>
    %314 = arith.truncf %313 : vector<64x32xf32> to vector<64x32xbf16>
    %c616 = arith.constant 616 : index
    %c0_194 = arith.constant 0 : index
    %315 = vector.load %arg2[%c616, %c0_194] : memref<648x64xbf16, #tpu.memory_space<vmem>>, vector<32x32xbf16>
    %cst_195 = arith.constant dense<0.000000e+00> : vector<64x32xf32>
    %316 = tpu.matmul %314, %315, %cst_195 {dimension_numbers = #tpu.dot_dimension_numbers<[1], [0], [0], [1], [0, 0, 1, 1], [], []>} : vector<64x32xbf16>, vector<32x32xbf16>, vector<64x32xf32> -> vector<64x32xf32>
    %c16_196 = arith.constant 16 : index
    %c0_197 = arith.constant 0 : index
    %317 = vector.load %arg3[%c16_196, %c0_197] : memref<24x64xf32, #tpu.memory_space<vmem>>, vector<1x32xf32>
    %318 = vector.broadcast %317 : vector<1x32xf32> to vector<64x32xf32>
    %319 = arith.addf %316, %318 : vector<64x32xf32>
    %cst_198 = arith.constant 0.000000e+00 : f32
    %320 = vector.broadcast %cst_198 : f32 to vector<64x32xf32>
    %321 = arith.maximumf %319, %320 : vector<64x32xf32>
    %c0_199 = arith.constant 0 : index
    %c0_200 = arith.constant 0 : index
    %322 = vector.load %arg4[%c0_199, %c0_200] : memref<64x64xf32, #tpu.memory_space<vmem>>, vector<64x32xf32>
    tpu.vector_store %arg4[%c0_199, %c0_200], %306 {strides = array<i32>} : memref<64x64xf32, #tpu.memory_space<vmem>>, vector<64x32xf32>,
    %c0_201 = arith.constant 0 : index
    %c32 = arith.constant 32 : index
    %323 = vector.load %arg4[%c0_201, %c32] : memref<64x64xf32, #tpu.memory_space<vmem>>, vector<64x32xf32>
    tpu.vector_store %arg4[%c0_201, %c32], %321 {strides = array<i32>} : memref<64x64xf32, #tpu.memory_space<vmem>>, vector<64x32xf32>,
    return
  }
  func.func @transform_0(%arg0: i32) -> (i32, i32) {
    %c0_i32 = arith.constant 0 : i32
    %c0_i32_0 = arith.constant 0 : i32
    return %arg0, %c0_i32 : i32, i32
  }
  func.func @transform_1(%arg0: i32) -> (i32, i32) {
    %c0_i32 = arith.constant 0 : i32
    %c0_i32_0 = arith.constant 0 : i32
    %c0_i32_1 = arith.constant 0 : i32
    return %c0_i32, %c0_i32_0 : i32, i32
  }
  func.func @transform_2(%arg0: i32) -> (i32, i32) {
    %c0_i32 = arith.constant 0 : i32
    %c0_i32_0 = arith.constant 0 : i32
    %c0_i32_1 = arith.constant 0 : i32
    return %c0_i32, %c0_i32_0 : i32, i32
  }
  func.func @transform_3(%arg0: i32) -> (i32, i32) {
    %c0_i32 = arith.constant 0 : i32
    %c0_i32_0 = arith.constant 0 : i32
    return %arg0, %c0_i32 : i32, i32
  }
}

</mosaic_0001>

<bundles_post_ra>
// kernel: attentional_gnn.1
= control target key start
LH: loop header
LB: loop body
LE: loop exit
PB: predicated region body
PF: predicated region fallthrough
CT: control target
= control target key end

     0   :  { %s6603_s12 = smov 0   ;;  %s7970_s0 = inlined_call_operand.vmem [shape: f32[128,8], index: 0, kind: input, shape index: {}]   ;;  %s7971_s1 = inlined_call_operand.vmem [shape: bf16[648,64], index: 1, kind: input, shape index: {}]   ;;  %s7972_s2 = inlined_call_operand.vmem [shape: f32[24,64], index: 2, kind: input, shape index: {}]   ;;  %s7973_s3 = inlined_call_operand.vmem [shape: f32[128,64], index: 3, kind: output, shape index: {}]  }
   0x1 LB: > { %s5088_s13 = sadd.s32 4294967295, %s6577_s12   ;;  %p5092_p0 = scmp.ge.s32.totalorder %s6577_s12, 1  ;;  %s6577_s12 = sphi %s6603_s12, %s13_s12  }
   0x2   : > { %p138_p1 = scmp.lt.s32.totalorder %s6577_s12, 3 }
   0x4   : > { %p139_p2 = pnand %p5092_p0, %p138_p1 }
   0x5   : > { %v187_v0 = vld [vmem:[%s7971_s1] sm:$0xf] (!%p139_p2)  ;;  %vm206_vm0 = vcmask (!%p139_p2), 1043456   ;;  %s5093_s16 = sshll.u32 (!%p139_p2), %s5088_s13, 3  ;;  %vm193_vm1 = vcmask (!%p139_p2), 64512   ;;  %v6271_v14 = vld [vmem:[%s7971_s1 + $0x4] sm:$0xff] (!%p139_p2)  }
   0x6   : > { %142 = sbr.rel (%p139_p2) target bundleno = 5841 (0x16d1), region = 32  ;;  %6217 = vmatprep.subr.msk.bf16.mxu0 (!%p139_p2), %vm206_vm0, %v187_v0  ;;  %v208_v1 = vsel (!%p139_p2), %vm206_vm0, %v187_v0, 0  ;;  %p163_p3 = scmp.lt.s32.totalorder (!%p139_p2), %s5093_s16, 15  ;;  %6218 = vmatprep.subr.msk.bf16.mxu1 (!%p139_p2), %vm206_vm0, %v187_v0  ;;  %v6272_v15 = vld [vmem:[%s7971_s1 + $0xc] sm:$0xff] (!%p139_p2)   ;;  %v5097_v16 = vld [vmem:[%s7972_s2] ss:$0 sm:$0xff] (!%p139_p2) }
   0x7   : > { %5590 = vmatpush3.bf16.msra.mxu0 (!%p139_p2), %v208_v1  ;;  %6136 = vmatpush3.bf16.msra.mxu1 (!%p139_p2), %v208_v1  ;;  %vm308_vm2 = vcmask (!%p139_p2), 261120   ;;  %v6273_v45 = vld [vmem:[%s7971_s1 + $0x14] sm:$0xff] (!%p139_p2)   ;;  %v6274_v46 = vld [vmem:[%s7971_s1 + $0x1c] sm:$0xff] (!%p139_p2)   ;;  %s6579_s4 = smov (!%p139_p2), 120   ;;  %vm983_vm3 = vcmask (!%p139_p2), 523264   ;;  %s6580_s7 = smov (!%p139_p2), 112  }
   0x8   : > { %5599 = vmatprep.subr.bf16.mxu1 (!%p139_p2), %v6271_v14  ;;  %5611 = vmatprep.subr.bf16.mxu0 (!%p139_p2), %v6273_v45  ;;  %v6275_v47 = vld [vmem:[%s7971_s1 + $0x34] sm:$0xff] (!%p139_p2)   ;;  %v5102_v48 = vld [vmem:[%s7972_s2 + $0x1] ss:$0 sm:$0xff] (!%p139_p2)  ;;  %s6581_s10 = smov (!%p139_p2), 104   ;;  %s6582_s30 = smov (!%p139_p2), 32   ;;  %vm5023_vm4 = vcmask (!%p139_p2), 523520  }
   0xd   : > { %s7975_s16 = smov (!%p163_p3, %s5093_s16), 15 }
   0xe   : > { %s5094_s17 = sshll.u32 %s7975_s16, 3 }
   0xf   : > { %s166_s20 = scalar_lea.vmem %s7970_s0, %s5094_s17  ;;  %s7930_s29 = scalar_lea.vmem %s7973_s3, %s5094_s17 }
  0x10   : > { %v175_v2 = vld [vmem:[%s166_s20] sm:$0xff]  ;;  %v176_v3 = vld [vmem:[%s166_s20 + $0x8] sm:$0xff]  ;;  %v177_v4 = vld [vmem:[%s166_s20 + $0x10] sm:$0xff] }
  0x11   : > { %v183_v5 = vpack.c.bf16 %v176_v3, %v175_v2  ;;  %v178_v6 = vld [vmem:[%s166_s20 + $0x18] sm:$0xff]  ;;  %v179_v7 = vld [vmem:[%s166_s20 + $0x20] sm:$0xff]  ;;  %v180_v8 = vld [vmem:[%s166_s20 + $0x28] sm:$0xff] }
  0x12   : > { %v184_v9 = vpack.c.bf16 %v178_v6, %v177_v4  ;;  %v185_v10 = vpack.c.bf16 %v180_v8, %v179_v7  ;;  %v181_v11 = vld [vmem:[%s166_s20 + $0x30] sm:$0xff]  ;;  %v182_v12 = vld [vmem:[%s166_s20 + $0x38] sm:$0xff] }
  0x13   : > { %5591 = vmatprep.mubr.msk.bf16.mxu0 %vm193_vm1, %v183_v5  ;;  %v186_v13 = vpack.c.bf16 %v182_v12, %v181_v11 }
  0x14   : > { %5592 = vmatmul.mubr.msk.bf16.vlgmr.msra.gmra.mrb[0].mxu0 %vm193_vm1, %v184_v9  ;;  %5595 = vmatprep.mubr.msk.bf16.mxu1 %vm193_vm1, %v185_v10 }
  0x15   : > { %5596 = vmatmul.mubr.msk.bf16.vlgmr.msra.gmra.mrb[0].mxu1 %vm193_vm1, %v186_v13  ;;  %5612 = vmatpush3.bf16.msra.mxu0 %v6273_v45  ;;  %v6276_v13 = vld [vmem:[%s7971_s1 + $0x24] sm:$0xff]  }
  0x16   : > { %5600 = vmatpush3.bf16.msra.mxu1 %v6271_v14  ;;  %5613 = vmatprep.subr.bf16.mxu0 %v6274_v46  ;;  %v6277_v14 = vld [vmem:[%s7971_s1 + $0x3c] sm:$0xff]  }
  0x17   : > { %5601 = vmatprep.subr.bf16.mxu1 %v6272_v15 }
  0x19   : > { %5614 = vmatpush3.bf16.msra.mxu0 %v6274_v46 }
  0x1a   : > { %5602 = vmatpush3.bf16.msra.mxu1 %v6272_v15  ;;  %5635 = vmatprep.subr.bf16.mxu0 %v6275_v47  ;;  %v6278_v15 = vld [vmem:[%s7971_s1 + $0x2c] sm:$0xff]  }
  0x1b   : > { %5623 = vmatprep.subr.bf16.mxu1 %v6276_v13 }
  0xe7   : > { %v5593_v17 = vpop.f32.mrb[0].mxu0 }
  0xe8   : > { %v253_v18 = vadd.f32 %v5593_v17, %v5097_v16  ;;  %v244_v19 = vpop.f32.mrb[1].mxu0  ;;  %v5597_v20 = vpop.f32.mrb[0].mxu1  ;;  %v6280_v17 = vld [vmem:[%s7971_s1 + $0x54] sm:$0xff]  }
  0xe9   : > { %v245_v21 = vadd.f32 %v5097_v16, %v244_v19  ;;  %v5594_v22 = vpop.f32.mrb[2].mxu0  ;;  %v269_v23 = vadd.f32 %v5597_v20, %v5097_v16  ;;  %v260_v24 = vpop.f32.mrb[1].mxu1  ;;  %v5109_v19 = vld [vmem:[%s7972_s2 + $0x2] ss:$0 sm:$0xff] }
  0xea   : > { %v256_v25 = vadd.f32 %v5594_v22, %v5097_v16  ;;  %v247_v26 = vpop.f32.mrb[3].mxu0  ;;  %v261_v27 = vadd.f32 %v5097_v16, %v260_v24  ;;  %v5598_v28 = vpop.f32.mrb[2].mxu1  ;;  %v277_v33 = vmax.f32 %v253_v18, 0.0 }
  0xeb   : > { %v248_v29 = vadd.f32 %v5097_v16, %v247_v26  ;;  %v281_v30 = vmax.f32 %v269_v23, 0.0  ;;  %v272_v31 = vadd.f32 %v5598_v28, %v5097_v16  ;;  %v263_v32 = vpop.f32.mrb[3].mxu1  ;;  %v275_v37 = vmax.f32 %v245_v21, 0.0 }
  0xec   : > { %v278_v34 = vmax.f32 %v256_v25, 0.0  ;;  %v279_v35 = vmax.f32 %v261_v27, 0.0  ;;  %v264_v36 = vadd.f32 %v5097_v16, %v263_v32  ;;  %v6279_v16 = vld [vmem:[%s7971_s1 + $0x44] sm:$0xff]  }
  0xed   : > { %v276_v38 = vmax.f32 %v248_v29, 0.0  ;;  %v282_v39 = vmax.f32 %v272_v31, 0.0  ;;  %v6281_v29 = vld [vmem:[%s7971_s1 + $0x4c] sm:$0xff]  }
  0xee   : > { %v284_v40 = vpack.c.bf16 %v278_v34, %v277_v33  ;;  %v280_v41 = vmax.f32 %v264_v36, 0.0 }
  0xef   : > { %v283_v42 = vpack.c.bf16 %v276_v38, %v275_v37  ;;  %v286_v43 = vpack.c.bf16 %v282_v39, %v281_v30  ;;  %v6282_v30 = vld [vmem:[%s7971_s1 + $0x5c] sm:$0xff]  }
  0xf0   : > { %v285_v44 = vpack.c.bf16 %v280_v41, %v279_v35 }
  0xf1   : > { %5603 = vmatprep.mubr.msk.bf16.mxu1 %vm308_vm2, %v283_v42  ;;  %v5116_v42 = vld [vmem:[%s7972_s2 + $0x3] ss:$0 sm:$0xff] }
  0xf2   : > { %5604 = vmatmul.mubr.msk.bf16.vlgmr.msra.gmra.mrb[4].mxu1 %vm308_vm2, %v284_v40 }
  0xf3   : > { %5607 = vmatprep.mubr.msk.bf16.mxu1 %vm308_vm2, %v285_v44  ;;  %5624 = vmatpush3.bf16.msra.mxu1 %v6276_v13  ;;  %v5123_v44 = vld [vmem:[%s7972_s2 + $0x4] ss:$0 sm:$0xff] }
  0xf4   : > { %5625 = vmatprep.subr.bf16.mxu1 %v6278_v15 }
  0xf7   : > { %5626 = vmatpush3.bf16.msra.mxu1 %v6278_v15 }
  0xf8   : > { %5647 = vmatprep.subr.bf16.mxu1 %v6279_v16 }
  0xfa   : > { %5608 = vmatmul.mubr.msk.bf16.gmra.mrb[8].mxu1 %vm308_vm2, %v286_v43 }
 0x1c5   : > { %v5605_v49 = vpop.f32.mrb[4].mxu1 }
 0x1c6   : > { %v364_v50 = vadd.f32 %v5605_v49, %v5102_v48  ;;  %v355_v51 = vpop.f32.mrb[5].mxu1 }
 0x1c7   : > { %v356_v52 = vadd.f32 %v5102_v48, %v355_v51  ;;  %v5606_v53 = vpop.f32.mrb[6].mxu1 }
 0x1c8   : > { %v367_v54 = vadd.f32 %v5606_v53, %v5102_v48  ;;  %v358_v55 = vpop.f32.mrb[7].mxu1  ;;  %v388_v57 = vmax.f32 %v364_v50, 0.0 }
 0x1c9   : > { %v359_v56 = vadd.f32 %v5102_v48, %v358_v55  ;;  %v386_v59 = vmax.f32 %v356_v52, 0.0 }
 0x1ca   : > { %v389_v58 = vmax.f32 %v367_v54, 0.0 }
 0x1cb   : > { %v387_v60 = vmax.f32 %v359_v56, 0.0 }
 0x1cc   : > { %v395_v61 = vpack.c.bf16 %v389_v58, %v388_v57 }
 0x1cd   : > { %v394_v62 = vpack.c.bf16 %v387_v60, %v386_v59  ;;  %v5609_v63 = vpop.f32.mrb[8].mxu1 }
 0x1ce   : > { %v380_v0 = vadd.f32 %v5609_v63, %v5102_v48  ;;  %v371_v1 = vpop.f32.mrb[9].mxu1 }
 0x1cf   : > { %v372_v2 = vadd.f32 %v5102_v48, %v371_v1  ;;  %v5610_v3 = vpop.f32.mrb[10].mxu1  ;;  %5615 = vmatprep.mubr.msk.bf16.mxu0 %vm308_vm2, %v394_v62 }
 0x1d0   : > { %v392_v4 = vmax.f32 %v380_v0, 0.0  ;;  %v383_v5 = vadd.f32 %v5610_v3, %v5102_v48  ;;  %v374_v6 = vpop.f32.mrb[11].mxu1  ;;  %5616 = vmatmul.mubr.msk.bf16.vlgmr.msra.gmra.mrb[4].mxu0 %vm308_vm2, %v395_v61 }
 0x1d1   : > { %v390_v7 = vmax.f32 %v372_v2, 0.0  ;;  %v375_v8 = vadd.f32 %v5102_v48, %v374_v6  ;;  %5636 = vmatpush3.bf16.msra.mxu0 %v6275_v47 }
 0x1d2   : > { %v393_v9 = vmax.f32 %v383_v5, 0.0  ;;  %5637 = vmatprep.subr.bf16.mxu0 %v6277_v14 }
 0x1d3   : > { %v391_v10 = vmax.f32 %v375_v8, 0.0 }
 0x1d4   : > { %v397_v11 = vpack.c.bf16 %v393_v9, %v392_v4 }
 0x1d5   : > { %v396_v12 = vpack.c.bf16 %v391_v10, %v390_v7  ;;  %5638 = vmatpush3.bf16.msra.mxu0 %v6277_v14 }
 0x1d6   : > { %5659 = vmatprep.subr.bf16.mxu0 %v6280_v17 }
 0x1d7   : > { %5619 = vmatprep.mubr.msk.bf16.mxu0 %vm308_vm2, %v396_v12 }
 0x1d8   : > { %5620 = vmatmul.mubr.msk.bf16.gmra.mrb[8].mxu0 %vm308_vm2, %v397_v11 }
 0x2a3   : > { %v5617_v18 = vpop.f32.mrb[4].mxu0 }
 0x2a4   : > { %v465_v20 = vpop.f32.mrb[5].mxu0  ;;  %v6682_v26 = vadd.f32 %v5617_v18, %v5109_v19 }
 0x2a5   : > { %v5618_v21 = vpop.f32.mrb[6].mxu0  ;;  %v6678_v24 = vadd.f32 %v5109_v19, %v465_v20 }
 0x2a6   : > { %v6676_v22 = vadd.f32 %v5618_v21, %v5109_v19  ;;  %v468_v23 = vpop.f32.mrb[7].mxu0 }
 0x2a7   : > { %v6680_v25 = vadd.f32 %v5109_v19, %v468_v23  ;;  %v5130_v23 = vld [vmem:[%s7972_s2 + $0x5] ss:$0 sm:$0xff] }
 0x2a8   : > { %v497_v28 = vpack.c.bf16 %v6676_v22, %v6682_v26 }
 0x2a9   : > { %v496_v27 = vpack.c.bf16 %v6680_v25, %v6678_v24 }
 0x2ab   : > { %v5621_v31 = vpop.f32.mrb[8].mxu0  ;;  %5627 = vmatprep.mubr.msk.bf16.mxu1 %vm308_vm2, %v496_v27  ;;  %5639 = vmatprep.mubr.msk.bf16.mxu0 %vm308_vm2, %v496_v27 }
 0x2ac   : > { %v481_v32 = vpop.f32.mrb[9].mxu0  ;;  %5628 = vmatmul.mubr.msk.bf16.vlgmr.msra.gmra.mrb[12].mxu1 %vm308_vm2, %v497_v28  ;;  %5640 = vmatmul.mubr.msk.bf16.vlgmr.msra.gmra.mrb[12].mxu0 %vm308_vm2, %v497_v28  ;;  %v6704_v38 = vadd.f32 %v5621_v31, %v5109_v19 }
 0x2ad   : > { %v5622_v33 = vpop.f32.mrb[10].mxu0  ;;  %5648 = vmatpush3.bf16.msra.mxu1 %v6279_v16  ;;  %5660 = vmatpush3.bf16.msra.mxu0 %v6280_v17  ;;  %v6700_v36 = vadd.f32 %v5109_v19, %v481_v32 }
 0x2ae   : > { %v6698_v34 = vadd.f32 %v5622_v33, %v5109_v19  ;;  %v484_v35 = vpop.f32.mrb[11].mxu0  ;;  %5649 = vmatprep.subr.bf16.mxu1 %v6281_v29  ;;  %5661 = vmatprep.subr.bf16.mxu0 %v6282_v30 }
 0x2af   : > { %v6702_v37 = vadd.f32 %v5109_v19, %v484_v35 }
 0x2b0   : > { %v499_v40 = vpack.c.bf16 %v6698_v34, %v6704_v38 }
 0x2b1   : > { %v498_v39 = vpack.c.bf16 %v6702_v37, %v6700_v36  ;;  %5650 = vmatpush3.bf16.msra.mxu1 %v6281_v29  ;;  %5662 = vmatpush3.bf16.msra.mxu0 %v6282_v30 }
 0x2b3   : > { %5631 = vmatprep.mubr.msk.bf16.mxu1 %vm308_vm2, %v498_v39  ;;  %5643 = vmatprep.mubr.msk.bf16.mxu0 %vm308_vm2, %v498_v39 }
 0x2b4   : > { %5632 = vmatmul.mubr.msk.bf16.gmra.mrb[16].mxu1 %vm308_vm2, %v499_v40  ;;  %5644 = vmatmul.mubr.msk.bf16.gmra.mrb[16].mxu0 %vm308_vm2, %v499_v40 }
 0x2b5   : > { %5651 = vmatprep.mubr.msk.bf16.mxu1 %vm308_vm2, %v496_v27  ;;  %5663 = vmatprep.mubr.msk.bf16.mxu0 %vm308_vm2, %v496_v27 }
 0x2bc   : > { %5652 = vmatmul.mubr.msk.bf16.vlgmr.msra.gmra.mrb[20].mxu1 %vm308_vm2, %v497_v28  ;;  %5664 = vmatmul.mubr.msk.bf16.vlgmr.msra.gmra.mrb[20].mxu0 %vm308_vm2, %v497_v28 }
 0x2bd   : > { %5655 = vmatprep.mubr.msk.bf16.mxu1 %vm308_vm2, %v498_v39  ;;  %5667 = vmatprep.mubr.msk.bf16.mxu0 %vm308_vm2, %v498_v39 }
 0x2c4   : > { %5656 = vmatmul.mubr.msk.bf16.gmra.mrb[24].mxu1 %vm308_vm2, %v499_v40  ;;  %5668 = vmatmul.mubr.msk.bf16.gmra.mrb[24].mxu0 %vm308_vm2, %v499_v40 }
 0x37f   : > { %v5629_v41 = vpop.f32.mrb[12].mxu1  ;;  %v5641_v43 = vpop.f32.mrb[12].mxu0 }
 0x380   : > { %v567_v45 = vpop.f32.mrb[13].mxu1  ;;  %v653_v46 = vpop.f32.mrb[13].mxu0  ;;  %v576_v49 = vadd.f32 %v5629_v41, %v5116_v42  ;;  %v662_v50 = vadd.f32 %v5641_v43, %v5123_v44 }
 0x381   : > { %v5630_v47 = vpop.f32.mrb[14].mxu1  ;;  %v5642_v48 = vpop.f32.mrb[14].mxu0  ;;  %v568_v55 = vadd.f32 %v5116_v42, %v567_v45  ;;  %v654_v56 = vadd.f32 %v5123_v44, %v653_v46 }
 0x382   : > { %v579_v51 = vadd.f32 %v5630_v47, %v5116_v42  ;;  %v665_v52 = vadd.f32 %v5642_v48, %v5123_v44  ;;  %v570_v53 = vpop.f32.mrb[15].mxu1  ;;  %v656_v54 = vpop.f32.mrb[15].mxu0 }
 0x383   : > { %v571_v57 = vadd.f32 %v5116_v42, %v570_v53  ;;  %v657_v58 = vadd.f32 %v5123_v44, %v656_v54 }
 0x384   : > { %v771_v59 = vpack.c.bf16 %v579_v51, %v576_v49  ;;  %v779_v60 = vpack.c.bf16 %v665_v52, %v662_v50 }
 0x385   : > { %v770_v61 = vpack.c.bf16 %v571_v57, %v568_v55  ;;  %v778_v62 = vpack.c.bf16 %v657_v58, %v654_v56 }
 0x386   : > { %775 = vst.msk [vmem:[#allocation2 + $0x8] sm:$0xff] %vm308_vm2, %v771_v59  ;;  %784 = vst.msk [vmem:[#allocation2 + $0x28] sm:$0xff] %vm308_vm2, %v779_v60 }
 0x387   : > { %774 = vst.msk [vmem:[#allocation2] sm:$0xff] %vm308_vm2, %v770_v61  ;;  %783 = vst.msk [vmem:[#allocation2 + $0x20] sm:$0xff] %vm308_vm2, %v778_v62  ;;  %v5633_v63 = vpop.f32.mrb[16].mxu1  ;;  %v5645_v0 = vpop.f32.mrb[16].mxu0 }
 0x388   : > { %v583_v1 = vpop.f32.mrb[17].mxu1  ;;  %v669_v2 = vpop.f32.mrb[17].mxu0  ;;  %v592_v5 = vadd.f32 %v5633_v63, %v5116_v42  ;;  %v678_v6 = vadd.f32 %v5645_v0, %v5123_v44 }
 0x389   : > { %v5634_v3 = vpop.f32.mrb[18].mxu1  ;;  %v5646_v4 = vpop.f32.mrb[18].mxu0  ;;  %v584_v11 = vadd.f32 %v5116_v42, %v583_v1  ;;  %v670_v12 = vadd.f32 %v5123_v44, %v669_v2 }
 0x38a   : > { %v595_v7 = vadd.f32 %v5634_v3, %v5116_v42  ;;  %v681_v8 = vadd.f32 %v5646_v4, %v5123_v44  ;;  %v586_v9 = vpop.f32.mrb[19].mxu1  ;;  %v672_v10 = vpop.f32.mrb[19].mxu0 }
 0x38b   : > { %v587_v13 = vadd.f32 %v5116_v42, %v586_v9  ;;  %v673_v14 = vadd.f32 %v5123_v44, %v672_v10 }
 0x38c   : > { %v773_v15 = vpack.c.bf16 %v595_v7, %v592_v5  ;;  %v781_v16 = vpack.c.bf16 %v681_v8, %v678_v6 }
 0x38d   : > { %v772_v17 = vpack.c.bf16 %v587_v13, %v584_v11  ;;  %v780_v18 = vpack.c.bf16 %v673_v14, %v670_v12  ;;  %v6751_v29 = vld [vmem:[#allocation2 + $0x28] sm:$0xff] }
 0x38e   : > { %777 = vst.msk [vmem:[#allocation2 + $0x18] sm:$0xff] %vm308_vm2, %v773_v15  ;;  %786 = vst.msk [vmem:[#allocation2 + $0x38] sm:$0xff] %vm308_vm2, %v781_v16  ;;  %v6734_v19 = vld [vmem:[#allocation2 + $0x20] sm:$0xff]  ;;  %v910_v44 = vsel %vm193_vm1, %v6751_v29, 0  ;;  %v6778_v56 = vld [vmem:[#allocation2 + $0x8] sm:$0xff] }
 0x38f   : > { %v6736_v20 = vld [vmem:[#allocation2] sm:$0xff]  ;;  %776 = vst.msk [vmem:[#allocation2 + $0x10] sm:$0xff] %vm308_vm2, %v772_v17  ;;  %785 = vst.msk [vmem:[#allocation2 + $0x30] sm:$0xff] %vm308_vm2, %v780_v18  ;;  %1262 = vrot.lane.b32.xlu0 %v6734_v19, %s6579_s4  ;;  %v5653_v21 = vpop.f32.mrb[20].mxu1  ;;  %6219 = vmatprep.subr.msk.bf16.mxu1 %vm193_vm1, %v6734_v19  ;;  %v907_v27 = vsel %vm193_vm1, %v6734_v19, 0 }
 0x390   : > { %5679 = vmatprep.mubr.msk.bf16.mxu1 %vm193_vm1, %v6736_v20  ;;  %v739_v28 = vpop.f32.mrb[21].mxu1  ;;  %5672 = vmatpush3.bf16.xpose.msra.mxu1 %v907_v27  ;;  %v748_v31 = vadd.f32 %v5653_v21, %v5130_v23 }
 0x391   : > { %v5654_v30 = vpop.f32.mrb[22].mxu1  ;;  %6220 = vmatprep.subr.msk.bf16.mxu1 %vm193_vm1, %v6751_v29  ;;  %v740_v35 = vadd.f32 %v5130_v23, %v739_v28 }
 0x392   : > { %v751_v32 = vadd.f32 %v5654_v30, %v5130_v23  ;;  %v742_v33 = vpop.f32.mrb[23].mxu1 }
 0x393   : > { %v743_v39 = vadd.f32 %v5130_v23, %v742_v33  ;;  %1264 = vrot.lane.b32.xlu0 %v6751_v29, %s6579_s4 }
 0x394   : > { %v788_v40 = vpack.c.bf16 %v751_v32, %v748_v31 }
 0x395   : > { %v787_v41 = vpack.c.bf16 %v743_v39, %v740_v35  ;;  %v6769_v50 = vld [vmem:[#allocation2 + $0x38] sm:$0xff] }
 0x396   : > { %793 = vst.msk [vmem:[#allocation2 + $0x48] sm:$0xff] %vm308_vm2, %v788_v40  ;;  %v6758_v42 = vld [vmem:[#allocation2 + $0x30] sm:$0xff]  ;;  %v6794_v60 = vld [vmem:[#allocation2 + $0x18] sm:$0xff]  ;;  %v916_v62 = vsel %vm193_vm1, %v6769_v50, 0 }
 0x397   : > { %792 = vst.msk [vmem:[#allocation2 + $0x40] sm:$0xff] %vm308_vm2, %v787_v41  ;;  %1266 = vrot.lane.b32.xlu1 %v6758_v42, %s6579_s4  ;;  %v5657_v43 = vpop.f32.mrb[24].mxu1  ;;  %1250 = vrot.lane.b32.xlu0 %v6736_v20, %s6579_s4  ;;  %v6771_v51 = vld [vmem:[#allocation2 + $0x10] sm:$0xff]  ;;  %v913_v58 = vsel %vm193_vm1, %v6758_v42, 0 }
 0x398   : > { %v755_v45 = vpop.f32.mrb[25].mxu1  ;;  %5674 = vmatpush3.bf16.xpose.msra.mxu1 %v910_v44  ;;  %v764_v47 = vadd.f32 %v5657_v43, %v5130_v23 }
 0x399   : > { %v5658_v46 = vpop.f32.mrb[26].mxu1  ;;  %6221 = vmatprep.subr.msk.bf16.mxu1 %vm193_vm1, %v6758_v42  ;;  %v756_v52 = vadd.f32 %v5130_v23, %v755_v45 }
 0x39a   : > { %v767_v48 = vadd.f32 %v5658_v46, %v5130_v23  ;;  %v758_v49 = vpop.f32.mrb[27].mxu1 }
 0x39b   : > { %v759_v53 = vadd.f32 %v5130_v23, %v758_v49  ;;  %1268 = vrot.lane.b32.xlu1 %v6769_v50, %s6579_s4  ;;  %1254 = vrot.lane.b32.xlu0 %v6771_v51, %s6579_s4 }
 0x39c   : > { %v790_v54 = vpack.c.bf16 %v767_v48, %v764_v47 }
 0x39d   : > { %v789_v55 = vpack.c.bf16 %v759_v53, %v756_v52  ;;  %v6789_v59 = vld [vmem:[#allocation2 + $0x48] sm:$0xff] }
 0x39e   : > { %795 = vst.msk [vmem:[#allocation2 + $0x58] sm:$0xff] %vm308_vm2, %v790_v54  ;;  %v6780_v57 = vld [vmem:[#allocation2 + $0x40] sm:$0xff] }
 0x39f   : > { %794 = vst.msk [vmem:[#allocation2 + $0x50] sm:$0xff] %vm308_vm2, %v789_v55  ;;  %1252 = vrot.lane.b32.xlu1 %v6778_v56, %s6579_s4  ;;  %5687 = vmatprep.subr.bf16.mxu0 %v6780_v57 }
 0x3a0   : > { %5676 = vmatpush3.bf16.xpose.msra.mxu1 %v913_v58  ;;  %5688 = vmatpush3.bf16.msra.mxu0 %v6780_v57 }
 0x3a1   : > { %6222 = vmatprep.subr.msk.bf16.mxu1 %vm193_vm1, %v6769_v50  ;;  %5689 = vmatprep.subr.bf16.mxu0 %v6789_v59 }
 0x3a3   : > { %1256 = vrot.lane.b32.xlu1 %v6794_v60, %s6579_s4 }
 0x3a4   : > { %5690 = vmatpush3.bf16.msra.mxu0 %v6789_v59 }
 0x3a5   : > { %v6805_v63 = vld [vmem:[#allocation2 + $0x58] sm:$0xff] }
 0x3a6   : > { %v6799_v61 = vld [vmem:[#allocation2 + $0x50] sm:$0xff] }
 0x3a7   : > { %5691 = vmatprep.subr.bf16.mxu0 %v6799_v61 }
 0x3a8   : > { %5678 = vmatpush3.bf16.xpose.msra.mxu1 %v916_v62  ;;  %5692 = vmatpush3.bf16.msra.mxu0 %v6799_v61 }
 0x3a9   : > { %5693 = vmatprep.subr.bf16.mxu0 %v6805_v63 }
 0x3ac   : > { %5694 = vmatpush3.bf16.msra.mxu0 %v6805_v63 }
 0x3af   : > { %5680 = vmatmul.mubr.msk.bf16.vlgmr.msra.gmra.mrb[28].mxu1 %vm193_vm1, %v6778_v56 }
 0x3b0   : > { %5683 = vmatprep.mubr.msk.bf16.mxu1 %vm193_vm1, %v6771_v51 }
 0x3b7   : > { %5684 = vmatmul.mubr.msk.bf16.gmra.mrb[32].mxu1 %vm193_vm1, %v6794_v60 }
 0x401   : > { %v1263_v0 = vpop.permute.xlu0 %1262 }
 0x402   : > { %6224 = vmatprep.subr.msk.bf16.mxu1 %vm193_vm1, %v1263_v0  ;;  %v1283_v1 = vsel %vm193_vm1, %v1263_v0, 0 }
 0x403   : > { %5714 = vmatpush3.bf16.xpose.msra.mxu1 %v1283_v1 }
 0x405   : > { %v1265_v2 = vpop.permute.xlu0 %1264 }
 0x406   : > { %6225 = vmatprep.subr.msk.bf16.mxu1 %vm193_vm1, %v1265_v2  ;;  %v1286_v4 = vsel %vm193_vm1, %v1265_v2, 0 }
 0x409   : > { %v1251_v3 = vpop.permute.xlu0 %1250  ;;  %v1267_v5 = vpop.permute.xlu1 %1266 }
 0x40a   : > { %5721 = vmatprep.mubr.msk.bf16.mxu1 %vm193_vm1, %v1251_v3  ;;  %v1289_v6 = vsel %vm193_vm1, %v1267_v5, 0 }
 0x40b   : > { %5716 = vmatpush3.bf16.xpose.msra.mxu1 %v1286_v4 }
 0x40c   : > { %6226 = vmatprep.subr.msk.bf16.mxu1 %vm193_vm1, %v1267_v5 }
 0x40d   : > { %v1269_v7 = vpop.permute.xlu1 %1268  ;;  %v1255_v10 = vpop.permute.xlu0 %1254 }
 0x40e   : > { %v1292_v8 = vsel %vm193_vm1, %v1269_v7, 0 }
 0x411   : > { %v1253_v9 = vpop.permute.xlu1 %1252 }
 0x413   : > { %5718 = vmatpush3.bf16.xpose.msra.mxu1 %v1289_v6 }
 0x414   : > { %6227 = vmatprep.subr.msk.bf16.mxu1 %vm193_vm1, %v1269_v7 }
 0x415   : > { %v1257_v11 = vpop.permute.xlu1 %1256 }
 0x41b   : > { %5720 = vmatpush3.bf16.xpose.msra.mxu1 %v1292_v8 }
 0x422   : > { %5722 = vmatmul.mubr.msk.bf16.vlgmr.msra.gmra.mrb[36].mxu1 %vm193_vm1, %v1253_v9 }
 0x423   : > { %5725 = vmatprep.mubr.msk.bf16.mxu1 %vm193_vm1, %v1255_v10 }
 0x42a   : > { %5726 = vmatmul.mubr.msk.bf16.gmra.mrb[40].mxu1 %vm193_vm1, %v1257_v11 }
 0x482   : > { %v5681_v12 = vpop.f32.mrb[28].mxu1 }
 0x483   : > { %v952_v13 = vpop.f32.mrb[29].mxu1  ;;  %v990_v18 = vsel %vm983_vm3, %v5681_v12, -inf }
 0x484   : > { %v5682_v14 = vpop.f32.mrb[30].mxu1  ;;  %v984_v15 = vsel %vm983_vm3, %v952_v13, -inf }
 0x485   : > { %985 = vmax.xlane.f32.xlu0 %v984_v15  ;;  %v955_v16 = vpop.f32.mrb[31].mxu1  ;;  %v993_v28 = vsel %vm983_vm3, %v5682_v14, -inf }
 0x486   : > { %v987_v17 = vsel %vm983_vm3, %v955_v16, -inf }
 0x487   : > { %988 = vmax.xlane.f32.xlu1 %v987_v17 }
 0x489   : > { %991 = vmax.xlane.f32.xlu0 %v990_v18 }
 0x48a   : > { %v5685_v21 = vpop.f32.mrb[32].mxu1 }
 0x48b   : > { %v968_v23 = vpop.f32.mrb[33].mxu1  ;;  %v1002_v32 = vsel %vm983_vm3, %v5685_v21, -inf }
 0x48c   : > { %v5686_v27 = vpop.f32.mrb[34].mxu1  ;;  %v996_v30 = vsel %vm983_vm3, %v968_v23, -inf }
 0x48d   : > { %994 = vmax.xlane.f32.xlu0 %v993_v28  ;;  %997 = vmax.xlane.f32.xlu1 %v996_v30  ;;  %v971_v31 = vpop.f32.mrb[35].mxu1  ;;  %v1005_v35 = vsel %vm983_vm3, %v5686_v27, -inf }
 0x48e   : > { %v999_v33 = vsel %vm983_vm3, %v971_v31, -inf }
 0x491   : > { %1003 = vmax.xlane.f32.xlu1 %v1002_v32  ;;  %1000 = vmax.xlane.f32.xlu0 %v999_v33 }
 0x495   : > { %1006 = vmax.xlane.f32.xlu0 %v1005_v35 }
 0x4f5   : > { %v6835_v39 = vpop.f32.mrb[36].mxu1 }
 0x4f6   : > { %v6837_v40 = vpop.f32.mrb[37].mxu1 }
 0x4f7   : > { %v6839_v41 = vpop.f32.mrb[38].mxu1 }
 0x4f8   : > { %v6841_v43 = vpop.f32.mrb[39].mxu1 }
 0x4fd   : > { %v6843_v44 = vpop.f32.mrb[40].mxu1 }
 0x4fe   : > { %v6845_v45 = vpop.f32.mrb[41].mxu1 }
 0x4ff   : > { %v6847_v46 = vpop.f32.mrb[42].mxu1 }
 0x500   : > { %v6849_v47 = vpop.f32.mrb[43].mxu1 }
 0x512   : > { %v986_v48 = vpop.xlane.xlu0 %985 }
 0x513   : > { %v1008_v49 = vsub.f32 %v952_v13, %v986_v48 }
 0x514   : > { %v989_v52 = vpop.xlane.xlu1 %988 }
 0x515   : > { %v1016_v53 = vmul.f32 1.442695, %v1008_v49  ;;  %v1009_v54 = vsub.f32 %v955_v16, %v989_v52 }
 0x516   : > { %v992_v55 = vpop.xlane.xlu0 %991 }
 0x517   : > { %6307 = vpow2.f32 %v1016_v53  ;;  %v1018_v58 = vmul.f32 1.442695, %v1009_v54  ;;  %v1010_v62 = vsub.f32 %v5681_v12, %v992_v55  ;;  %v1359_v54 = vsel %vm983_vm3, %v6837_v40, -inf }
 0x518   : > { %v1362_v55 = vsel %vm983_vm3, %v6841_v43, -inf }
 0x519   : > { %6309 = vpow2.f32 %v1018_v58  ;;  %v1020_v0 = vmul.f32 1.442695, %v1010_v62  ;;  %v1365_v58 = vsel %vm983_vm3, %v6835_v39, -inf  ;;  %v1371_v62 = vsel %vm983_vm3, %v6845_v45, -inf }
 0x51a   : > { %v995_v1 = vpop.xlane.xlu0 %994  ;;  %v998_v2 = vpop.xlane.xlu1 %997 }
 0x51b   : > { %6311 = vpow2.f32 %v1020_v0  ;;  %v1011_v3 = vsub.f32 %v5682_v14, %v995_v1  ;;  %v1012_v4 = vsub.f32 %v968_v23, %v998_v2  ;;  %v1368_v0 = vsel %vm983_vm3, %v6839_v41, -inf }
 0x51c   : > { %v1377_v1 = vsel %vm983_vm3, %v6843_v44, -inf  ;;  %v1374_v2 = vsel %vm983_vm3, %v6849_v47, -inf }
 0x51d   : > { %v1022_v5 = vmul.f32 1.442695, %v1011_v3  ;;  %v1024_v6 = vmul.f32 1.442695, %v1012_v4  ;;  %v1380_v3 = vsel %vm983_vm3, %v6847_v46, -inf }
 0x51e   : > { %v1004_v7 = vpop.xlane.xlu1 %1003  ;;  %v1001_v8 = vpop.xlane.xlu0 %1000  ;;  %v1157_v4 = vld [vmem:[%s7971_s1 + $0x64] sm:$0xf] }
 0x51f   : > { %6313 = vpow2.f32 %v1022_v5  ;;  %v1014_v9 = vsub.f32 %v5685_v21, %v1004_v7  ;;  %v1013_v10 = vsub.f32 %v971_v31, %v1001_v8  ;;  %6223 = vmatprep.subr.msk.bf16.mxu0 %vm206_vm0, %v1157_v4 }
 0x520   : > { %6315 = vpow2.f32 %v1024_v6 }
 0x521   : > { %v6851_v11 = vpop.eup %6307  ;;  %v1028_v13 = vmul.f32 1.442695, %v1014_v9  ;;  %v1026_v15 = vmul.f32 1.442695, %v1013_v10 }
 0x522   : > { %v1007_v12 = vpop.xlane.xlu0 %1006  ;;  %v1032_v16 = vsel %vm983_vm3, %v6851_v11, 0.0 }
 0x523   : > { %v6855_v17 = vpop.eup %6309  ;;  %6317 = vpow2.f32 %v1028_v13  ;;  %v1015_v14 = vsub.f32 %v5686_v27, %v1007_v12  ;;  %1033 = vadd.xlane.f32.xlu1 %v1032_v16 }
 0x524   : > { %6319 = vpow2.f32 %v1026_v15  ;;  %v1035_v18 = vsel %vm983_vm3, %v6855_v17, 0.0 }
 0x525   : > { %v6859_v21 = vpop.eup %6311  ;;  %v1030_v23 = vmul.f32 1.442695, %v1015_v14  ;;  %1036 = vadd.xlane.f32.xlu0 %v1035_v18 }
 0x526   : > { %v1038_v28 = vsel %vm983_vm3, %v6859_v21, 0.0 }
 0x527   : > { %6321 = vpow2.f32 %v1030_v23  ;;  %1039 = vadd.xlane.f32.xlu1 %v1038_v28 }
 0x529   : > { %v6863_v30 = vpop.eup %6313 }
 0x52a   : > { %v6865_v31 = vpop.eup %6315  ;;  %v1041_v27 = vsel %vm983_vm3, %v6863_v30, 0.0 }
 0x52b   : > { %v1044_v32 = vsel %vm983_vm3, %v6865_v31, 0.0  ;;  %1042 = vadd.xlane.f32.xlu0 %v1041_v27 }
 0x52c   : > { %1045 = vadd.xlane.f32.xlu1 %v1044_v32 }
 0x52d   : > { %v6871_v33 = vpop.eup %6317 }
 0x52e   : > { %v6873_v35 = vpop.eup %6319  ;;  %v1050_v48 = vsel %vm983_vm3, %v6871_v33, 0.0 }
 0x52f   : > { %v1047_v49 = vsel %vm983_vm3, %v6873_v35, 0.0 }
 0x530   : > { %1051 = vadd.xlane.f32.xlu1 %v1050_v48  ;;  %1048 = vadd.xlane.f32.xlu0 %v1047_v49 }
 0x531   : > { %v6879_v52 = vpop.eup %6321 }
 0x532   : > { %v1053_v53 = vsel %vm983_vm3, %v6879_v52, 0.0 }
 0x534   : > { %1054 = vadd.xlane.f32.xlu0 %v1053_v53 }
 0x541   : > { %1645 = vrot.lane.b32.xlu1 %v6734_v19, %s6580_s7 }
 0x545   : > { %1649 = vrot.lane.b32.xlu1 %v6758_v42, %s6580_s7 }
 0x549   : > { %1651 = vrot.lane.b32.xlu1 %v6769_v50, %s6580_s7 }
 0x54a   : > { %1647 = vrot.lane.b32.xlu0 %v6751_v29, %s6580_s7 }
 0x54d   : > { %1639 = vrot.lane.b32.xlu1 %v6778_v56, %s6580_s7 }
 0x54e   : > { %1637 = vrot.lane.b32.xlu0 %v6736_v20, %s6580_s7 }
 0x551   : > { %1643 = vrot.lane.b32.xlu1 %v6794_v60, %s6580_s7 }
 0x552   : > { %1641 = vrot.lane.b32.xlu0 %v6771_v51, %s6580_s7 }
 0x571   : > { %1360 = vmax.xlane.f32.xlu0 %v1359_v54  ;;  %v1171_v54 = vsel %vm206_vm0, %v1157_v4, 0 }
 0x575   : > { %1363 = vmax.xlane.f32.xlu1 %v1362_v55  ;;  %1366 = vmax.xlane.f32.xlu0 %v1365_v58 }
 0x579   : > { %1372 = vmax.xlane.f32.xlu1 %v1371_v62  ;;  %1369 = vmax.xlane.f32.xlu0 %v1368_v0 }
 0x57d   : > { %1378 = vmax.xlane.f32.xlu1 %v1377_v1  ;;  %1375 = vmax.xlane.f32.xlu0 %v1374_v2 }
 0x581   : > { %1381 = vmax.xlane.f32.xlu0 %v1380_v3 }
 0x58e   : > { %1455 = vrot.lane.b32.xlu1 %v6780_v57, %s6579_s4 }
 0x5b0   : > { %v1034_v5 = vpop.xlane.xlu1 %1033 }
 0x5b1   : > { %6323 = vrcp.f32 %v1034_v5 }
 0x5b2   : > { %v1037_v6 = vpop.xlane.xlu0 %1036 }
 0x5b3   : > { %6325 = vrcp.f32 %v1037_v6 }
 0x5b4   : > { %v1040_v7 = vpop.xlane.xlu1 %1039 }
 0x5b5   : > { %6327 = vrcp.f32 %v1040_v7 }
 0x5b8   : > { %v1043_v8 = vpop.xlane.xlu0 %1042 }
 0x5b9   : > { %v1046_v9 = vpop.xlane.xlu1 %1045  ;;  %6329 = vrcp.f32 %v1043_v8 }
 0x5ba   : > { %6331 = vrcp.f32 %v1046_v9 }
 0x5bb   : > { %v6324_v10 = vpop.eup %6323 }
 0x5bc   : > { %v1064_v16 = vmul.f32 %v6324_v10, %v6851_v11 }
 0x5bd   : > { %v6326_v13 = vpop.eup %6325  ;;  %v1052_v15 = vpop.xlane.xlu1 %1051 }
 0x5be   : > { %v1049_v12 = vpop.xlane.xlu0 %1048  ;;  %v1065_v14 = vmul.f32 %v6326_v13, %v6855_v17 }
 0x5bf   : > { %6333 = vrcp.f32 %v1049_v12  ;;  %v6328_v23 = vpop.eup %6327 }
 0x5c0   : > { %6335 = vrcp.f32 %v1052_v15  ;;  %v1072_v18 = vpack.c.bf16 %v1065_v14, %v1064_v16  ;;  %v1066_v49 = vmul.f32 %v6328_v23, %v6859_v21 }
 0x5c1   : > { %v1646_v28 = vpop.permute.xlu1 %1645 }
 0x5c2   : > { %v1055_v27 = vpop.xlane.xlu0 %1054  ;;  %6229 = vmatprep.subr.msk.bf16.mxu1 %vm193_vm1, %v1646_v28  ;;  %5695 = vmatprep.mubr.msk.bf16.mxu0 %vm983_vm3, %v1072_v18  ;;  %v1666_v32 = vsel %vm193_vm1, %v1646_v28, 0 }
 0x5c3   : > { %6337 = vrcp.f32 %v1055_v27  ;;  %v6330_v48 = vpop.eup %6329  ;;  %5756 = vmatpush3.bf16.xpose.msra.mxu1 %v1666_v32 }
 0x5c4   : > { %v1067_v11 = vmul.f32 %v6330_v48, %v6863_v30  ;;  %v6332_v55 = vpop.eup %6331 }
 0x5c5   : > { %v1068_v21 = vmul.f32 %v6332_v55, %v6865_v31  ;;  %v1650_v2 = vpop.permute.xlu1 %1649 }
 0x5c6   : > { %v1648_v17 = vpop.permute.xlu0 %1647  ;;  %v1073_v53 = vpack.c.bf16 %v1067_v11, %v1066_v49  ;;  %v1672_v8 = vsel %vm193_vm1, %v1650_v2, 0 }
 0x5c7   : > { %6230 = vmatprep.subr.msk.bf16.mxu1 %vm193_vm1, %v1648_v17  ;;  %v1669_v1 = vsel %vm193_vm1, %v1648_v17, 0 }
 0x5c8   : > { %5696 = vmatmul.mubr.msk.bf16.vlgmr.msra.gmra.mrb[28].mxu0 %vm983_vm3, %v1073_v53 }
 0x5c9   : > { %v6334_v58 = vpop.eup %6333  ;;  %5704 = vmatpush3.bf16.msra.mxu0 %v1171_v54  ;;  %v1652_v31 = vpop.permute.xlu1 %1651 }
 0x5ca   : > { %v1638_v62 = vpop.permute.xlu0 %1637  ;;  %v6336_v0 = vpop.eup %6335  ;;  %v1069_v30 = vmul.f32 %v6334_v58, %v6873_v35  ;;  %v1675_v35 = vsel %vm193_vm1, %v1652_v31, 0 }
 0x5cb   : > { %5763 = vmatprep.mubr.msk.bf16.mxu1 %vm193_vm1, %v1638_v62  ;;  %5758 = vmatpush3.bf16.xpose.msra.mxu1 %v1669_v1  ;;  %v1070_v5 = vmul.f32 %v6336_v0, %v6871_v33 }
 0x5cc   : > { %6231 = vmatprep.subr.msk.bf16.mxu1 %vm193_vm1, %v1650_v2  ;;  %v1074_v4 = vpack.c.bf16 %v1069_v30, %v1068_v21 }
 0x5cd   : > { %v6338_v3 = vpop.eup %6337  ;;  %v1640_v9 = vpop.permute.xlu1 %1639 }
 0x5ce   : > { %v1071_v6 = vmul.f32 %v6338_v3, %v6879_v52  ;;  %5699 = vmatprep.mubr.msk.bf16.mxu0 %vm983_vm3, %v1074_v4  ;;  %v1642_v10 = vpop.permute.xlu0 %1641 }
 0x5d0   : > { %v1075_v7 = vpack.c.bf16 %v1071_v6, %v1070_v5 }
 0x5d1   : > { %v1644_v33 = vpop.permute.xlu1 %1643 }
 0x5d2   : > { %5700 = vmatmul.mubr.msk.bf16.gmra.mrb[32].mxu0 %vm983_vm3, %v1075_v7 }
 0x5d3   : > { %5760 = vmatpush3.bf16.xpose.msra.mxu1 %v1672_v8 }
 0x5d4   : > { %6232 = vmatprep.subr.msk.bf16.mxu1 %vm193_vm1, %v1652_v31 }
 0x5db   : > { %5762 = vmatpush3.bf16.xpose.msra.mxu1 %v1675_v35 }
 0x5e2   : > { %5764 = vmatmul.mubr.msk.bf16.vlgmr.msra.gmra.mrb[44].mxu1 %vm193_vm1, %v1640_v9 }
 0x5e3   : > { %5767 = vmatprep.mubr.msk.bf16.mxu1 %vm193_vm1, %v1642_v10 }
 0x5ea   : > { %5768 = vmatmul.mubr.msk.bf16.gmra.mrb[48].mxu1 %vm193_vm1, %v1644_v33 }
 0x5fe   : > { %v1361_v52 = vpop.xlane.xlu0 %1360 }
 0x5ff   : > { %v1383_v13 = vsub.f32 %v6837_v40, %v1361_v52 }
 0x601   : > { %v1391_v18 = vmul.f32 1.442695, %v1383_v13 }
 0x602   : > { %v1364_v15 = vpop.xlane.xlu1 %1363  ;;  %v1367_v12 = vpop.xlane.xlu0 %1366 }
 0x603   : > { %v1385_v16 = vsub.f32 %v6835_v39, %v1367_v12  ;;  %v1384_v23 = vsub.f32 %v6841_v43, %v1364_v15 }
 0x605   : > { %v1395_v14 = vmul.f32 1.442695, %v1385_v16  ;;  %v1393_v49 = vmul.f32 1.442695, %v1384_v23 }
 0x606   : > { %v1373_v28 = vpop.xlane.xlu1 %1372  ;;  %v1370_v27 = vpop.xlane.xlu0 %1369 }
 0x607   : > { %v1386_v32 = vsub.f32 %v6839_v41, %v1370_v27  ;;  %6339 = vpow2.f32 %v1395_v14  ;;  %v1387_v11 = vsub.f32 %v6845_v45, %v1373_v28 }
 0x608   : > { %6341 = vpow2.f32 %v1391_v18 }
 0x609   : > { %v1397_v48 = vmul.f32 1.442695, %v1386_v32  ;;  %v1399_v54 = vmul.f32 1.442695, %v1387_v11 }
 0x60a   : > { %v1379_v17 = vpop.xlane.xlu1 %1378  ;;  %v1376_v40 = vpop.xlane.xlu0 %1375 }
 0x60b   : > { %v1389_v53 = vsub.f32 %v6843_v44, %v1379_v17  ;;  %6343 = vpow2.f32 %v1397_v48  ;;  %v1388_v43 = vsub.f32 %v6849_v47, %v1376_v40 }
 0x60c   : > { %6345 = vpow2.f32 %v1393_v49 }
 0x60d   : > { %v1403_v39 = vmul.f32 1.442695, %v1389_v53  ;;  %v1401_v45 = vmul.f32 1.442695, %v1388_v43 }
 0x60e   : > { %v1456_v55 = vpop.permute.xlu1 %1455  ;;  %v1382_v58 = vpop.xlane.xlu0 %1381 }
 0x60f   : > { %6347 = vpow2.f32 %v1403_v39  ;;  %v1390_v41 = vsub.f32 %v6847_v46, %v1382_v58  ;;  %5729 = vmatprep.subr.bf16.mxu0 %v1456_v55 }
 0x610   : > { %6349 = vpow2.f32 %v1399_v54 }
 0x611   : > { %v1405_v62 = vmul.f32 1.442695, %v1390_v41  ;;  %v6954_v0 = vpop.eup %6339 }
 0x612   : > { %v1413_v44 = vsel %vm983_vm3, %v6954_v0, 0.0  ;;  %v6958_v1 = vpop.eup %6341 }
 0x613   : > { %6351 = vpow2.f32 %v1405_v62  ;;  %1414 = vadd.xlane.f32.xlu1 %v1413_v44  ;;  %v1407_v47 = vsel %vm983_vm3, %v6958_v1, 0.0 }
 0x614   : > { %6353 = vpow2.f32 %v1401_v45 }
 0x615   : > { %v6960_v21 = vpop.eup %6343 }
 0x616   : > { %v1416_v46 = vsel %vm983_vm3, %v6960_v21, 0.0  ;;  %v6966_v30 = vpop.eup %6345 }
 0x617   : > { %1408 = vadd.xlane.f32.xlu1 %v1407_v47  ;;  %1417 = vadd.xlane.f32.xlu0 %v1416_v46  ;;  %v1410_v4 = vsel %vm983_vm3, %v6966_v30, 0.0 }
 0x619   : > { %v6968_v2 = vpop.eup %6347 }
 0x61a   : > { %v1425_v3 = vsel %vm983_vm3, %v6968_v2, 0.0  ;;  %v6974_v5 = vpop.eup %6349 }
 0x61b   : > { %1426 = vadd.xlane.f32.xlu1 %v1425_v3  ;;  %1411 = vadd.xlane.f32.xlu0 %v1410_v4  ;;  %v1419_v8 = vsel %vm983_vm3, %v6974_v5, 0.0 }
 0x61d   : > { %v6976_v6 = vpop.eup %6351 }
 0x61e   : > { %v1428_v7 = vsel %vm983_vm3, %v6976_v6, 0.0  ;;  %v6982_v31 = vpop.eup %6353 }
 0x61f   : > { %1420 = vadd.xlane.f32.xlu1 %v1419_v8  ;;  %1429 = vadd.xlane.f32.xlu0 %v1428_v7  ;;  %v1422_v35 = vsel %vm983_vm3, %v6982_v31, 0.0 }
 0x623   : > { %1423 = vadd.xlane.f32.xlu0 %v1422_v35 }
 0x630   : > { %1459 = vrot.lane.b32.xlu1 %v6799_v61, %s6579_s4 }
 0x634   : > { %1461 = vrot.lane.b32.xlu1 %v6805_v63, %s6579_s4 }
 0x638   : > { %2026 = vrot.lane.b32.xlu1 %v6751_v29, %s6581_s10 }
 0x639   : > { %1457 = vrot.lane.b32.xlu0 %v6789_v59, %s6579_s4 }
 0x63c   : > { %2030 = vrot.lane.b32.xlu1 %v6769_v50, %s6581_s10 }
 0x63d   : > { %2024 = vrot.lane.b32.xlu0 %v6734_v19, %s6581_s10 }
 0x640   : > { %2018 = vrot.lane.b32.xlu1 %v6778_v56, %s6581_s10 }
 0x641   : > { %2028 = vrot.lane.b32.xlu0 %v6758_v42, %s6581_s10 }
 0x644   : > { %2022 = vrot.lane.b32.xlu1 %v6794_v60, %s6581_s10 }
 0x645   : > { %2016 = vrot.lane.b32.xlu0 %v6736_v20, %s6581_s10 }
 0x649   : > { %2020 = vrot.lane.b32.xlu0 %v6771_v51, %s6581_s10 }
 0x69b   : > { %v5697_v29 = vpop.f32.mrb[28].mxu0 }
 0x69c   : > { %v1122_v50 = vpop.f32.mrb[29].mxu0 }
 0x69d   : > { %v5698_v9 = vpop.f32.mrb[30].mxu0 }
 0x69e   : > { %v1154_v10 = vpack.c.bf16 %v5698_v9, %v5697_v29  ;;  %v1125_v19 = vpop.f32.mrb[31].mxu0 }
 0x69f   : > { %v1153_v33 = vpack.c.bf16 %v1125_v19, %v1122_v50 }
 0x6a0   : > { %v1415_v52 = vpop.xlane.xlu1 %1414 }
 0x6a1   : > { %5705 = vmatprep.mubr.msk.bf16.mxu0 %vm193_vm1, %v1153_v33 }
 0x6a2   : > { %5706 = vmatmul.mubr.msk.bf16.vlgmr.msra.gmra.mrb[20].mxu0 %vm193_vm1, %v1154_v10 }
 0x6a3   : > { %5730 = vmatpush3.bf16.msra.mxu0 %v1456_v55 }
 0x6a4   : > { %v1409_v56 = vpop.xlane.xlu1 %1408  ;;  %v1418_v60 = vpop.xlane.xlu0 %1417 }
 0x6a5   : > { %v5701_v42 = vpop.f32.mrb[32].mxu0  ;;  %6355 = vrcp.f32 %v1409_v56 }
 0x6a6   : > { %v1138_v13 = vpop.f32.mrb[33].mxu0 }
 0x6a7   : > { %v5702_v20 = vpop.f32.mrb[34].mxu0 }
 0x6a8   : > { %v1156_v15 = vpack.c.bf16 %v5702_v20, %v5701_v42  ;;  %v1141_v12 = vpop.f32.mrb[35].mxu0  ;;  %v1427_v16 = vpop.xlane.xlu1 %1426 }
 0x6a9   : > { %v1155_v51 = vpack.c.bf16 %v1141_v12, %v1138_v13  ;;  %v1412_v14 = vpop.xlane.xlu0 %1411 }
 0x6aa   : > { %6357 = vrcp.f32 %v1412_v14 }
 0x6ab   : > { %5709 = vmatprep.mubr.msk.bf16.mxu0 %vm193_vm1, %v1155_v51  ;;  %6359 = vrcp.f32 %v1418_v60 }
 0x6ac   : > { %5710 = vmatmul.mubr.msk.bf16.gmra.mrb[24].mxu0 %vm193_vm1, %v1156_v15  ;;  %v1421_v18 = vpop.xlane.xlu1 %1420  ;;  %6361 = vrcp.f32 %v1415_v52 }
 0x6ad   : > { %v1430_v23 = vpop.xlane.xlu0 %1429 }
 0x6af   : > { %v6356_v32 = vpop.eup %6355 }
 0x6b0   : > { %v1460_v28 = vpop.permute.xlu1 %1459  ;;  %v1439_v40 = vmul.f32 %v6356_v32, %v6958_v1 }
 0x6b1   : > { %v1424_v27 = vpop.xlane.xlu0 %1423 }
 0x6b2   : > { %6363 = vrcp.f32 %v1424_v27 }
 0x6b3   : > { %6365 = vrcp.f32 %v1421_v18 }
 0x6b4   : > { %v6358_v48 = vpop.eup %6357  ;;  %v1462_v11 = vpop.permute.xlu1 %1461  ;;  %6367 = vrcp.f32 %v1430_v23 }
 0x6b5   : > { %v1458_v49 = vpop.permute.xlu0 %1457  ;;  %v7012_v17 = vpop.f32.mrb[44].mxu1  ;;  %v1440_v53 = vmul.f32 %v6358_v48, %v6966_v30  ;;  %6369 = vrcp.f32 %v1427_v16 }
 0x6b6   : > { %5731 = vmatprep.subr.bf16.mxu0 %v1458_v49  ;;  %v7016_v39 = vpop.f32.mrb[45].mxu1  ;;  %v6360_v41 = vpop.eup %6359  ;;  %v1748_v4 = vsel %vm983_vm3, %v7012_v17, -inf }
 0x6b7   : > { %5732 = vmatpush3.bf16.msra.mxu0 %v1458_v49  ;;  %v7018_v54 = vpop.f32.mrb[46].mxu1  ;;  %v1742_v43 = vsel %vm983_vm3, %v7016_v39, -inf  ;;  %v1447_v55 = vpack.c.bf16 %v1440_v53, %v1439_v40  ;;  %v6362_v44 = vpop.eup %6361  ;;  %v1442_v3 = vmul.f32 %v6360_v41, %v6960_v21 }
 0x6b8   : > { %5733 = vmatprep.subr.bf16.mxu0 %v1460_v28  ;;  %v7022_v58 = vpop.f32.mrb[47].mxu1  ;;  %1743 = vmax.xlane.f32.xlu0 %v1742_v43  ;;  %v2027_v46 = vpop.permute.xlu1 %2026  ;;  %v1441_v50 = vmul.f32 %v6362_v44, %v6954_v0  ;;  %v1751_v52 = vsel %vm983_vm3, %v7018_v54, -inf }
 0x6b9   : > { %5737 = vmatprep.mubr.msk.bf16.mxu0 %vm983_vm3, %v1447_v55  ;;  %v2025_v62 = vpop.permute.xlu0 %2024  ;;  %v1745_v45 = vsel %vm983_vm3, %v7022_v58, -inf  ;;  %v2048_v0 = vsel %vm193_vm1, %v2027_v46, 0 }
 0x6ba   : > { %6234 = vmatprep.subr.msk.bf16.mxu1 %vm193_vm1, %v2025_v62  ;;  %1746 = vmax.xlane.f32.xlu1 %v1745_v45  ;;  %v2045_v1 = vsel %vm193_vm1, %v2025_v62, 0  ;;  %v1448_v33 = vpack.c.bf16 %v1442_v3, %v1441_v50 }
 0x6bb   : > { %5734 = vmatpush3.bf16.msra.mxu0 %v1460_v28  ;;  %5798 = vmatpush3.bf16.xpose.msra.mxu1 %v2045_v1 }
 0x6bc   : > { %v6364_v47 = vpop.eup %6363  ;;  %5735 = vmatprep.subr.bf16.mxu0 %v1462_v11  ;;  %6235 = vmatprep.subr.msk.bf16.mxu1 %vm193_vm1, %v2027_v46  ;;  %v2031_v14 = vpop.permute.xlu1 %2030 }
 0x6bd   : > { %v6366_v30 = vpop.eup %6365  ;;  %v7033_v7 = vpop.f32.mrb[48].mxu1  ;;  %1749 = vmax.xlane.f32.xlu0 %v1748_v4  ;;  %v1444_v29 = vmul.f32 %v6364_v47, %v6982_v31  ;;  %v2054_v18 = vsel %vm193_vm1, %v2031_v14, 0 }
 0x6be   : > { %v2029_v8 = vpop.permute.xlu0 %2028  ;;  %v7035_v35 = vpop.f32.mrb[49].mxu1  ;;  %v1443_v19 = vmul.f32 %v6366_v30, %v6974_v5  ;;  %v1760_v5 = vsel %vm983_vm3, %v7033_v7, -inf }
 0x6bf   : > { %v7039_v9 = vpop.f32.mrb[50].mxu1  ;;  %v1754_v21 = vsel %vm983_vm3, %v7035_v35, -inf  ;;  %5736 = vmatpush3.bf16.msra.mxu0 %v1462_v11  ;;  %v6368_v42 = vpop.eup %6367  ;;  %v2051_v16 = vsel %vm193_vm1, %v2029_v8, 0 }
 0x6c0   : > { %v7043_v10 = vpop.f32.mrb[51].mxu1  ;;  %1755 = vmax.xlane.f32.xlu1 %v1754_v21  ;;  %v1449_v56 = vpack.c.bf16 %v1444_v29, %v1443_v19  ;;  %v6370_v60 = vpop.eup %6369  ;;  %v1446_v20 = vmul.f32 %v6368_v42, %v6976_v6  ;;  %v1763_v12 = vsel %vm983_vm3, %v7039_v9, -inf }
 0x6c1   : > { %1752 = vmax.xlane.f32.xlu0 %v1751_v52  ;;  %v1757_v13 = vsel %vm983_vm3, %v7043_v10, -inf  ;;  %v1445_v15 = vmul.f32 %v6370_v60, %v6968_v2  ;;  %v1548_v2 = vld [vmem:[%s7971_s1 + $0x68] sm:$0xf]  ;;  %v2019_v23 = vpop.permute.xlu1 %2018 }
 0x6c2   : > { %v2017_v31 = vpop.permute.xlu0 %2016  ;;  %5738 = vmatmul.mubr.msk.bf16.vlgmr.msra.gmra.mrb[36].mxu0 %vm983_vm3, %v1448_v33  ;;  %6228 = vmatprep.subr.msk.bf16.mxu0 %vm206_vm0, %v1548_v2  ;;  %v1562_v6 = vsel %vm206_vm0, %v1548_v2, 0 }
 0x6c3   : > { %5805 = vmatprep.mubr.msk.bf16.mxu1 %vm193_vm1, %v2017_v31  ;;  %5741 = vmatprep.mubr.msk.bf16.mxu0 %vm983_vm3, %v1449_v56  ;;  %v1450_v51 = vpack.c.bf16 %v1446_v20, %v1445_v15 }
 0x6c4   : > { %5800 = vmatpush3.bf16.xpose.msra.mxu1 %v2048_v0  ;;  %1761 = vmax.xlane.f32.xlu1 %v1760_v5 }
 0x6c5   : > { %6236 = vmatprep.subr.msk.bf16.mxu1 %vm193_vm1, %v2029_v8  ;;  %1758 = vmax.xlane.f32.xlu0 %v1757_v13  ;;  %v2023_v27 = vpop.permute.xlu1 %2022 }
 0x6c6   : > { %5746 = vmatpush3.bf16.msra.mxu0 %v1562_v6  ;;  %v2021_v28 = vpop.permute.xlu0 %2020 }
 0x6c9   : > { %1764 = vmax.xlane.f32.xlu0 %v1763_v12 }
 0x6ca   : > { %5742 = vmatmul.mubr.msk.bf16.gmra.mrb[40].mxu0 %vm983_vm3, %v1450_v51 }
 0x6cc   : > { %5802 = vmatpush3.bf16.xpose.msra.mxu1 %v2051_v16 }
 0x6cd   : > { %6237 = vmatprep.subr.msk.bf16.mxu1 %vm193_vm1, %v2031_v14 }
 0x6d4   : > { %5804 = vmatpush3.bf16.xpose.msra.mxu1 %v2054_v18 }
 0x6d5   : > { %1834 = vrot.lane.b32.xlu1 %v6780_v57, %s6580_s7 }
 0x6db   : > { %5806 = vmatmul.mubr.msk.bf16.vlgmr.msra.gmra.mrb[52].mxu1 %vm193_vm1, %v2019_v23 }
 0x6dc   : > { %5809 = vmatprep.mubr.msk.bf16.mxu1 %vm193_vm1, %v2021_v28 }
 0x6e3   : > { %5810 = vmatmul.mubr.msk.bf16.gmra.mrb[56].mxu1 %vm193_vm1, %v2023_v27 }
 0x745   : > { %v1744_v32 = vpop.xlane.xlu0 %1743 }
 0x746   : > { %v1766_v49 = vsub.f32 %v7016_v39, %v1744_v32 }
 0x747   : > { %v1747_v48 = vpop.xlane.xlu1 %1746 }
 0x748   : > { %v1774_v53 = vmul.f32 1.442695, %v1766_v49  ;;  %v1767_v43 = vsub.f32 %v7022_v58, %v1747_v48 }
 0x74a   : > { %v1750_v11 = vpop.xlane.xlu0 %1749  ;;  %v1776_v45 = vmul.f32 1.442695, %v1767_v43 }
 0x74b   : > { %v1768_v57 = vsub.f32 %v7012_v17, %v1750_v11 }
 0x74d   : > { %v1756_v40 = vpop.xlane.xlu1 %1755  ;;  %v1778_v55 = vmul.f32 1.442695, %v1768_v57 }
 0x74e   : > { %v1753_v41 = vpop.xlane.xlu0 %1752  ;;  %v1770_v44 = vsub.f32 %v7035_v35, %v1756_v40 }
 0x74f   : > { %6371 = vpow2.f32 %v1778_v55  ;;  %v1769_v62 = vsub.f32 %v7018_v54, %v1753_v41 }
 0x750   : > { %6373 = vpow2.f32 %v1774_v53  ;;  %v1782_v30 = vmul.f32 1.442695, %v1770_v44 }
 0x751   : > { %v1780_v1 = vmul.f32 1.442695, %v1769_v62  ;;  %v1762_v47 = vpop.xlane.xlu1 %1761 }
 0x752   : > { %v1772_v39 = vsub.f32 %v7033_v7, %v1762_v47  ;;  %v1759_v46 = vpop.xlane.xlu0 %1758  ;;  %v6564_v47 = vld [vmem:[#allocation2 + $0x48] sm:$0xff] }
 0x753   : > { %6375 = vpow2.f32 %v1780_v1  ;;  %v1771_v58 = vsub.f32 %v7043_v10, %v1759_v46  ;;  %v6563_v1 = vld [vmem:[#allocation2 + $0x40] sm:$0xff] }
 0x754   : > { %v1786_v17 = vmul.f32 1.442695, %v1772_v39  ;;  %6377 = vpow2.f32 %v1776_v45 }
 0x755   : > { %v1835_v3 = vpop.permute.xlu1 %1834  ;;  %v1784_v35 = vmul.f32 1.442695, %v1771_v58 }
 0x756   : > { %6379 = vpow2.f32 %v1786_v17  ;;  %v1765_v4 = vpop.xlane.xlu0 %1764  ;;  %5771 = vmatprep.subr.bf16.mxu0 %v1835_v3 }
 0x757   : > { %v1773_v54 = vsub.f32 %v7039_v9, %v1765_v4  ;;  %6381 = vpow2.f32 %v1782_v30 }
 0x759   : > { %v7083_v8 = vpop.eup %6371  ;;  %v1788_v29 = vmul.f32 1.442695, %v1773_v54 }
 0x75a   : > { %v1796_v7 = vsel %vm983_vm3, %v7083_v8, 0.0  ;;  %v7087_v50 = vpop.eup %6373 }
 0x75b   : > { %6383 = vpow2.f32 %v1788_v29  ;;  %1797 = vadd.xlane.f32.xlu1 %v1796_v7  ;;  %v1790_v10 = vsel %vm983_vm3, %v7087_v50, 0.0 }
 0x75c   : > { %6385 = vpow2.f32 %v1784_v35 }
 0x75d   : > { %v7089_v21 = vpop.eup %6375 }
 0x75e   : > { %v1799_v9 = vsel %vm983_vm3, %v7089_v21, 0.0  ;;  %v7095_v19 = vpop.eup %6377 }
 0x75f   : > { %1791 = vadd.xlane.f32.xlu1 %v1790_v10  ;;  %1800 = vadd.xlane.f32.xlu0 %v1799_v9  ;;  %v1793_v42 = vsel %vm983_vm3, %v7095_v19, 0.0 }
 0x760   : > { %v7097_v33 = vpop.eup %6379 }
 0x761   : > { %v1808_v52 = vsel %vm983_vm3, %v7097_v33, 0.0  ;;  %v7103_v31 = vpop.eup %6381 }
 0x762   : > { %v1802_v0 = vsel %vm983_vm3, %v7103_v31, 0.0 }
 0x763   : > { %1809 = vadd.xlane.f32.xlu1 %v1808_v52  ;;  %1794 = vadd.xlane.f32.xlu0 %v1793_v42 }
 0x765   : > { %v7105_v56 = vpop.eup %6383 }
 0x766   : > { %v1811_v60 = vsel %vm983_vm3, %v7105_v56, 0.0  ;;  %v7111_v5 = vpop.eup %6385 }
 0x767   : > { %1803 = vadd.xlane.f32.xlu1 %v1802_v0  ;;  %1812 = vadd.xlane.f32.xlu0 %v1811_v60  ;;  %v1805_v13 = vsel %vm983_vm3, %v7111_v5, 0.0 }
 0x76b   : > { %1806 = vadd.xlane.f32.xlu0 %v1805_v13 }
 0x778   : > { %1838 = vrot.lane.b32.xlu1 %v6799_v61, %s6580_s7 }
 0x77c   : > { %1840 = vrot.lane.b32.xlu1 %v6805_v63, %s6580_s7 }
 0x781   : > { %1836 = vrot.lane.b32.xlu0 %v6789_v59, %s6580_s7 }
 0x795   : > { %v5739_v20 = vpop.f32.mrb[36].mxu0 }
 0x796   : > { %v1513_v15 = vpop.f32.mrb[37].mxu0 }
 0x797   : > { %v5740_v12 = vpop.f32.mrb[38].mxu0 }
 0x798   : > { %v1545_v51 = vpack.c.bf16 %v5740_v12, %v5739_v20  ;;  %v1516_v16 = vpop.f32.mrb[39].mxu0 }
 0x799   : > { %v1544_v14 = vpack.c.bf16 %v1516_v16, %v1513_v15 }
 0x79b   : > { %5747 = vmatprep.mubr.msk.bf16.mxu0 %vm193_vm1, %v1544_v14 }
 0x79c   : > { %5748 = vmatmul.mubr.msk.bf16.vlgmr.msra.gmra.mrb[20].mxu0 %vm193_vm1, %v1545_v51 }
 0x79d   : > { %5772 = vmatpush3.bf16.msra.mxu0 %v1835_v3  ;;  %v5743_v18 = vpop.f32.mrb[40].mxu0 }
 0x79e   : > { %v1529_v2 = vpop.f32.mrb[41].mxu0 }
 0x79f   : > { %v5744_v61 = vpop.f32.mrb[42].mxu0 }
 0x7a0   : > { %v1547_v6 = vpack.c.bf16 %v5744_v61, %v5743_v18  ;;  %v1532_v23 = vpop.f32.mrb[43].mxu0 }
 0x7a1   : > { %v1546_v63 = vpack.c.bf16 %v1532_v23, %v1529_v2 }
 0x7a3   : > { %5751 = vmatprep.mubr.msk.bf16.mxu0 %vm193_vm1, %v1546_v63 }
 0x7a4   : > { %5752 = vmatmul.mubr.msk.bf16.gmra.mrb[24].mxu0 %vm193_vm1, %v1547_v6 }
 0x7ae   : > { %v7125_v59 = vpop.f32.mrb[52].mxu1 }
 0x7af   : > { %v7127_v28 = vpop.f32.mrb[53].mxu1  ;;  %v2127_v11 = vsel %vm983_vm3, %v7125_v59, -inf }
 0x7b0   : > { %v7129_v27 = vpop.f32.mrb[54].mxu1  ;;  %v2121_v32 = vsel %vm983_vm3, %v7127_v28, -inf }
 0x7b1   : > { %v7133_v48 = vpop.f32.mrb[55].mxu1  ;;  %2122 = vmax.xlane.f32.xlu0 %v2121_v32  ;;  %v2130_v55 = vsel %vm983_vm3, %v7129_v27, -inf }
 0x7b2   : > { %v2124_v49 = vsel %vm983_vm3, %v7133_v48, -inf }
 0x7b3   : > { %2125 = vmax.xlane.f32.xlu1 %v2124_v49 }
 0x7b5   : > { %2128 = vmax.xlane.f32.xlu0 %v2127_v11 }
 0x7b6   : > { %v7139_v57 = vpop.f32.mrb[56].mxu1 }
 0x7b7   : > { %v7141_v40 = vpop.f32.mrb[57].mxu1  ;;  %v2139_v62 = vsel %vm983_vm3, %v7139_v57, -inf }
 0x7b8   : > { %v7143_v53 = vpop.f32.mrb[58].mxu1  ;;  %v2133_v43 = vsel %vm983_vm3, %v7141_v40, -inf }
 0x7b9   : > { %v7149_v41 = vpop.f32.mrb[59].mxu1  ;;  %2134 = vmax.xlane.f32.xlu1 %v2133_v43  ;;  %2131 = vmax.xlane.f32.xlu0 %v2130_v55  ;;  %v2142_v44 = vsel %vm983_vm3, %v7143_v53, -inf }
 0x7ba   : > { %v2136_v45 = vsel %vm983_vm3, %v7149_v41, -inf }
 0x7bd   : > { %2140 = vmax.xlane.f32.xlu1 %v2139_v62  ;;  %2137 = vmax.xlane.f32.xlu0 %v2136_v45 }
 0x7c1   : > { %2143 = vmax.xlane.f32.xlu0 %v2142_v44 }
 0x7ce   : > { %2213 = vrot.lane.b32.xlu1 %v6563_v1, %s6581_s10 }
 0x7d2   : > { %2215 = vrot.lane.b32.xlu1 %v6564_v47, %s6581_s10 }
 0x7e8   : > { %v1798_v39 = vpop.xlane.xlu1 %1797 }
 0x7ec   : > { %v1792_v46 = vpop.xlane.xlu1 %1791  ;;  %v1801_v17 = vpop.xlane.xlu0 %1800 }
 0x7ed   : > { %6387 = vrcp.f32 %v1792_v46 }
 0x7f0   : > { %v1810_v30 = vpop.xlane.xlu1 %1809  ;;  %v1795_v58 = vpop.xlane.xlu0 %1794 }
 0x7f1   : > { %6389 = vrcp.f32 %v1795_v58 }
 0x7f2   : > { %6391 = vrcp.f32 %v1801_v17 }
 0x7f3   : > { %6393 = vrcp.f32 %v1798_v39 }
 0x7f4   : > { %v1813_v3 = vpop.xlane.xlu0 %1812  ;;  %v1804_v4 = vpop.xlane.xlu1 %1803 }
 0x7f5   : > { %6395 = vrcp.f32 %v1804_v4 }
 0x7f7   : > { %v6388_v35 = vpop.eup %6387 }
 0x7f8   : > { %v1807_v54 = vpop.xlane.xlu0 %1806  ;;  %v1839_v7 = vpop.permute.xlu1 %1838  ;;  %v1822_v9 = vmul.f32 %v6388_v35, %v7087_v50 }
 0x7f9   : > { %6397 = vrcp.f32 %v1807_v54 }
 0x7fa   : > { %6399 = vrcp.f32 %v1813_v3 }
 0x7fb   : > { %v6390_v29 = vpop.eup %6389  ;;  %6401 = vrcp.f32 %v1810_v30 }
 0x7fc   : > { %v1837_v10 = vpop.permute.xlu0 %1836  ;;  %v1823_v52 = vmul.f32 %v6390_v29, %v7095_v19  ;;  %v6392_v0 = vpop.eup %6391  ;;  %v1927_v19 = vld [vmem:[%s7971_s1 + $0x6c] sm:$0xf] }
 0x7fd   : > { %5773 = vmatprep.subr.bf16.mxu0 %v1837_v10  ;;  %v6394_v60 = vpop.eup %6393  ;;  %v1841_v20 = vpop.permute.xlu1 %1840  ;;  %v1825_v12 = vmul.f32 %v6392_v0, %v7089_v21  ;;  %v1941_v18 = vsel %vm206_vm0, %v1927_v19, 0 }
 0x7fe   : > { %5774 = vmatpush3.bf16.msra.mxu0 %v1837_v10  ;;  %v1830_v42 = vpack.c.bf16 %v1823_v52, %v1822_v9  ;;  %v1824_v51 = vmul.f32 %v6394_v60, %v7083_v8 }
 0x7ff   : > { %5775 = vmatprep.subr.bf16.mxu0 %v1839_v7  ;;  %v6396_v13 = vpop.eup %6395 }
 0x800   : > { %5779 = vmatprep.mubr.msk.bf16.mxu0 %vm983_vm3, %v1830_v42  ;;  %v1826_v16 = vmul.f32 %v6396_v13, %v7103_v31  ;;  %v1831_v14 = vpack.c.bf16 %v1825_v12, %v1824_v51  ;;  %v6565_v13 = vld [vmem:[#allocation2 + $0x58] sm:$0xff] }
 0x802   : > { %5776 = vmatpush3.bf16.msra.mxu0 %v1839_v7 }
 0x803   : > { %v6398_v15 = vpop.eup %6397  ;;  %5777 = vmatprep.subr.bf16.mxu0 %v1841_v20 }
 0x804   : > { %v1827_v50 = vmul.f32 %v6398_v15, %v7111_v5  ;;  %v6400_v2 = vpop.eup %6399  ;;  %v6566_v15 = vld [vmem:[#allocation2 + $0x50] sm:$0xff] }
 0x805   : > { %v6402_v21 = vpop.eup %6401  ;;  %v1829_v5 = vmul.f32 %v6400_v2, %v7105_v56 }
 0x806   : > { %5778 = vmatpush3.bf16.msra.mxu0 %v1841_v20  ;;  %v1832_v61 = vpack.c.bf16 %v1827_v50, %v1826_v16  ;;  %v1828_v8 = vmul.f32 %v6402_v21, %v7097_v33 }
 0x807   : > { %6233 = vmatprep.subr.msk.bf16.mxu0 %vm206_vm0, %v1927_v19 }
 0x808   : > { %v1833_v6 = vpack.c.bf16 %v1829_v5, %v1828_v8 }
 0x809   : > { %5780 = vmatmul.mubr.msk.bf16.vlgmr.msra.gmra.mrb[44].mxu0 %vm983_vm3, %v1831_v14 }
 0x80a   : > { %5783 = vmatprep.mubr.msk.bf16.mxu0 %vm983_vm3, %v1832_v61  ;;  %5788 = vmatpush3.bf16.msra.mxu0 %v1941_v18 }
 0x811   : > { %5784 = vmatmul.mubr.msk.bf16.gmra.mrb[48].mxu0 %vm983_vm3, %v1833_v6 }
 0x83e   : > { %v2123_v31 = vpop.xlane.xlu0 %2122 }
 0x83f   : > { %v2145_v23 = vsub.f32 %v7127_v28, %v2123_v31 }
 0x840   : > { %v2126_v63 = vpop.xlane.xlu1 %2125 }
 0x841   : > { %v2153_v11 = vmul.f32 1.442695, %v2145_v23  ;;  %v2146_v55 = vsub.f32 %v7133_v48, %v2126_v63 }
 0x842   : > { %v2129_v32 = vpop.xlane.xlu0 %2128 }
 0x843   : > { %v2147_v49 = vsub.f32 %v7125_v59, %v2129_v32  ;;  %v2155_v44 = vmul.f32 1.442695, %v2146_v55 }
 0x845   : > { %v2157_v43 = vmul.f32 1.442695, %v2147_v49 }
 0x846   : > { %v2135_v62 = vpop.xlane.xlu1 %2134  ;;  %v2132_v45 = vpop.xlane.xlu0 %2131 }
 0x847   : > { %6403 = vpow2.f32 %v2157_v43  ;;  %v2148_v56 = vsub.f32 %v7129_v27, %v2132_v45  ;;  %v2149_v59 = vsub.f32 %v7141_v40, %v2135_v62 }
 0x848   : > { %6405 = vpow2.f32 %v2153_v11 }
 0x849   : > { %v2159_v33 = vmul.f32 1.442695, %v2148_v56  ;;  %v2161_v30 = vmul.f32 1.442695, %v2149_v59 }
 0x84a   : > { %v2141_v1 = vpop.xlane.xlu1 %2140  ;;  %v2138_v47 = vpop.xlane.xlu0 %2137 }
 0x84b   : > { %v2151_v28 = vsub.f32 %v7139_v57, %v2141_v1  ;;  %6407 = vpow2.f32 %v2159_v33  ;;  %v2150_v40 = vsub.f32 %v7149_v41, %v2138_v47 }
 0x84c   : > { %6409 = vpow2.f32 %v2155_v44 }
 0x84d   : > { %v2165_v39 = vmul.f32 1.442695, %v2151_v28  ;;  %v2163_v29 = vmul.f32 1.442695, %v2150_v40 }
 0x84e   : > { %v2214_v46 = vpop.permute.xlu1 %2213  ;;  %v2144_v17 = vpop.xlane.xlu0 %2143 }
 0x84f   : > { %5813 = vmatprep.subr.bf16.mxu0 %v2214_v46  ;;  %6411 = vpow2.f32 %v2165_v39  ;;  %v2152_v27 = vsub.f32 %v7143_v53, %v2144_v17 }
 0x850   : > { %6413 = vpow2.f32 %v2161_v30 }
 0x851   : > { %v7182_v48 = vpop.eup %6403  ;;  %v2167_v4 = vmul.f32 1.442695, %v2152_v27 }
 0x852   : > { %v2175_v58 = vsel %vm983_vm3, %v7182_v48, 0.0  ;;  %v7187_v3 = vpop.eup %6405  ;;  %v2216_v12 = vpop.permute.xlu1 %2215 }
 0x853   : > { %2176 = vadd.xlane.f32.xlu1 %v2175_v58  ;;  %v2169_v54 = vsel %vm983_vm3, %v7187_v3, 0.0  ;;  %6415 = vpow2.f32 %v2167_v4 }
 0x854   : > { %6417 = vpow2.f32 %v2163_v29 }
 0x855   : > { %v7189_v57 = vpop.eup %6407 }
 0x856   : > { %v2178_v35 = vsel %vm983_vm3, %v7189_v57, 0.0  ;;  %v6410_v53 = vpop.eup %6409 }
 0x857   : > { %2170 = vadd.xlane.f32.xlu1 %v2169_v54  ;;  %2179 = vadd.xlane.f32.xlu0 %v2178_v35  ;;  %v2172_v7 = vsel %vm983_vm3, %v6410_v53, 0.0 }
 0x859   : > { %v7197_v10 = vpop.eup %6411 }
 0x85a   : > { %v2187_v41 = vsel %vm983_vm3, %v7197_v10, 0.0  ;;  %v7201_v9 = vpop.eup %6413 }
 0x85b   : > { %2173 = vadd.xlane.f32.xlu0 %v2172_v7  ;;  %v2181_v52 = vsel %vm983_vm3, %v7201_v9, 0.0  ;;  %v6283_v7 = vld [vmem:[%s7971_s1 + $0x74] sm:$0xff]  }
 0x85c   : > { %5839 = vmatprep.subr.bf16.mxu1 %v6283_v7 }
 0x85d   : > { %v7205_v42 = vpop.eup %6415  ;;  %5840 = vmatpush3.bf16.msra.mxu1 %v6283_v7 }
 0x85e   : > { %v2190_v0 = vsel %vm983_vm3, %v7205_v42, 0.0  ;;  %v7209_v60 = vpop.eup %6417 }
 0x85f   : > { %2188 = vadd.xlane.f32.xlu0 %v2187_v41  ;;  %v2184_v20 = vsel %vm983_vm3, %v7209_v60, 0.0  ;;  %v6284_v41 = vld [vmem:[%s7971_s1 + $0x7c] sm:$0xff]  }
 0x860   : > { %5841 = vmatprep.subr.bf16.mxu1 %v6284_v41 }
 0x861   : > { %5842 = vmatpush3.bf16.msra.mxu1 %v6284_v41 }
 0x863   : > { %2182 = vadd.xlane.f32.xlu0 %v2181_v52 }
 0x867   : > { %2191 = vadd.xlane.f32.xlu0 %v2190_v0 }
 0x868   : > { %2219 = vrot.lane.b32.xlu1 %v6565_v13, %s6581_s10 }
 0x86b   : > { %2185 = vadd.xlane.f32.xlu0 %v2184_v20 }
 0x881   : > { %2217 = vrot.lane.b32.xlu0 %v6566_v15, %s6581_s10 }
 0x8dc   : > { %v5781_v50 = vpop.f32.mrb[44].mxu0 }
 0x8dd   : > { %v1892_v19 = vpop.f32.mrb[45].mxu0 }
 0x8de   : > { %v5782_v51 = vpop.f32.mrb[46].mxu0 }
 0x8df   : > { %v1924_v16 = vpack.c.bf16 %v5782_v51, %v5781_v50  ;;  %v1895_v14 = vpop.f32.mrb[47].mxu0  ;;  %v6285_v51 = vld [vmem:[%s7971_s1 + $0x84] sm:$0xff]  }
 0x8e0   : > { %v2177_v18 = vpop.xlane.xlu1 %2176  ;;  %v1923_v2 = vpack.c.bf16 %v1895_v14, %v1892_v19  ;;  %5843 = vmatprep.subr.bf16.mxu1 %v6285_v51  ;;  %v6287_v14 = vld [vmem:[%s7971_s1 + $0xa4] sm:$0xff]  }
 0x8e1   : > { %5844 = vmatpush3.bf16.msra.mxu1 %v6285_v51 }
 0x8e2   : > { %5789 = vmatprep.mubr.msk.bf16.mxu0 %vm193_vm1, %v1923_v2 }
 0x8e3   : > { %5790 = vmatmul.mubr.msk.bf16.vlgmr.msra.gmra.mrb[20].mxu0 %vm193_vm1, %v1924_v16  ;;  %v6286_v16 = vld [vmem:[%s7971_s1 + $0x8c] sm:$0xff]  }
 0x8e4   : > { %v2171_v61 = vpop.xlane.xlu1 %2170  ;;  %5814 = vmatpush3.bf16.msra.mxu0 %v2214_v46  ;;  %v2180_v21 = vpop.xlane.xlu0 %2179  ;;  %v2306_v46 = vld [vmem:[%s7971_s1 + $0x70] sm:$0xf]  ;;  %5845 = vmatprep.subr.bf16.mxu1 %v6286_v16 }
 0x8e5   : > { %v5785_v5 = vpop.f32.mrb[48].mxu0  ;;  %5815 = vmatprep.subr.bf16.mxu0 %v2216_v12  ;;  %6419 = vrcp.f32 %v2171_v61  ;;  %5846 = vmatpush3.bf16.msra.mxu1 %v6286_v16 }
 0x8e6   : > { %v1908_v8 = vpop.f32.mrb[49].mxu0  ;;  %5867 = vmatprep.subr.bf16.mxu1 %v6287_v14 }
 0x8e7   : > { %v5786_v6 = vpop.f32.mrb[50].mxu0 }
 0x8e8   : > { %v1926_v31 = vpack.c.bf16 %v5786_v6, %v5785_v5  ;;  %v1911_v23 = vpop.f32.mrb[51].mxu0  ;;  %5816 = vmatpush3.bf16.msra.mxu0 %v2216_v12  ;;  %v2174_v32 = vpop.xlane.xlu0 %2173 }
 0x8e9   : > { %v1925_v63 = vpack.c.bf16 %v1911_v23, %v1908_v8  ;;  %6421 = vrcp.f32 %v2174_v32  ;;  %v2220_v59 = vpop.permute.xlu1 %2219 }
 0x8ea   : > { %6423 = vrcp.f32 %v2180_v21 }
 0x8eb   : > { %5793 = vmatprep.mubr.msk.bf16.mxu0 %vm193_vm1, %v1925_v63  ;;  %6425 = vrcp.f32 %v2177_v18  ;;  %v5137_v18 = vld [vmem:[%s7972_s2 + $0x6] ss:$0 sm:$0xff] }
 0x8ec   : > { %5794 = vmatmul.mubr.msk.bf16.gmra.mrb[24].mxu0 %vm193_vm1, %v1926_v31  ;;  %v2189_v49 = vpop.xlane.xlu0 %2188 }
 0x8ef   : > { %v6420_v43 = vpop.eup %6419 }
 0x8f0   : > { %v2183_v11 = vpop.xlane.xlu0 %2182  ;;  %v2201_v45 = vmul.f32 %v6420_v43, %v7187_v3  ;;  %v2320_v3 = vsel %vm206_vm0, %v2306_v46, 0 }
 0x8f1   : > { %6427 = vrcp.f32 %v2183_v11 }
 0x8f3   : > { %v6422_v55 = vpop.eup %6421 }
 0x8f4   : > { %v2192_v62 = vpop.xlane.xlu0 %2191  ;;  %v2202_v56 = vmul.f32 %v6422_v55, %v6410_v53  ;;  %v6424_v1 = vpop.eup %6423 }
 0x8f5   : > { %v6426_v28 = vpop.eup %6425  ;;  %v2204_v39 = vmul.f32 %v6424_v1, %v7189_v57 }
 0x8f6   : > { %v2209_v33 = vpack.c.bf16 %v2202_v56, %v2201_v45  ;;  %v2203_v30 = vmul.f32 %v6426_v28, %v7182_v48 }
 0x8f8   : > { %5821 = vmatprep.mubr.msk.bf16.mxu0 %vm983_vm3, %v2209_v33  ;;  %v2186_v44 = vpop.xlane.xlu0 %2185  ;;  %v2210_v58 = vpack.c.bf16 %v2204_v39, %v2203_v30 }
 0x8f9   : > { %6429 = vrcp.f32 %v2186_v44 }
 0x8fa   : > { %6431 = vrcp.f32 %v2192_v62 }
 0x8fb   : > { %6433 = vrcp.f32 %v2189_v49  ;;  %v6428_v17 = vpop.eup %6427 }
 0x8fc   : > { %v2218_v47 = vpop.permute.xlu0 %2217  ;;  %v2205_v4 = vmul.f32 %v6428_v17, %v7201_v9 }
 0x8fd   : > { %5817 = vmatprep.subr.bf16.mxu0 %v2218_v47 }
 0x8fe   : > { %5818 = vmatpush3.bf16.msra.mxu0 %v2218_v47 }
 0x8ff   : > { %5819 = vmatprep.subr.bf16.mxu0 %v2220_v59 }
 0x902   : > { %5820 = vmatpush3.bf16.msra.mxu0 %v2220_v59 }
 0x903   : > { %v6430_v27 = vpop.eup %6429  ;;  %6238 = vmatprep.subr.msk.bf16.mxu0 %vm206_vm0, %v2306_v46 }
 0x904   : > { %v6432_v40 = vpop.eup %6431  ;;  %v2206_v57 = vmul.f32 %v6430_v27, %v7209_v60 }
 0x905   : > { %5822 = vmatmul.mubr.msk.bf16.vlgmr.msra.gmra.mrb[52].mxu0 %vm983_vm3, %v2210_v58  ;;  %v6434_v54 = vpop.eup %6433  ;;  %v2208_v53 = vmul.f32 %v6432_v40, %v7205_v42  ;;  %v6288_v58 = vld [vmem:[%s7971_s1 + $0x94] sm:$0xff]   ;;  %v6290_v40 = vld [vmem:[%s7971_s1 + $0x9c] sm:$0xff]  }
 0x906   : > { %v2211_v35 = vpack.c.bf16 %v2206_v57, %v2205_v4  ;;  %5830 = vmatpush3.bf16.msra.mxu0 %v2320_v3  ;;  %v2207_v48 = vmul.f32 %v6434_v54, %v7197_v10  ;;  %v6289_v3 = vld [vmem:[%s7971_s1 + $0xac] sm:$0xff]   ;;  %v6291_v4 = vld [vmem:[%s7971_s1 + $0xb4] sm:$0xff]   ;;  %v6292_v57 = vld [vmem:[%s7971_s1 + $0xc4] sm:$0xff]  }
 0x907   : > { %5855 = vmatprep.subr.bf16.mxu0 %v6288_v58  ;;  %v5192_v54 = vld [vmem:[%s7972_s2 + $0x7] ss:$0 sm:$0xff] }
 0x908   : > { %5825 = vmatprep.mubr.msk.bf16.mxu0 %vm983_vm3, %v2211_v35  ;;  %v2212_v29 = vpack.c.bf16 %v2208_v53, %v2207_v48 }
 0x90d   : > { %5826 = vmatmul.mubr.msk.bf16.gmra.mrb[56].mxu0 %vm983_vm3, %v2212_v29 }
 0x9d8   : > { %v5823_v9 = vpop.f32.mrb[52].mxu0 }
 0x9d9   : > { %v2271_v52 = vpop.f32.mrb[53].mxu0 }
 0x9da   : > { %v5824_v42 = vpop.f32.mrb[54].mxu0 }
 0x9db   : > { %v2303_v0 = vpack.c.bf16 %v5824_v42, %v5823_v9  ;;  %v2274_v10 = vpop.f32.mrb[55].mxu0 }
 0x9dc   : > { %v2302_v60 = vpack.c.bf16 %v2274_v10, %v2271_v52 }
 0x9de   : > { %5831 = vmatprep.mubr.msk.bf16.mxu0 %vm193_vm1, %v2302_v60 }
 0x9df   : > { %5832 = vmatmul.mubr.msk.bf16.vlgmr.msra.gmra.mrb[20].mxu0 %vm193_vm1, %v2303_v0 }
 0x9e0   : > { %v5827_v13 = vpop.f32.mrb[56].mxu0  ;;  %5856 = vmatpush3.bf16.msra.mxu0 %v6288_v58 }
 0x9e1   : > { %v2287_v20 = vpop.f32.mrb[57].mxu0  ;;  %5857 = vmatprep.subr.bf16.mxu0 %v6290_v40 }
 0x9e2   : > { %v5828_v15 = vpop.f32.mrb[58].mxu0 }
 0x9e3   : > { %v2305_v12 = vpack.c.bf16 %v5828_v15, %v5827_v13  ;;  %v2290_v50 = vpop.f32.mrb[59].mxu0 }
 0x9e4   : > { %v2304_v19 = vpack.c.bf16 %v2290_v50, %v2287_v20  ;;  %5858 = vmatpush3.bf16.msra.mxu0 %v6290_v40 }
 0x9e5   : > { %5879 = vmatprep.subr.bf16.mxu0 %v6291_v4 }
 0x9e6   : > { %5835 = vmatprep.mubr.msk.bf16.mxu0 %vm193_vm1, %v2304_v19 }
 0x9e7   : > { %5836 = vmatmul.mubr.msk.bf16.gmra.mrb[24].mxu0 %vm193_vm1, %v2305_v12 }
 0xab2   : > { %v5833_v2 = vpop.f32.mrb[20].mxu0 }
 0xab3   : > { %v6137_v61 = vadd.f32 %v5833_v2, %v5137_v18  ;;  %v2356_v21 = vpop.f32.mrb[21].mxu0 }
 0xab4   : > { %v6138_v5 = vadd.f32 %v5137_v18, %v2356_v21  ;;  %v5834_v8 = vpop.f32.mrb[22].mxu0 }
 0xab5   : > { %v6139_v6 = vadd.f32 %v5834_v8, %v5137_v18  ;;  %v2359_v31 = vpop.f32.mrb[23].mxu0  ;;  %v2397_v63 = vmax.f32 %v6137_v61, 0.0 }
 0xab6   : > { %v6140_v23 = vadd.f32 %v5137_v18, %v2359_v31  ;;  %v2395_v49 = vmax.f32 %v6138_v5, 0.0  ;;  %v5208_v5 = vld [vmem:[%s7972_s2 + $0x9] ss:$0 sm:$0xff] }
 0xab7   : > { %v2398_v32 = vmax.f32 %v6139_v6, 0.0 }
 0xab8   : > { %v2396_v11 = vmax.f32 %v6140_v23, 0.0 }
 0xab9   : > { %v2404_v43 = vpack.c.bf16 %v2398_v32, %v2397_v63 }
 0xaba   : > { %v2403_v55 = vpack.c.bf16 %v2396_v11, %v2395_v49  ;;  %v5837_v62 = vpop.f32.mrb[24].mxu0 }
 0xabb   : > { %v6141_v45 = vadd.f32 %v5837_v62, %v5137_v18  ;;  %v2372_v56 = vpop.f32.mrb[25].mxu0 }
 0xabc   : > { %v6142_v33 = vadd.f32 %v5137_v18, %v2372_v56  ;;  %v5838_v44 = vpop.f32.mrb[26].mxu0  ;;  %5847 = vmatprep.mubr.msk.bf16.mxu1 %vm983_vm3, %v2403_v55 }
 0xabd   : > { %v6143_v1 = vadd.f32 %v5838_v44, %v5137_v18  ;;  %v2375_v47 = vpop.f32.mrb[27].mxu0  ;;  %5848 = vmatmul.mubr.msk.bf16.vlgmr.msra.gmra.mrb[60].mxu1 %vm983_vm3, %v2404_v43  ;;  %v2401_v59 = vmax.f32 %v6141_v45, 0.0 }
 0xabe   : > { %v6144_v28 = vadd.f32 %v5137_v18, %v2375_v47  ;;  %5868 = vmatpush3.bf16.msra.mxu1 %v6287_v14  ;;  %v2399_v46 = vmax.f32 %v6142_v33, 0.0 }
 0xabf   : > { %v2402_v39 = vmax.f32 %v6143_v1, 0.0  ;;  %5869 = vmatprep.subr.bf16.mxu1 %v6289_v3 }
 0xac0   : > { %v2400_v17 = vmax.f32 %v6144_v28, 0.0 }
 0xac1   : > { %v2406_v30 = vpack.c.bf16 %v2402_v39, %v2401_v59 }
 0xac2   : > { %v2405_v27 = vpack.c.bf16 %v2400_v17, %v2399_v46  ;;  %5870 = vmatpush3.bf16.msra.mxu1 %v6289_v3 }
 0xac3   : > { %5891 = vmatprep.subr.bf16.mxu1 %v6292_v57 }
 0xac4   : > { %5851 = vmatprep.mubr.msk.bf16.mxu1 %vm983_vm3, %v2405_v27 }
 0xac5   : > { %5852 = vmatmul.mubr.msk.bf16.gmra.mrb[64].mxu1 %vm983_vm3, %v2406_v30 }
 0xb90   : > { %v5849_v35 = vpop.f32.mrb[60].mxu1 }
 0xb91   : > { %v2490_v53 = vpop.f32.mrb[61].mxu1  ;;  %v2499_v7 = vadd.f32 %v5849_v35, %v5192_v54 }
 0xb92   : > { %v2491_v48 = vadd.f32 %v5192_v54, %v2490_v53  ;;  %v5850_v29 = vpop.f32.mrb[62].mxu1 }
 0xb93   : > { %v2502_v41 = vadd.f32 %v5850_v29, %v5192_v54  ;;  %v2493_v9 = vpop.f32.mrb[63].mxu1  ;;  %v7289_v60 = vadd.f32 %v2499_v7, %v6682_v26 }
 0xb94   : > { %v2494_v52 = vadd.f32 %v5192_v54, %v2493_v9  ;;  %v7283_v0 = vadd.f32 %v2491_v48, %v6678_v24  ;;  %v6294_v24 = vld [vmem:[%s7971_s1 + $0xcc] sm:$0xff]  }
 0xb95   : > { %v7280_v42 = vadd.f32 %v2502_v41, %v6676_v22  ;;  %v6293_v22 = vld [vmem:[%s7971_s1 + $0xbc] sm:$0xff]  }
 0xb96   : > { %v7286_v10 = vadd.f32 %v2494_v52, %v6680_v25 }
 0xb97   : > { %v2530_v15 = vpack.c.bf16 %v7280_v42, %v7289_v60 }
 0xb98   : > { %v2529_v13 = vpack.c.bf16 %v7286_v10, %v7283_v0  ;;  %v5853_v20 = vpop.f32.mrb[64].mxu1 }
 0xb99   : > { %v2506_v12 = vpop.f32.mrb[65].mxu1  ;;  %v2515_v26 = vadd.f32 %v5853_v20, %v5192_v54 }
 0xb9a   : > { %v2507_v25 = vadd.f32 %v5192_v54, %v2506_v12  ;;  %v5854_v50 = vpop.f32.mrb[66].mxu1  ;;  %5859 = vmatprep.mubr.msk.bf16.mxu0 %vm308_vm2, %v2529_v13  ;;  %5871 = vmatprep.mubr.msk.bf16.mxu1 %vm308_vm2, %v2529_v13  ;;  %v5215_v12 = vld [vmem:[%s7972_s2 + $0xa] ss:$0 sm:$0xff] }
 0xb9b   : > { %v2518_v19 = vadd.f32 %v5854_v50, %v5192_v54  ;;  %v2509_v51 = vpop.f32.mrb[67].mxu1  ;;  %5860 = vmatmul.mubr.msk.bf16.vlgmr.msra.gmra.mrb[60].mxu0 %vm308_vm2, %v2530_v15  ;;  %5872 = vmatmul.mubr.msk.bf16.vlgmr.msra.gmra.mrb[68].mxu1 %vm308_vm2, %v2530_v15  ;;  %v7315_v61 = vadd.f32 %v2515_v26, %v6704_v38 }
 0xb9c   : > { %v2510_v16 = vadd.f32 %v5192_v54, %v2509_v51  ;;  %5880 = vmatpush3.bf16.msra.mxu0 %v6291_v4  ;;  %5892 = vmatpush3.bf16.msra.mxu1 %v6292_v57  ;;  %v7309_v18 = vadd.f32 %v2507_v25, %v6700_v36 }
 0xb9d   : > { %v7306_v14 = vadd.f32 %v2518_v19, %v6698_v34  ;;  %5881 = vmatprep.subr.bf16.mxu0 %v6293_v22  ;;  %5893 = vmatprep.subr.bf16.mxu1 %v6294_v24 }
 0xb9e   : > { %v7312_v2 = vadd.f32 %v2510_v16, %v6702_v37  ;;  %v5201_v37 = vld [vmem:[%s7972_s2 + $0x8] ss:$0 sm:$0xff] }
 0xb9f   : > { %v2532_v34 = vpack.c.bf16 %v7306_v14, %v7315_v61 }
 0xba0   : > { %v2531_v21 = vpack.c.bf16 %v7312_v2, %v7309_v18  ;;  %5882 = vmatpush3.bf16.msra.mxu0 %v6293_v22  ;;  %5894 = vmatpush3.bf16.msra.mxu1 %v6294_v24 }
 0xba2   : > { %5863 = vmatprep.mubr.msk.bf16.mxu0 %vm308_vm2, %v2531_v21  ;;  %5875 = vmatprep.mubr.msk.bf16.mxu1 %vm308_vm2, %v2531_v21 }
 0xba3   : > { %5864 = vmatmul.mubr.msk.bf16.gmra.mrb[64].mxu0 %vm308_vm2, %v2532_v34  ;;  %5876 = vmatmul.mubr.msk.bf16.gmra.mrb[72].mxu1 %vm308_vm2, %v2532_v34 }
 0xba4   : > { %5883 = vmatprep.mubr.msk.bf16.mxu0 %vm308_vm2, %v2529_v13  ;;  %5895 = vmatprep.mubr.msk.bf16.mxu1 %vm308_vm2, %v2529_v13 }
 0xbab   : > { %5884 = vmatmul.mubr.msk.bf16.vlgmr.msra.gmra.mrb[68].mxu0 %vm308_vm2, %v2530_v15  ;;  %5896 = vmatmul.mubr.msk.bf16.vlgmr.msra.gmra.mrb[76].mxu1 %vm308_vm2, %v2530_v15 }
 0xbac   : > { %5887 = vmatprep.mubr.msk.bf16.mxu0 %vm308_vm2, %v2531_v21  ;;  %5899 = vmatprep.mubr.msk.bf16.mxu1 %vm308_vm2, %v2531_v21 }
 0xbb3   : > { %5888 = vmatmul.mubr.msk.bf16.gmra.mrb[72].mxu0 %vm308_vm2, %v2532_v34  ;;  %5900 = vmatmul.mubr.msk.bf16.gmra.mrb[80].mxu1 %vm308_vm2, %v2532_v34 }
 0xc6e   : > { %v5861_v36 = vpop.f32.mrb[60].mxu0  ;;  %v5873_v38 = vpop.f32.mrb[68].mxu1 }
 0xc6f   : > { %v2600_v8 = vpop.f32.mrb[61].mxu0  ;;  %v2686_v6 = vpop.f32.mrb[69].mxu1  ;;  %v2609_v63 = vadd.f32 %v5861_v36, %v5201_v37  ;;  %v2695_v32 = vadd.f32 %v5873_v38, %v5208_v5 }
 0xc70   : > { %v5862_v31 = vpop.f32.mrb[62].mxu0  ;;  %v5874_v23 = vpop.f32.mrb[70].mxu1  ;;  %v2601_v62 = vadd.f32 %v5201_v37, %v2600_v8  ;;  %v2687_v45 = vadd.f32 %v5208_v5, %v2686_v6 }
 0xc71   : > { %v2612_v49 = vadd.f32 %v5862_v31, %v5201_v37  ;;  %v2698_v11 = vadd.f32 %v5874_v23, %v5208_v5  ;;  %v2603_v43 = vpop.f32.mrb[63].mxu0  ;;  %v2689_v55 = vpop.f32.mrb[71].mxu1 }
 0xc72   : > { %v2604_v56 = vadd.f32 %v5201_v37, %v2603_v43  ;;  %v2690_v33 = vadd.f32 %v5208_v5, %v2689_v55 }
 0xc73   : > { %v2804_v44 = vpack.c.bf16 %v2612_v49, %v2609_v63  ;;  %v2812_v1 = vpack.c.bf16 %v2698_v11, %v2695_v32 }
 0xc74   : > { %v2803_v47 = vpack.c.bf16 %v2604_v56, %v2601_v62  ;;  %v2811_v28 = vpack.c.bf16 %v2690_v33, %v2687_v45 }
 0xc75   : > { %2808 = vst.msk [vmem:[#allocation2 + $0x8] sm:$0xff] %vm308_vm2, %v2804_v44  ;;  %2816 = vst.msk [vmem:[#allocation2 + $0x28] sm:$0xff] %vm308_vm2, %v2812_v1 }
 0xc76   : > { %2807 = vst.msk [vmem:[#allocation2] sm:$0xff] %vm308_vm2, %v2803_v47  ;;  %2815 = vst.msk [vmem:[#allocation2 + $0x20] sm:$0xff] %vm308_vm2, %v2811_v28  ;;  %v5865_v59 = vpop.f32.mrb[64].mxu0  ;;  %v5877_v39 = vpop.f32.mrb[72].mxu1 }
 0xc77   : > { %v2616_v46 = vpop.f32.mrb[65].mxu0  ;;  %v2702_v17 = vpop.f32.mrb[73].mxu1  ;;  %v2625_v58 = vadd.f32 %v5865_v59, %v5201_v37  ;;  %v2711_v3 = vadd.f32 %v5877_v39, %v5208_v5 }
 0xc78   : > { %v5866_v30 = vpop.f32.mrb[66].mxu0  ;;  %v5878_v27 = vpop.f32.mrb[74].mxu1  ;;  %v2617_v35 = vadd.f32 %v5201_v37, %v2616_v46  ;;  %v2703_v53 = vadd.f32 %v5208_v5, %v2702_v17 }
 0xc79   : > { %v2628_v40 = vadd.f32 %v5866_v30, %v5201_v37  ;;  %v2714_v4 = vadd.f32 %v5878_v27, %v5208_v5  ;;  %v2619_v57 = vpop.f32.mrb[67].mxu0  ;;  %v2705_v54 = vpop.f32.mrb[75].mxu1 }
 0xc7a   : > { %v2620_v48 = vadd.f32 %v5201_v37, %v2619_v57  ;;  %v2706_v29 = vadd.f32 %v5208_v5, %v2705_v54 }
 0xc7b   : > { %v2806_v7 = vpack.c.bf16 %v2628_v40, %v2625_v58  ;;  %v2814_v41 = vpack.c.bf16 %v2714_v4, %v2711_v3 }
 0xc7c   : > { %v2805_v9 = vpack.c.bf16 %v2620_v48, %v2617_v35  ;;  %v2813_v52 = vpack.c.bf16 %v2706_v29, %v2703_v53  ;;  %v7364_v50 = vld [vmem:[#allocation2 + $0x28] sm:$0xff] }
 0xc7d   : > { %2810 = vst.msk [vmem:[#allocation2 + $0x18] sm:$0xff] %vm308_vm2, %v2806_v7  ;;  %2818 = vst.msk [vmem:[#allocation2 + $0x38] sm:$0xff] %vm308_vm2, %v2814_v41  ;;  %v7345_v13 = vld [vmem:[#allocation2] sm:$0xff]  ;;  %v2941_v6 = vsel %vm193_vm1, %v7364_v50, 0  ;;  %v7389_v45 = vld [vmem:[#allocation2 + $0x8] sm:$0xff] }
 0xc7e   : > { %v7347_v20 = vld [vmem:[#allocation2 + $0x20] sm:$0xff]  ;;  %2809 = vst.msk [vmem:[#allocation2 + $0x10] sm:$0xff] %vm308_vm2, %v2805_v9  ;;  %2817 = vst.msk [vmem:[#allocation2 + $0x30] sm:$0xff] %vm308_vm2, %v2813_v52  ;;  %3280 = vrot.lane.b32.xlu0 %v7345_v13, %s6579_s4  ;;  %v5885_v15 = vpop.f32.mrb[68].mxu0  ;;  %5911 = vmatprep.mubr.msk.bf16.mxu0 %vm193_vm1, %v7345_v13 }
 0xc7f   : > { %3292 = vrot.lane.b32.xlu1 %v7347_v20, %s6579_s4  ;;  %v2938_v22 = vsel %vm193_vm1, %v7347_v20, 0  ;;  %6239 = vmatprep.subr.msk.bf16.mxu0 %vm193_vm1, %v7347_v20  ;;  %v2772_v24 = vpop.f32.mrb[69].mxu0  ;;  %v2781_v26 = vadd.f32 %v5885_v15, %v5215_v12 }
 0xc80   : > { %5904 = vmatpush3.bf16.xpose.msra.mxu0 %v2938_v22  ;;  %v5886_v25 = vpop.f32.mrb[70].mxu0  ;;  %v2773_v16 = vadd.f32 %v5215_v12, %v2772_v24 }
 0xc81   : > { %v2784_v19 = vadd.f32 %v5886_v25, %v5215_v12  ;;  %6240 = vmatprep.subr.msk.bf16.mxu0 %vm193_vm1, %v7364_v50  ;;  %v2775_v51 = vpop.f32.mrb[71].mxu0 }
 0xc82   : > { %v2776_v21 = vadd.f32 %v5215_v12, %v2775_v51 }
 0xc83   : > { %3294 = vrot.lane.b32.xlu1 %v7364_v50, %s6579_s4  ;;  %v2820_v34 = vpack.c.bf16 %v2784_v19, %v2781_v26 }
 0xc84   : > { %v2819_v36 = vpack.c.bf16 %v2776_v21, %v2773_v16  ;;  %v7384_v49 = vld [vmem:[#allocation2 + $0x38] sm:$0xff] }
 0xc85   : > { %2824 = vst.msk [vmem:[#allocation2 + $0x48] sm:$0xff] %vm308_vm2, %v2820_v34  ;;  %v7371_v37 = vld [vmem:[#allocation2 + $0x30] sm:$0xff]  ;;  %v7405_v1 = vld [vmem:[#allocation2 + $0x18] sm:$0xff]  ;;  %v2947_v28 = vsel %vm193_vm1, %v7384_v49, 0 }
 0xc86   : > { %v7373_v38 = vld [vmem:[#allocation2 + $0x10] sm:$0xff]  ;;  %2823 = vst.msk [vmem:[#allocation2 + $0x40] sm:$0xff] %vm308_vm2, %v2819_v36  ;;  %v5889_v5 = vpop.f32.mrb[72].mxu0  ;;  %v2944_v33 = vsel %vm193_vm1, %v7371_v37, 0 }
 0xc87   : > { %3296 = vrot.lane.b32.xlu1 %v7371_v37, %s6579_s4  ;;  %3284 = vrot.lane.b32.xlu0 %v7373_v38, %s6579_s4  ;;  %v2788_v8 = vpop.f32.mrb[73].mxu0  ;;  %v2797_v23 = vadd.f32 %v5889_v5, %v5215_v12 }
 0xc88   : > { %5906 = vmatpush3.bf16.xpose.msra.mxu0 %v2941_v6  ;;  %v5890_v31 = vpop.f32.mrb[74].mxu0  ;;  %v2789_v11 = vadd.f32 %v5215_v12, %v2788_v8 }
 0xc89   : > { %v2800_v63 = vadd.f32 %v5890_v31, %v5215_v12  ;;  %6241 = vmatprep.subr.msk.bf16.mxu0 %vm193_vm1, %v7371_v37  ;;  %v2791_v32 = vpop.f32.mrb[75].mxu0 }
 0xc8a   : > { %v2792_v43 = vadd.f32 %v5215_v12, %v2791_v32 }
 0xc8b   : > { %3298 = vrot.lane.b32.xlu1 %v7384_v49, %s6579_s4  ;;  %v2822_v55 = vpack.c.bf16 %v2800_v63, %v2797_v23 }
 0xc8c   : > { %v2821_v62 = vpack.c.bf16 %v2792_v43, %v2789_v11  ;;  %v7400_v44 = vld [vmem:[#allocation2 + $0x48] sm:$0xff] }
 0xc8d   : > { %2826 = vst.msk [vmem:[#allocation2 + $0x58] sm:$0xff] %vm308_vm2, %v2822_v55  ;;  %v7391_v56 = vld [vmem:[#allocation2 + $0x40] sm:$0xff] }
 0xc8e   : > { %2825 = vst.msk [vmem:[#allocation2 + $0x50] sm:$0xff] %vm308_vm2, %v2821_v62  ;;  %5919 = vmatprep.subr.bf16.mxu1 %v7391_v56 }
 0xc8f   : > { %3282 = vrot.lane.b32.xlu1 %v7389_v45, %s6579_s4  ;;  %5920 = vmatpush3.bf16.msra.mxu1 %v7391_v56 }
 0xc90   : > { %5908 = vmatpush3.bf16.xpose.msra.mxu0 %v2944_v33  ;;  %5921 = vmatprep.subr.bf16.mxu1 %v7400_v44 }
 0xc91   : > { %6242 = vmatprep.subr.msk.bf16.mxu0 %vm193_vm1, %v7384_v49 }
 0xc93   : > { %3286 = vrot.lane.b32.xlu1 %v7405_v1, %s6579_s4  ;;  %5922 = vmatpush3.bf16.msra.mxu1 %v7400_v44 }
 0xc94   : > { %v7416_v59 = vld [vmem:[#allocation2 + $0x58] sm:$0xff] }
 0xc95   : > { %v7410_v47 = vld [vmem:[#allocation2 + $0x50] sm:$0xff] }
 0xc96   : > { %5923 = vmatprep.subr.bf16.mxu1 %v7410_v47 }
 0xc97   : > { %5924 = vmatpush3.bf16.msra.mxu1 %v7410_v47 }
 0xc98   : > { %5910 = vmatpush3.bf16.xpose.msra.mxu0 %v2947_v28  ;;  %5925 = vmatprep.subr.bf16.mxu1 %v7416_v59 }
 0xc9b   : > { %5926 = vmatpush3.bf16.msra.mxu1 %v7416_v59 }
 0xc9f   : > { %5912 = vmatmul.mubr.msk.bf16.vlgmr.msra.gmra.mrb[76].mxu0 %vm193_vm1, %v7389_v45 }
 0xca0   : > { %5915 = vmatprep.mubr.msk.bf16.mxu0 %vm193_vm1, %v7373_v38 }
 0xca7   : > { %5916 = vmatmul.mubr.msk.bf16.gmra.mrb[80].mxu0 %vm193_vm1, %v7405_v1 }
 0xcf0   : > { %v3281_v39 = vpop.permute.xlu0 %3280 }
 0xcf1   : > { %v3293_v46 = vpop.permute.xlu1 %3292  ;;  %5953 = vmatprep.mubr.msk.bf16.mxu0 %vm193_vm1, %v3281_v39 }
 0xcf2   : > { %6244 = vmatprep.subr.msk.bf16.mxu0 %vm193_vm1, %v3293_v46  ;;  %v3313_v17 = vsel %vm193_vm1, %v3293_v46, 0 }
 0xcf3   : > { %5946 = vmatpush3.bf16.xpose.msra.mxu0 %v3313_v17 }
 0xcf5   : > { %v3295_v30 = vpop.permute.xlu1 %3294 }
 0xcf6   : > { %6245 = vmatprep.subr.msk.bf16.mxu0 %vm193_vm1, %v3295_v30  ;;  %v3316_v27 = vsel %vm193_vm1, %v3295_v30, 0 }
 0xcf9   : > { %v3297_v58 = vpop.permute.xlu1 %3296  ;;  %v3285_v54 = vpop.permute.xlu0 %3284 }
 0xcfa   : > { %v3319_v3 = vsel %vm193_vm1, %v3297_v58, 0 }
 0xcfb   : > { %5948 = vmatpush3.bf16.xpose.msra.mxu0 %v3316_v27 }
 0xcfc   : > { %6246 = vmatprep.subr.msk.bf16.mxu0 %vm193_vm1, %v3297_v58 }
 0xcfd   : > { %v3299_v40 = vpop.permute.xlu1 %3298 }
 0xcfe   : > { %v3322_v4 = vsel %vm193_vm1, %v3299_v40, 0 }
 0xd01   : > { %v3283_v57 = vpop.permute.xlu1 %3282 }
 0xd03   : > { %5950 = vmatpush3.bf16.xpose.msra.mxu0 %v3319_v3 }
 0xd04   : > { %6247 = vmatprep.subr.msk.bf16.mxu0 %vm193_vm1, %v3299_v40 }
 0xd05   : > { %v3287_v35 = vpop.permute.xlu1 %3286 }
 0xd0b   : > { %5952 = vmatpush3.bf16.xpose.msra.mxu0 %v3322_v4 }
 0xd12   : > { %5954 = vmatmul.mubr.msk.bf16.vlgmr.msra.gmra.mrb[84].mxu0 %vm193_vm1, %v3283_v57 }
 0xd13   : > { %5957 = vmatprep.mubr.msk.bf16.mxu0 %vm193_vm1, %v3285_v54 }
 0xd1a   : > { %5958 = vmatmul.mubr.msk.bf16.gmra.mrb[88].mxu0 %vm193_vm1, %v3287_v35 }
 0xd72   : > { %v5913_v53 = vpop.f32.mrb[76].mxu0 }
 0xd73   : > { %v2983_v48 = vpop.f32.mrb[77].mxu0  ;;  %v3020_v52 = vsel %vm983_vm3, %v5913_v53, -inf }
 0xd74   : > { %v5914_v29 = vpop.f32.mrb[78].mxu0  ;;  %v3014_v7 = vsel %vm983_vm3, %v2983_v48, -inf }
 0xd75   : > { %v2986_v41 = vpop.f32.mrb[79].mxu0  ;;  %3015 = vmax.xlane.f32.xlu0 %v3014_v7  ;;  %v3023_v24 = vsel %vm983_vm3, %v5914_v29, -inf }
 0xd76   : > { %v3017_v9 = vsel %vm983_vm3, %v2986_v41, -inf }
 0xd77   : > { %3018 = vmax.xlane.f32.xlu1 %v3017_v9 }
 0xd79   : > { %3021 = vmax.xlane.f32.xlu0 %v3020_v52 }
 0xd7a   : > { %v5917_v15 = vpop.f32.mrb[80].mxu0 }
 0xd7b   : > { %v2999_v12 = vpop.f32.mrb[81].mxu0  ;;  %v3032_v19 = vsel %vm983_vm3, %v5917_v15, -inf }
 0xd7c   : > { %v5918_v22 = vpop.f32.mrb[82].mxu0  ;;  %v3026_v25 = vsel %vm983_vm3, %v2999_v12, -inf }
 0xd7d   : > { %3024 = vmax.xlane.f32.xlu0 %v3023_v24  ;;  %3027 = vmax.xlane.f32.xlu1 %v3026_v25  ;;  %v3002_v26 = vpop.f32.mrb[83].mxu0  ;;  %v3035_v16 = vsel %vm983_vm3, %v5918_v22, -inf }
 0xd7e   : > { %v3029_v51 = vsel %vm983_vm3, %v3002_v26, -inf }
 0xd81   : > { %3033 = vmax.xlane.f32.xlu1 %v3032_v19  ;;  %3030 = vmax.xlane.f32.xlu0 %v3029_v51 }
 0xd85   : > { %3036 = vmax.xlane.f32.xlu0 %v3035_v16 }
 0xde5   : > { %v7446_v21 = vpop.f32.mrb[84].mxu0 }
 0xde6   : > { %v7448_v34 = vpop.f32.mrb[85].mxu0 }
 0xde7   : > { %v7450_v36 = vpop.f32.mrb[86].mxu0 }
 0xde8   : > { %v7452_v5 = vpop.f32.mrb[87].mxu0 }
 0xded   : > { %v7454_v8 = vpop.f32.mrb[88].mxu0 }
 0xdee   : > { %v7456_v6 = vpop.f32.mrb[89].mxu0 }
 0xdef   : > { %v7458_v31 = vpop.f32.mrb[90].mxu0 }
 0xdf0   : > { %v7460_v23 = vpop.f32.mrb[91].mxu0 }
 0xe02   : > { %v3016_v63 = vpop.xlane.xlu0 %3015 }
 0xe03   : > { %v3038_v32 = vsub.f32 %v2983_v48, %v3016_v63 }
 0xe04   : > { %v3019_v11 = vpop.xlane.xlu1 %3018 }
 0xe05   : > { %v3046_v43 = vmul.f32 1.442695, %v3038_v32  ;;  %v3039_v55 = vsub.f32 %v2986_v41, %v3019_v11 }
 0xe06   : > { %v3022_v62 = vpop.xlane.xlu0 %3021 }
 0xe07   : > { %6435 = vpow2.f32 %v3046_v43  ;;  %v3048_v33 = vmul.f32 1.442695, %v3039_v55  ;;  %v3040_v28 = vsub.f32 %v5913_v53, %v3022_v62  ;;  %v3389_v55 = vsel %vm983_vm3, %v7448_v34, -inf }
 0xe08   : > { %v3392_v62 = vsel %vm983_vm3, %v7452_v5, -inf }
 0xe09   : > { %6437 = vpow2.f32 %v3048_v33  ;;  %v3050_v39 = vmul.f32 1.442695, %v3040_v28  ;;  %v3395_v33 = vsel %vm983_vm3, %v7446_v21, -inf  ;;  %v3401_v28 = vsel %vm983_vm3, %v7456_v6, -inf }
 0xe0a   : > { %v3025_v46 = vpop.xlane.xlu0 %3024  ;;  %v3028_v17 = vpop.xlane.xlu1 %3027 }
 0xe0b   : > { %6439 = vpow2.f32 %v3050_v39  ;;  %v3041_v30 = vsub.f32 %v5914_v29, %v3025_v46  ;;  %v3042_v27 = vsub.f32 %v2999_v12, %v3028_v17  ;;  %v3398_v39 = vsel %vm983_vm3, %v7450_v36, -inf }
 0xe0c   : > { %v3407_v46 = vsel %vm983_vm3, %v7454_v8, -inf  ;;  %v3404_v17 = vsel %vm983_vm3, %v7460_v23, -inf }
 0xe0d   : > { %v3052_v58 = vmul.f32 1.442695, %v3041_v30  ;;  %v3054_v3 = vmul.f32 1.442695, %v3042_v27  ;;  %v3410_v30 = vsel %vm983_vm3, %v7458_v31, -inf }
 0xe0e   : > { %v3034_v40 = vpop.xlane.xlu1 %3033  ;;  %v3031_v4 = vpop.xlane.xlu0 %3030  ;;  %v3187_v27 = vld [vmem:[%s7971_s1 + $0xd4] sm:$0xf] }
 0xe0f   : > { %6441 = vpow2.f32 %v3052_v58  ;;  %v3044_v57 = vsub.f32 %v5917_v15, %v3034_v40  ;;  %v3043_v54 = vsub.f32 %v3002_v26, %v3031_v4  ;;  %6243 = vmatprep.subr.msk.bf16.mxu1 %vm206_vm0, %v3187_v27 }
 0xe10   : > { %6443 = vpow2.f32 %v3054_v3 }
 0xe11   : > { %v7462_v35 = vpop.eup %6435  ;;  %v3058_v48 = vmul.f32 1.442695, %v3044_v57  ;;  %v3056_v7 = vmul.f32 1.442695, %v3043_v54 }
 0xe12   : > { %v3037_v53 = vpop.xlane.xlu0 %3036  ;;  %v3062_v41 = vsel %vm983_vm3, %v7462_v35, 0.0 }
 0xe13   : > { %v7466_v9 = vpop.eup %6437  ;;  %6445 = vpow2.f32 %v3058_v48  ;;  %v3045_v29 = vsub.f32 %v5918_v22, %v3037_v53  ;;  %3063 = vadd.xlane.f32.xlu1 %v3062_v41 }
 0xe14   : > { %6447 = vpow2.f32 %v3056_v7  ;;  %v3065_v52 = vsel %vm983_vm3, %v7466_v9, 0.0 }
 0xe15   : > { %v7470_v15 = vpop.eup %6439  ;;  %v3060_v12 = vmul.f32 1.442695, %v3045_v29  ;;  %3066 = vadd.xlane.f32.xlu0 %v3065_v52 }
 0xe16   : > { %v3068_v24 = vsel %vm983_vm3, %v7470_v15, 0.0 }
 0xe17   : > { %6449 = vpow2.f32 %v3060_v12  ;;  %3069 = vadd.xlane.f32.xlu1 %v3068_v24 }
 0xe19   : > { %v7474_v25 = vpop.eup %6441 }
 0xe1a   : > { %v7476_v26 = vpop.eup %6443  ;;  %v3071_v22 = vsel %vm983_vm3, %v7474_v25, 0.0 }
 0xe1b   : > { %v3074_v19 = vsel %vm983_vm3, %v7476_v26, 0.0  ;;  %3072 = vadd.xlane.f32.xlu0 %v3071_v22 }
 0xe1c   : > { %3075 = vadd.xlane.f32.xlu1 %v3074_v19 }
 0xe1d   : > { %v7482_v51 = vpop.eup %6445 }
 0xe1e   : > { %v7484_v16 = vpop.eup %6447  ;;  %v3080_v63 = vsel %vm983_vm3, %v7482_v51, 0.0 }
 0xe1f   : > { %v3077_v32 = vsel %vm983_vm3, %v7484_v16, 0.0 }
 0xe20   : > { %3081 = vadd.xlane.f32.xlu1 %v3080_v63  ;;  %3078 = vadd.xlane.f32.xlu0 %v3077_v32 }
 0xe21   : > { %v7490_v11 = vpop.eup %6449 }
 0xe22   : > { %v3083_v43 = vsel %vm983_vm3, %v7490_v11, 0.0 }
 0xe24   : > { %3084 = vadd.xlane.f32.xlu0 %v3083_v43 }
 0xe31   : > { %3675 = vrot.lane.b32.xlu1 %v7347_v20, %s6580_s7 }
 0xe35   : > { %3679 = vrot.lane.b32.xlu1 %v7371_v37, %s6580_s7 }
 0xe39   : > { %3681 = vrot.lane.b32.xlu1 %v7384_v49, %s6580_s7 }
 0xe3a   : > { %3677 = vrot.lane.b32.xlu0 %v7364_v50, %s6580_s7 }
 0xe3d   : > { %3669 = vrot.lane.b32.xlu1 %v7389_v45, %s6580_s7 }
 0xe3e   : > { %3667 = vrot.lane.b32.xlu0 %v7345_v13, %s6580_s7 }
 0xe41   : > { %3673 = vrot.lane.b32.xlu1 %v7405_v1, %s6580_s7 }
 0xe42   : > { %3671 = vrot.lane.b32.xlu0 %v7373_v38, %s6580_s7 }
 0xe61   : > { %3390 = vmax.xlane.f32.xlu0 %v3389_v55  ;;  %v3201_v55 = vsel %vm206_vm0, %v3187_v27, 0 }
 0xe65   : > { %3393 = vmax.xlane.f32.xlu1 %v3392_v62  ;;  %3396 = vmax.xlane.f32.xlu0 %v3395_v33 }
 0xe69   : > { %3402 = vmax.xlane.f32.xlu1 %v3401_v28  ;;  %3399 = vmax.xlane.f32.xlu0 %v3398_v39 }
 0xe6d   : > { %3408 = vmax.xlane.f32.xlu1 %v3407_v46  ;;  %3405 = vmax.xlane.f32.xlu0 %v3404_v17 }
 0xe71   : > { %3411 = vmax.xlane.f32.xlu0 %v3410_v30 }
 0xe7e   : > { %3485 = vrot.lane.b32.xlu1 %v7391_v56, %s6579_s4 }
 0xea0   : > { %v3064_v58 = vpop.xlane.xlu1 %3063 }
 0xea1   : > { %6451 = vrcp.f32 %v3064_v58 }
 0xea2   : > { %v3067_v3 = vpop.xlane.xlu0 %3066 }
 0xea3   : > { %6453 = vrcp.f32 %v3067_v3 }
 0xea4   : > { %v3070_v40 = vpop.xlane.xlu1 %3069 }
 0xea5   : > { %6455 = vrcp.f32 %v3070_v40 }
 0xea8   : > { %v3073_v4 = vpop.xlane.xlu0 %3072 }
 0xea9   : > { %v3076_v57 = vpop.xlane.xlu1 %3075  ;;  %6457 = vrcp.f32 %v3073_v4 }
 0xeaa   : > { %6459 = vrcp.f32 %v3076_v57 }
 0xeab   : > { %v6452_v54 = vpop.eup %6451 }
 0xeac   : > { %v3094_v41 = vmul.f32 %v6452_v54, %v7462_v35 }
 0xead   : > { %v6454_v48 = vpop.eup %6453  ;;  %v3082_v7 = vpop.xlane.xlu1 %3081 }
 0xeae   : > { %v3079_v53 = vpop.xlane.xlu0 %3078  ;;  %v3095_v29 = vmul.f32 %v6454_v48, %v7466_v9 }
 0xeaf   : > { %6461 = vrcp.f32 %v3079_v53  ;;  %v6456_v12 = vpop.eup %6455 }
 0xeb0   : > { %6463 = vrcp.f32 %v3082_v7  ;;  %v3102_v52 = vpack.c.bf16 %v3095_v29, %v3094_v41  ;;  %v3096_v32 = vmul.f32 %v6456_v12, %v7470_v15 }
 0xeb1   : > { %v3676_v24 = vpop.permute.xlu1 %3675 }
 0xeb2   : > { %v3085_v22 = vpop.xlane.xlu0 %3084  ;;  %v3696_v19 = vsel %vm193_vm1, %v3676_v24, 0  ;;  %6249 = vmatprep.subr.msk.bf16.mxu0 %vm193_vm1, %v3676_v24  ;;  %5927 = vmatprep.mubr.msk.bf16.mxu1 %vm983_vm3, %v3102_v52 }
 0xeb3   : > { %6465 = vrcp.f32 %v3085_v22  ;;  %v6458_v63 = vpop.eup %6457  ;;  %5988 = vmatpush3.bf16.xpose.msra.mxu0 %v3696_v19 }
 0xeb4   : > { %v3097_v35 = vmul.f32 %v6458_v63, %v7474_v25  ;;  %v6460_v62 = vpop.eup %6459 }
 0xeb5   : > { %v3098_v15 = vmul.f32 %v6460_v62, %v7476_v26  ;;  %v3680_v17 = vpop.permute.xlu1 %3679 }
 0xeb6   : > { %v3678_v9 = vpop.permute.xlu0 %3677  ;;  %v3103_v43 = vpack.c.bf16 %v3097_v35, %v3096_v32  ;;  %v3702_v4 = vsel %vm193_vm1, %v3680_v17, 0 }
 0xeb7   : > { %6250 = vmatprep.subr.msk.bf16.mxu0 %vm193_vm1, %v3678_v9  ;;  %v3699_v46 = vsel %vm193_vm1, %v3678_v9, 0 }
 0xeb8   : > { %5928 = vmatmul.mubr.msk.bf16.vlgmr.msra.gmra.mrb[84].mxu1 %vm983_vm3, %v3103_v43 }
 0xeb9   : > { %v6462_v33 = vpop.eup %6461  ;;  %5936 = vmatpush3.bf16.msra.mxu1 %v3201_v55  ;;  %v3682_v26 = vpop.permute.xlu1 %3681 }
 0xeba   : > { %v3668_v28 = vpop.permute.xlu0 %3667  ;;  %v6464_v39 = vpop.eup %6463  ;;  %v3099_v25 = vmul.f32 %v6462_v33, %v7484_v16  ;;  %v3705_v16 = vsel %vm193_vm1, %v3682_v26, 0 }
 0xebb   : > { %5995 = vmatprep.mubr.msk.bf16.mxu0 %vm193_vm1, %v3668_v28  ;;  %5990 = vmatpush3.bf16.xpose.msra.mxu0 %v3699_v46  ;;  %v3100_v58 = vmul.f32 %v6464_v39, %v7482_v51 }
 0xebc   : > { %6251 = vmatprep.subr.msk.bf16.mxu0 %vm193_vm1, %v3680_v17  ;;  %v3104_v27 = vpack.c.bf16 %v3099_v25, %v3098_v15 }
 0xebd   : > { %v6466_v30 = vpop.eup %6465  ;;  %v3670_v57 = vpop.permute.xlu1 %3669 }
 0xebe   : > { %v3101_v3 = vmul.f32 %v6466_v30, %v7490_v11  ;;  %5931 = vmatprep.mubr.msk.bf16.mxu1 %vm983_vm3, %v3104_v27  ;;  %v3672_v54 = vpop.permute.xlu0 %3671 }
 0xec0   : > { %v3105_v40 = vpack.c.bf16 %v3101_v3, %v3100_v58 }
 0xec1   : > { %v3674_v51 = vpop.permute.xlu1 %3673 }
 0xec2   : > { %5932 = vmatmul.mubr.msk.bf16.gmra.mrb[88].mxu1 %vm983_vm3, %v3105_v40 }
 0xec3   : > { %5992 = vmatpush3.bf16.xpose.msra.mxu0 %v3702_v4 }
 0xec4   : > { %6252 = vmatprep.subr.msk.bf16.mxu0 %vm193_vm1, %v3682_v26 }
 0xecb   : > { %5994 = vmatpush3.bf16.xpose.msra.mxu0 %v3705_v16 }
 0xed2   : > { %5996 = vmatmul.mubr.msk.bf16.vlgmr.msra.gmra.mrb[92].mxu0 %vm193_vm1, %v3670_v57 }
 0xed3   : > { %5999 = vmatprep.mubr.msk.bf16.mxu0 %vm193_vm1, %v3672_v54 }
 0xeda   : > { %6000 = vmatmul.mubr.msk.bf16.gmra.mrb[96].mxu0 %vm193_vm1, %v3674_v51 }
 0xeee   : > { %v3391_v11 = vpop.xlane.xlu0 %3390 }
 0xeef   : > { %v3413_v48 = vsub.f32 %v7448_v34, %v3391_v11 }
 0xef1   : > { %v3421_v52 = vmul.f32 1.442695, %v3413_v48 }
 0xef2   : > { %v3394_v7 = vpop.xlane.xlu1 %3393  ;;  %v3397_v53 = vpop.xlane.xlu0 %3396 }
 0xef3   : > { %v3415_v41 = vsub.f32 %v7446_v21, %v3397_v53  ;;  %v3414_v12 = vsub.f32 %v7452_v5, %v3394_v7 }
 0xef5   : > { %v3425_v29 = vmul.f32 1.442695, %v3415_v41  ;;  %v3423_v32 = vmul.f32 1.442695, %v3414_v12 }
 0xef6   : > { %v3403_v24 = vpop.xlane.xlu1 %3402  ;;  %v3400_v22 = vpop.xlane.xlu0 %3399 }
 0xef7   : > { %v3416_v19 = vsub.f32 %v7450_v36, %v3400_v22  ;;  %6467 = vpow2.f32 %v3425_v29  ;;  %v3417_v35 = vsub.f32 %v7456_v6, %v3403_v24 }
 0xef8   : > { %6469 = vpow2.f32 %v3421_v52 }
 0xef9   : > { %v3427_v63 = vmul.f32 1.442695, %v3416_v19  ;;  %v3429_v55 = vmul.f32 1.442695, %v3417_v35 }
 0xefa   : > { %v3409_v9 = vpop.xlane.xlu1 %3408  ;;  %v3406_v34 = vpop.xlane.xlu0 %3405 }
 0xefb   : > { %v3419_v43 = vsub.f32 %v7454_v8, %v3409_v9  ;;  %6471 = vpow2.f32 %v3427_v63  ;;  %v3418_v5 = vsub.f32 %v7460_v23, %v3406_v34 }
 0xefc   : > { %6473 = vpow2.f32 %v3423_v32 }
 0xefd   : > { %v3433_v21 = vmul.f32 1.442695, %v3419_v43  ;;  %v3431_v6 = vmul.f32 1.442695, %v3418_v5 }
 0xefe   : > { %v3486_v62 = vpop.permute.xlu1 %3485  ;;  %v3412_v33 = vpop.xlane.xlu0 %3411 }
 0xeff   : > { %6475 = vpow2.f32 %v3433_v21  ;;  %v3420_v36 = vsub.f32 %v7458_v31, %v3412_v33  ;;  %5961 = vmatprep.subr.bf16.mxu1 %v3486_v62 }
 0xf00   : > { %6477 = vpow2.f32 %v3429_v55 }
 0xf01   : > { %v3435_v28 = vmul.f32 1.442695, %v3420_v36  ;;  %v7565_v39 = vpop.eup %6467 }
 0xf02   : > { %v3443_v8 = vsel %vm983_vm3, %v7565_v39, 0.0  ;;  %v7569_v46 = vpop.eup %6469 }
 0xf03   : > { %6479 = vpow2.f32 %v3435_v28  ;;  %3444 = vadd.xlane.f32.xlu1 %v3443_v8  ;;  %v3437_v23 = vsel %vm983_vm3, %v7569_v46, 0.0 }
 0xf04   : > { %6481 = vpow2.f32 %v3431_v6 }
 0xf05   : > { %v7571_v15 = vpop.eup %6471 }
 0xf06   : > { %v3446_v31 = vsel %vm983_vm3, %v7571_v15, 0.0  ;;  %v7577_v25 = vpop.eup %6473 }
 0xf07   : > { %3438 = vadd.xlane.f32.xlu1 %v3437_v23  ;;  %3447 = vadd.xlane.f32.xlu0 %v3446_v31  ;;  %v3440_v27 = vsel %vm983_vm3, %v7577_v25, 0.0 }
 0xf09   : > { %v7579_v17 = vpop.eup %6475 }
 0xf0a   : > { %v3455_v30 = vsel %vm983_vm3, %v7579_v17, 0.0  ;;  %v7585_v58 = vpop.eup %6477 }
 0xf0b   : > { %3456 = vadd.xlane.f32.xlu1 %v3455_v30  ;;  %3441 = vadd.xlane.f32.xlu0 %v3440_v27  ;;  %v3449_v4 = vsel %vm983_vm3, %v7585_v58, 0.0 }
 0xf0d   : > { %v7587_v3 = vpop.eup %6479 }
 0xf0e   : > { %v3458_v40 = vsel %vm983_vm3, %v7587_v3, 0.0  ;;  %v7593_v26 = vpop.eup %6481 }
 0xf0f   : > { %3450 = vadd.xlane.f32.xlu1 %v3449_v4  ;;  %3459 = vadd.xlane.f32.xlu0 %v3458_v40  ;;  %v3452_v16 = vsel %vm983_vm3, %v7593_v26, 0.0 }
 0xf13   : > { %3453 = vadd.xlane.f32.xlu0 %v3452_v16 }
 0xf20   : > { %3489 = vrot.lane.b32.xlu1 %v7410_v47, %s6579_s4 }
 0xf24   : > { %3491 = vrot.lane.b32.xlu1 %v7416_v59, %s6579_s4 }
 0xf28   : > { %4056 = vrot.lane.b32.xlu1 %v7364_v50, %s6581_s10 }
 0xf29   : > { %3487 = vrot.lane.b32.xlu0 %v7400_v44, %s6579_s4 }
 0xf2c   : > { %4060 = vrot.lane.b32.xlu1 %v7384_v49, %s6581_s10 }
 0xf2d   : > { %4054 = vrot.lane.b32.xlu0 %v7347_v20, %s6581_s10 }
 0xf30   : > { %4048 = vrot.lane.b32.xlu1 %v7389_v45, %s6581_s10 }
 0xf31   : > { %4058 = vrot.lane.b32.xlu0 %v7371_v37, %s6581_s10 }
 0xf34   : > { %4052 = vrot.lane.b32.xlu1 %v7405_v1, %s6581_s10 }
 0xf35   : > { %4046 = vrot.lane.b32.xlu0 %v7345_v13, %s6581_s10 }
 0xf39   : > { %4050 = vrot.lane.b32.xlu0 %v7373_v38, %s6581_s10 }
 0xf8b   : > { %v5929_v50 = vpop.f32.mrb[84].mxu1 }
 0xf8c   : > { %v3152_v49 = vpop.f32.mrb[85].mxu1 }
 0xf8d   : > { %v5930_v57 = vpop.f32.mrb[86].mxu1 }
 0xf8e   : > { %v3184_v54 = vpack.c.bf16 %v5930_v57, %v5929_v50  ;;  %v3155_v20 = vpop.f32.mrb[87].mxu1 }
 0xf8f   : > { %v3183_v51 = vpack.c.bf16 %v3155_v20, %v3152_v49 }
 0xf90   : > { %v3445_v11 = vpop.xlane.xlu1 %3444 }
 0xf91   : > { %5937 = vmatprep.mubr.msk.bf16.mxu1 %vm193_vm1, %v3183_v51 }
 0xf92   : > { %5938 = vmatmul.mubr.msk.bf16.vlgmr.msra.gmra.mrb[76].mxu1 %vm193_vm1, %v3184_v54 }
 0xf93   : > { %5962 = vmatpush3.bf16.msra.mxu1 %v3486_v62 }
 0xf94   : > { %v3439_v45 = vpop.xlane.xlu1 %3438  ;;  %v3448_v1 = vpop.xlane.xlu0 %3447 }
 0xf95   : > { %v5933_v37 = vpop.f32.mrb[88].mxu1  ;;  %6483 = vrcp.f32 %v3439_v45 }
 0xf96   : > { %v3168_v48 = vpop.f32.mrb[89].mxu1 }
 0xf97   : > { %v5934_v13 = vpop.f32.mrb[90].mxu1 }
 0xf98   : > { %v3186_v7 = vpack.c.bf16 %v5934_v13, %v5933_v37  ;;  %v3171_v53 = vpop.f32.mrb[91].mxu1  ;;  %v3457_v41 = vpop.xlane.xlu1 %3456 }
 0xf99   : > { %v3185_v38 = vpack.c.bf16 %v3171_v53, %v3168_v48  ;;  %v3442_v29 = vpop.xlane.xlu0 %3441 }
 0xf9a   : > { %6485 = vrcp.f32 %v3442_v29 }
 0xf9b   : > { %5941 = vmatprep.mubr.msk.bf16.mxu1 %vm193_vm1, %v3185_v38  ;;  %6487 = vrcp.f32 %v3448_v1 }
 0xf9c   : > { %5942 = vmatmul.mubr.msk.bf16.gmra.mrb[80].mxu1 %vm193_vm1, %v3186_v7  ;;  %v3451_v52 = vpop.xlane.xlu1 %3450  ;;  %6489 = vrcp.f32 %v3445_v11 }
 0xf9d   : > { %v3460_v12 = vpop.xlane.xlu0 %3459 }
 0xf9f   : > { %v6484_v19 = vpop.eup %6483 }
 0xfa0   : > { %v3490_v24 = vpop.permute.xlu1 %3489  ;;  %v3469_v34 = vmul.f32 %v6484_v19, %v7569_v46 }
 0xfa1   : > { %v3454_v22 = vpop.xlane.xlu0 %3453 }
 0xfa2   : > { %6491 = vrcp.f32 %v3454_v22 }
 0xfa3   : > { %6493 = vrcp.f32 %v3451_v52 }
 0xfa4   : > { %v6486_v63 = vpop.eup %6485  ;;  %v3492_v35 = vpop.permute.xlu1 %3491  ;;  %6495 = vrcp.f32 %v3460_v12 }
 0xfa5   : > { %v3488_v32 = vpop.permute.xlu0 %3487  ;;  %v7623_v9 = vpop.f32.mrb[92].mxu0  ;;  %v3470_v43 = vmul.f32 %v6486_v63, %v7577_v25  ;;  %6497 = vrcp.f32 %v3457_v41 }
 0xfa6   : > { %5963 = vmatprep.subr.bf16.mxu1 %v3488_v32  ;;  %v7627_v21 = vpop.f32.mrb[93].mxu0  ;;  %v6488_v36 = vpop.eup %6487  ;;  %v3778_v27 = vsel %vm983_vm3, %v7623_v9, -inf }
 0xfa7   : > { %5964 = vmatpush3.bf16.msra.mxu1 %v3488_v32  ;;  %v7629_v55 = vpop.f32.mrb[94].mxu0  ;;  %v3772_v5 = vsel %vm983_vm3, %v7627_v21, -inf  ;;  %v3477_v62 = vpack.c.bf16 %v3470_v43, %v3469_v34  ;;  %v6490_v8 = vpop.eup %6489  ;;  %v3472_v30 = vmul.f32 %v6488_v36, %v7571_v15 }
 0xfa8   : > { %5965 = vmatprep.subr.bf16.mxu1 %v3490_v24  ;;  %v7633_v33 = vpop.f32.mrb[95].mxu0  ;;  %3773 = vmax.xlane.f32.xlu0 %v3772_v5  ;;  %v4057_v31 = vpop.permute.xlu1 %4056  ;;  %v3471_v49 = vmul.f32 %v6490_v8, %v7565_v39  ;;  %v3781_v11 = vsel %vm983_vm3, %v7629_v55, -inf }
 0xfa9   : > { %5969 = vmatprep.mubr.msk.bf16.mxu1 %vm983_vm3, %v3477_v62  ;;  %v4055_v28 = vpop.permute.xlu0 %4054  ;;  %v3775_v6 = vsel %vm983_vm3, %v7633_v33, -inf  ;;  %v4078_v39 = vsel %vm193_vm1, %v4057_v31, 0 }
 0xfaa   : > { %v4075_v46 = vsel %vm193_vm1, %v4055_v28, 0  ;;  %6254 = vmatprep.subr.msk.bf16.mxu0 %vm193_vm1, %v4055_v28  ;;  %3776 = vmax.xlane.f32.xlu1 %v3775_v6  ;;  %v3478_v51 = vpack.c.bf16 %v3472_v30, %v3471_v49 }
 0xfab   : > { %5966 = vmatpush3.bf16.msra.mxu1 %v3490_v24  ;;  %6030 = vmatpush3.bf16.xpose.msra.mxu0 %v4075_v46 }
 0xfac   : > { %v6492_v23 = vpop.eup %6491  ;;  %5967 = vmatprep.subr.bf16.mxu1 %v3492_v35  ;;  %6255 = vmatprep.subr.msk.bf16.mxu0 %vm193_vm1, %v4057_v31  ;;  %v4061_v29 = vpop.permute.xlu1 %4060 }
 0xfad   : > { %v6494_v25 = vpop.eup %6493  ;;  %v7644_v40 = vpop.f32.mrb[96].mxu0  ;;  %3779 = vmax.xlane.f32.xlu0 %v3778_v27  ;;  %v3474_v50 = vmul.f32 %v6492_v23, %v7593_v26  ;;  %v4084_v52 = vsel %vm193_vm1, %v4061_v29, 0 }
 0xfae   : > { %v4059_v4 = vpop.permute.xlu0 %4058  ;;  %v7646_v16 = vpop.f32.mrb[97].mxu0  ;;  %v3473_v20 = vmul.f32 %v6494_v25, %v7585_v58  ;;  %v3790_v58 = vsel %vm983_vm3, %v7644_v40, -inf }
 0xfaf   : > { %v7650_v57 = vpop.f32.mrb[98].mxu0  ;;  %v3784_v15 = vsel %vm983_vm3, %v7646_v16, -inf  ;;  %5968 = vmatpush3.bf16.msra.mxu1 %v3492_v35  ;;  %v6496_v37 = vpop.eup %6495  ;;  %v4081_v41 = vsel %vm193_vm1, %v4059_v4, 0 }
 0xfb0   : > { %v7654_v54 = vpop.f32.mrb[99].mxu0  ;;  %3785 = vmax.xlane.f32.xlu1 %v3784_v15  ;;  %v3479_v45 = vpack.c.bf16 %v3474_v50, %v3473_v20  ;;  %v6498_v1 = vpop.eup %6497  ;;  %v3476_v13 = vmul.f32 %v6496_v37, %v7587_v3  ;;  %v3793_v53 = vsel %vm983_vm3, %v7650_v57, -inf }
 0xfb1   : > { %3782 = vmax.xlane.f32.xlu0 %v3781_v11  ;;  %v3787_v48 = vsel %vm983_vm3, %v7654_v54, -inf  ;;  %v3475_v7 = vmul.f32 %v6498_v1, %v7579_v17  ;;  %v3578_v17 = vld [vmem:[%s7971_s1 + $0xd8] sm:$0xf]  ;;  %v4049_v12 = vpop.permute.xlu1 %4048 }
 0xfb2   : > { %v4047_v26 = vpop.permute.xlu0 %4046  ;;  %5970 = vmatmul.mubr.msk.bf16.vlgmr.msra.gmra.mrb[92].mxu1 %vm983_vm3, %v3478_v51  ;;  %6248 = vmatprep.subr.msk.bf16.mxu1 %vm206_vm0, %v3578_v17  ;;  %v3592_v3 = vsel %vm206_vm0, %v3578_v17, 0 }
 0xfb3   : > { %6037 = vmatprep.mubr.msk.bf16.mxu0 %vm193_vm1, %v4047_v26  ;;  %5973 = vmatprep.mubr.msk.bf16.mxu1 %vm983_vm3, %v3479_v45  ;;  %v3480_v38 = vpack.c.bf16 %v3476_v13, %v3475_v7 }
 0xfb4   : > { %6032 = vmatpush3.bf16.xpose.msra.mxu0 %v4078_v39  ;;  %3791 = vmax.xlane.f32.xlu1 %v3790_v58 }
 0xfb5   : > { %6256 = vmatprep.subr.msk.bf16.mxu0 %vm193_vm1, %v4059_v4  ;;  %3788 = vmax.xlane.f32.xlu0 %v3787_v48  ;;  %v4053_v22 = vpop.permute.xlu1 %4052 }
 0xfb6   : > { %5978 = vmatpush3.bf16.msra.mxu1 %v3592_v3  ;;  %v4051_v24 = vpop.permute.xlu0 %4050 }
 0xfb9   : > { %3794 = vmax.xlane.f32.xlu0 %v3793_v53 }
 0xfba   : > { %5974 = vmatmul.mubr.msk.bf16.gmra.mrb[96].mxu1 %vm983_vm3, %v3480_v38 }
 0xfbc   : > { %6034 = vmatpush3.bf16.xpose.msra.mxu0 %v4081_v41 }
 0xfbd   : > { %6257 = vmatprep.subr.msk.bf16.mxu0 %vm193_vm1, %v4061_v29 }
 0xfc4   : > { %6036 = vmatpush3.bf16.xpose.msra.mxu0 %v4084_v52 }
 0xfc5   : > { %3864 = vrot.lane.b32.xlu1 %v7391_v56, %s6580_s7 }
 0xfcb   : > { %6038 = vmatmul.mubr.msk.bf16.vlgmr.msra.gmra.mrb[100].mxu0 %vm193_vm1, %v4049_v12 }
 0xfcc   : > { %6041 = vmatprep.mubr.msk.bf16.mxu0 %vm193_vm1, %v4051_v24 }
 0xfd3   : > { %6042 = vmatmul.mubr.msk.bf16.gmra.mrb[104].mxu0 %vm193_vm1, %v4053_v22 }
0x1035   : > { %v3774_v19 = vpop.xlane.xlu0 %3773 }
0x1036   : > { %v3796_v32 = vsub.f32 %v7627_v21, %v3774_v19 }
0x1037   : > { %v3777_v63 = vpop.xlane.xlu1 %3776 }
0x1038   : > { %v3804_v43 = vmul.f32 1.442695, %v3796_v32  ;;  %v3797_v5 = vsub.f32 %v7633_v33, %v3777_v63 }
0x103a   : > { %v3780_v35 = vpop.xlane.xlu0 %3779  ;;  %v3806_v6 = vmul.f32 1.442695, %v3797_v5 }
0x103b   : > { %v3798_v56 = vsub.f32 %v7623_v9, %v3780_v35 }
0x103d   : > { %v3786_v34 = vpop.xlane.xlu1 %3785  ;;  %v3808_v62 = vmul.f32 1.442695, %v3798_v56 }
0x103e   : > { %v3783_v36 = vpop.xlane.xlu0 %3782  ;;  %v3800_v8 = vsub.f32 %v7646_v16, %v3786_v34 }
0x103f   : > { %6499 = vpow2.f32 %v3808_v62  ;;  %v3799_v28 = vsub.f32 %v7629_v55, %v3783_v36 }
0x1040   : > { %6501 = vpow2.f32 %v3804_v43  ;;  %v3812_v25 = vmul.f32 1.442695, %v3800_v8 }
0x1041   : > { %v3810_v46 = vmul.f32 1.442695, %v3799_v28  ;;  %v3792_v23 = vpop.xlane.xlu1 %3791 }
0x1042   : > { %v3802_v21 = vsub.f32 %v7644_v40, %v3792_v23  ;;  %v3789_v31 = vpop.xlane.xlu0 %3788 }
0x1043   : > { %6503 = vpow2.f32 %v3810_v46  ;;  %v3801_v33 = vsub.f32 %v7654_v54, %v3789_v31  ;;  %v6567_v46 = vld [vmem:[#allocation2 + $0x40] sm:$0xff] }
0x1044   : > { %v3816_v9 = vmul.f32 1.442695, %v3802_v21  ;;  %6505 = vpow2.f32 %v3806_v6 }
0x1045   : > { %v3865_v30 = vpop.permute.xlu1 %3864  ;;  %v3814_v16 = vmul.f32 1.442695, %v3801_v33 }
0x1046   : > { %6507 = vpow2.f32 %v3816_v9  ;;  %v3795_v27 = vpop.xlane.xlu0 %3794  ;;  %6003 = vmatprep.subr.bf16.mxu1 %v3865_v30 }
0x1047   : > { %v3803_v55 = vsub.f32 %v7650_v57, %v3795_v27  ;;  %6509 = vpow2.f32 %v3812_v25 }
0x1049   : > { %v7694_v4 = vpop.eup %6499  ;;  %v3818_v50 = vmul.f32 1.442695, %v3803_v55 }
0x104a   : > { %v3826_v40 = vsel %vm983_vm3, %v7694_v4, 0.0  ;;  %v7698_v49 = vpop.eup %6501 }
0x104b   : > { %6511 = vpow2.f32 %v3818_v50  ;;  %3827 = vadd.xlane.f32.xlu1 %v3826_v40  ;;  %v3820_v54 = vsel %vm983_vm3, %v7698_v49, 0.0 }
0x104c   : > { %6513 = vpow2.f32 %v3814_v16 }
0x104d   : > { %v7700_v15 = vpop.eup %6503 }
0x104e   : > { %v3829_v57 = vsel %vm983_vm3, %v7700_v15, 0.0  ;;  %v7706_v20 = vpop.eup %6505 }
0x104f   : > { %3821 = vadd.xlane.f32.xlu1 %v3820_v54  ;;  %3830 = vadd.xlane.f32.xlu0 %v3829_v57  ;;  %v3823_v37 = vsel %vm983_vm3, %v7706_v20, 0.0 }
0x1050   : > { %v7708_v51 = vpop.eup %6507 }
0x1051   : > { %v3838_v11 = vsel %vm983_vm3, %v7708_v51, 0.0  ;;  %v7714_v26 = vpop.eup %6509 }
0x1052   : > { %v3832_v39 = vsel %vm983_vm3, %v7714_v26, 0.0 }
0x1053   : > { %3839 = vadd.xlane.f32.xlu1 %v3838_v11  ;;  %3824 = vadd.xlane.f32.xlu0 %v3823_v37 }
0x1055   : > { %v7716_v45 = vpop.eup %6511 }
0x1056   : > { %v3841_v1 = vsel %vm983_vm3, %v7716_v45, 0.0  ;;  %v7722_v58 = vpop.eup %6513 }
0x1057   : > { %3833 = vadd.xlane.f32.xlu1 %v3832_v39  ;;  %3842 = vadd.xlane.f32.xlu0 %v3841_v1  ;;  %v3835_v48 = vsel %vm983_vm3, %v7722_v58, 0.0 }
0x105b   : > { %3836 = vadd.xlane.f32.xlu0 %v3835_v48 }
0x1068   : > { %3868 = vrot.lane.b32.xlu1 %v7410_v47, %s6580_s7 }
0x106c   : > { %3870 = vrot.lane.b32.xlu1 %v7416_v59, %s6580_s7 }
0x1071   : > { %3866 = vrot.lane.b32.xlu0 %v7400_v44, %s6580_s7 }
0x1085   : > { %v5971_v13 = vpop.f32.mrb[92].mxu1 }
0x1086   : > { %v3543_v7 = vpop.f32.mrb[93].mxu1 }
0x1087   : > { %v5972_v53 = vpop.f32.mrb[94].mxu1 }
0x1088   : > { %v3575_v38 = vpack.c.bf16 %v5972_v53, %v5971_v13  ;;  %v3546_v41 = vpop.f32.mrb[95].mxu1 }
0x1089   : > { %v3574_v29 = vpack.c.bf16 %v3546_v41, %v3543_v7 }
0x108b   : > { %5979 = vmatprep.mubr.msk.bf16.mxu1 %vm193_vm1, %v3574_v29 }
0x108c   : > { %5980 = vmatmul.mubr.msk.bf16.vlgmr.msra.gmra.mrb[76].mxu1 %vm193_vm1, %v3575_v38 }
0x108d   : > { %6004 = vmatpush3.bf16.msra.mxu1 %v3865_v30  ;;  %v5975_v52 = vpop.f32.mrb[96].mxu1 }
0x108e   : > { %v3559_v17 = vpop.f32.mrb[97].mxu1 }
0x108f   : > { %v5976_v47 = vpop.f32.mrb[98].mxu1 }
0x1090   : > { %v3577_v3 = vpack.c.bf16 %v5976_v47, %v5975_v52  ;;  %v3562_v12 = vpop.f32.mrb[99].mxu1 }
0x1091   : > { %v3576_v59 = vpack.c.bf16 %v3562_v12, %v3559_v17 }
0x1093   : > { %5983 = vmatprep.mubr.msk.bf16.mxu1 %vm193_vm1, %v3576_v59 }
0x1094   : > { %5984 = vmatmul.mubr.msk.bf16.gmra.mrb[80].mxu1 %vm193_vm1, %v3577_v3 }
0x109e   : > { %v7736_v44 = vpop.f32.mrb[100].mxu0 }
0x109f   : > { %v7738_v24 = vpop.f32.mrb[101].mxu0  ;;  %v4157_v35 = vsel %vm983_vm3, %v7736_v44, -inf }
0x10a0   : > { %v7740_v22 = vpop.f32.mrb[102].mxu0  ;;  %v4151_v19 = vsel %vm983_vm3, %v7738_v24, -inf }
0x10a1   : > { %v7744_v63 = vpop.f32.mrb[103].mxu0  ;;  %4152 = vmax.xlane.f32.xlu0 %v4151_v19  ;;  %v4160_v62 = vsel %vm983_vm3, %v7740_v22, -inf }
0x10a2   : > { %v4154_v32 = vsel %vm983_vm3, %v7744_v63, -inf }
0x10a3   : > { %4155 = vmax.xlane.f32.xlu1 %v4154_v32 }
0x10a5   : > { %4158 = vmax.xlane.f32.xlu0 %v4157_v35 }
0x10a6   : > { %v7750_v56 = vpop.f32.mrb[104].mxu0 }
0x10a7   : > { %v7752_v34 = vpop.f32.mrb[105].mxu0  ;;  %v4169_v28 = vsel %vm983_vm3, %v7750_v56, -inf }
0x10a8   : > { %v7754_v43 = vpop.f32.mrb[106].mxu0  ;;  %v4163_v5 = vsel %vm983_vm3, %v7752_v34, -inf }
0x10a9   : > { %v7760_v36 = vpop.f32.mrb[107].mxu0  ;;  %4164 = vmax.xlane.f32.xlu1 %v4163_v5  ;;  %4161 = vmax.xlane.f32.xlu0 %v4160_v62  ;;  %v4172_v8 = vsel %vm983_vm3, %v7754_v43, -inf }
0x10aa   : > { %v4166_v6 = vsel %vm983_vm3, %v7760_v36, -inf }
0x10ad   : > { %4170 = vmax.xlane.f32.xlu1 %v4169_v28  ;;  %4167 = vmax.xlane.f32.xlu0 %v4166_v6 }
0x10b1   : > { %4173 = vmax.xlane.f32.xlu0 %v4172_v8 }
0x10be   : > { %4243 = vrot.lane.b32.xlu1 %v6567_v46, %s6581_s10 }
0x10d8   : > { %v3828_v23 = vpop.xlane.xlu1 %3827 }
0x10dc   : > { %v3822_v21 = vpop.xlane.xlu1 %3821  ;;  %v3831_v31 = vpop.xlane.xlu0 %3830 }
0x10dd   : > { %6515 = vrcp.f32 %v3822_v21 }
0x10e0   : > { %v3840_v9 = vpop.xlane.xlu1 %3839  ;;  %v3825_v25 = vpop.xlane.xlu0 %3824 }
0x10e1   : > { %6517 = vrcp.f32 %v3825_v25 }
0x10e2   : > { %6519 = vrcp.f32 %v3831_v31 }
0x10e3   : > { %6521 = vrcp.f32 %v3828_v23 }
0x10e4   : > { %v3843_v33 = vpop.xlane.xlu0 %3842  ;;  %v3834_v30 = vpop.xlane.xlu1 %3833 }
0x10e5   : > { %6523 = vrcp.f32 %v3834_v30 }
0x10e7   : > { %v6516_v55 = vpop.eup %6515 }
0x10e8   : > { %v3837_v27 = vpop.xlane.xlu0 %3836  ;;  %v3869_v50 = vpop.permute.xlu1 %3868  ;;  %v3852_v54 = vmul.f32 %v6516_v55, %v7698_v49 }
0x10e9   : > { %6525 = vrcp.f32 %v3837_v27 }
0x10ea   : > { %6527 = vrcp.f32 %v3843_v33 }
0x10eb   : > { %v6518_v16 = vpop.eup %6517  ;;  %6529 = vrcp.f32 %v3840_v9 }
0x10ec   : > { %v3867_v40 = vpop.permute.xlu0 %3866  ;;  %v3853_v57 = vmul.f32 %v6518_v16, %v7706_v20  ;;  %v6520_v37 = vpop.eup %6519  ;;  %v3957_v20 = vld [vmem:[%s7971_s1 + $0xdc] sm:$0xf] }
0x10ed   : > { %6005 = vmatprep.subr.bf16.mxu1 %v3867_v40  ;;  %v6522_v39 = vpop.eup %6521  ;;  %v3871_v48 = vpop.permute.xlu1 %3870  ;;  %v3855_v7 = vmul.f32 %v6520_v37, %v7700_v15  ;;  %v3971_v29 = vsel %vm206_vm0, %v3957_v20, 0 }
0x10ee   : > { %6006 = vmatpush3.bf16.msra.mxu1 %v3867_v40  ;;  %v3860_v11 = vpack.c.bf16 %v3853_v57, %v3852_v54  ;;  %v3854_v53 = vmul.f32 %v6522_v39, %v7694_v4 }
0x10ef   : > { %6007 = vmatprep.subr.bf16.mxu1 %v3869_v50  ;;  %v6524_v1 = vpop.eup %6523 }
0x10f0   : > { %6011 = vmatprep.mubr.msk.bf16.mxu1 %vm983_vm3, %v3860_v11  ;;  %v3856_v38 = vmul.f32 %v6524_v1, %v7714_v26  ;;  %v3861_v41 = vpack.c.bf16 %v3855_v7, %v3854_v53  ;;  %v6570_v7 = vld [vmem:[#allocation2 + $0x48] sm:$0xff] }
0x10f2   : > { %6008 = vmatpush3.bf16.msra.mxu1 %v3869_v50 }
0x10f3   : > { %v6526_v13 = vpop.eup %6525  ;;  %6009 = vmatprep.subr.bf16.mxu1 %v3871_v48 }
0x10f4   : > { %v3857_v49 = vmul.f32 %v6526_v13, %v7722_v58  ;;  %v6528_v52 = vpop.eup %6527  ;;  %v6569_v13 = vld [vmem:[#allocation2 + $0x58] sm:$0xff] }
0x10f5   : > { %v6530_v15 = vpop.eup %6529  ;;  %v3859_v58 = vmul.f32 %v6528_v52, %v7716_v45 }
0x10f6   : > { %6010 = vmatpush3.bf16.msra.mxu1 %v3871_v48  ;;  %v3862_v17 = vpack.c.bf16 %v3857_v49, %v3856_v38  ;;  %v3858_v4 = vmul.f32 %v6530_v15, %v7708_v51  ;;  %v6568_v48 = vld [vmem:[#allocation2 + $0x50] sm:$0xff] }
0x10f7   : > { %6253 = vmatprep.subr.msk.bf16.mxu1 %vm206_vm0, %v3957_v20 }
0x10f8   : > { %v3863_v47 = vpack.c.bf16 %v3859_v58, %v3858_v4 }
0x10f9   : > { %6012 = vmatmul.mubr.msk.bf16.vlgmr.msra.gmra.mrb[100].mxu1 %vm983_vm3, %v3861_v41 }
0x10fa   : > { %6015 = vmatprep.mubr.msk.bf16.mxu1 %vm983_vm3, %v3862_v17  ;;  %6020 = vmatpush3.bf16.msra.mxu1 %v3971_v29 }
0x1101   : > { %6016 = vmatmul.mubr.msk.bf16.gmra.mrb[104].mxu1 %vm983_vm3, %v3863_v47 }
0x112e   : > { %v4153_v26 = vpop.xlane.xlu0 %4152 }
0x112f   : > { %v4175_v3 = vsub.f32 %v7738_v24, %v4153_v26 }
0x1130   : > { %v4156_v12 = vpop.xlane.xlu1 %4155 }
0x1131   : > { %v4183_v32 = vmul.f32 1.442695, %v4175_v3  ;;  %v4176_v5 = vsub.f32 %v7744_v63, %v4156_v12 }
0x1132   : > { %v4159_v59 = vpop.xlane.xlu0 %4158 }
0x1133   : > { %v4177_v19 = vsub.f32 %v7736_v44, %v4159_v59  ;;  %v4185_v8 = vmul.f32 1.442695, %v4176_v5 }
0x1135   : > { %v4187_v35 = vmul.f32 1.442695, %v4177_v19 }
0x1136   : > { %v4165_v62 = vpop.xlane.xlu1 %4164  ;;  %v4162_v28 = vpop.xlane.xlu0 %4161 }
0x1137   : > { %6531 = vpow2.f32 %v4187_v35  ;;  %v4178_v45 = vsub.f32 %v7740_v22, %v4162_v28  ;;  %v4179_v51 = vsub.f32 %v7752_v34, %v4165_v62 }
0x1138   : > { %6533 = vpow2.f32 %v4183_v32 }
0x1139   : > { %v4189_v6 = vmul.f32 1.442695, %v4178_v45  ;;  %v4191_v44 = vmul.f32 1.442695, %v4179_v51 }
0x113a   : > { %v4171_v46 = vpop.xlane.xlu1 %4170  ;;  %v4168_v24 = vpop.xlane.xlu0 %4167 }
0x113b   : > { %v4181_v23 = vsub.f32 %v7750_v56, %v4171_v46  ;;  %6535 = vpow2.f32 %v4189_v6  ;;  %v4180_v63 = vsub.f32 %v7760_v36, %v4168_v24 }
0x113c   : > { %6537 = vpow2.f32 %v4185_v8 }
0x113d   : > { %v4195_v21 = vmul.f32 1.442695, %v4181_v23  ;;  %v4193_v33 = vmul.f32 1.442695, %v4180_v63 }
0x113e   : > { %v4244_v31 = vpop.permute.xlu1 %4243  ;;  %v4174_v9 = vpop.xlane.xlu0 %4173 }
0x113f   : > { %6539 = vpow2.f32 %v4195_v21  ;;  %v4182_v22 = vsub.f32 %v7754_v43, %v4174_v9  ;;  %6045 = vmatprep.subr.bf16.mxu1 %v4244_v31 }
0x1140   : > { %6541 = vpow2.f32 %v4191_v44 }
0x1141   : > { %v7794_v25 = vpop.eup %6531  ;;  %v4197_v34 = vmul.f32 1.442695, %v4182_v22  ;;  %v4336_v22 = vld [vmem:[%s7971_s1 + $0xe0] sm:$0xf] }
0x1142   : > { %v4205_v56 = vsel %vm983_vm3, %v7794_v25, 0.0  ;;  %v7798_v30 = vpop.eup %6533 }
0x1143   : > { %6543 = vpow2.f32 %v4197_v34  ;;  %4206 = vadd.xlane.f32.xlu1 %v4205_v56  ;;  %v4199_v36 = vsel %vm983_vm3, %v7798_v30, 0.0 }
0x1144   : > { %6545 = vpow2.f32 %v4193_v33 }
0x1145   : > { %v7800_v27 = vpop.eup %6535 }
0x1146   : > { %v4208_v43 = vsel %vm983_vm3, %v7800_v27, 0.0  ;;  %v6538_v55 = vpop.eup %6537 }
0x1147   : > { %4200 = vadd.xlane.f32.xlu1 %v4199_v36  ;;  %4209 = vadd.xlane.f32.xlu0 %v4208_v43  ;;  %v4202_v54 = vsel %vm983_vm3, %v6538_v55, 0.0 }
0x1149   : > { %v7806_v16 = vpop.eup %6539 }
0x114a   : > { %v4217_v50 = vsel %vm983_vm3, %v7806_v16, 0.0  ;;  %v7810_v40 = vpop.eup %6541 }
0x114b   : > { %4218 = vadd.xlane.f32.xlu1 %v4217_v50  ;;  %4203 = vadd.xlane.f32.xlu0 %v4202_v54  ;;  %v4211_v11 = vsel %vm983_vm3, %v7810_v40, 0.0  ;;  %v6296_v54 = vld [vmem:[%s7971_s1 + $0xec] sm:$0xff]  }
0x114d   : > { %v7813_v57 = vpop.eup %6543 }
0x114e   : > { %v4220_v37 = vsel %vm983_vm3, %v7813_v57, 0.0  ;;  %v6546_v39 = vpop.eup %6545 }
0x114f   : > { %4212 = vadd.xlane.f32.xlu1 %v4211_v11  ;;  %4221 = vadd.xlane.f32.xlu0 %v4220_v37  ;;  %v4214_v1 = vsel %vm983_vm3, %v6546_v39, 0.0 }
0x1153   : > { %4215 = vadd.xlane.f32.xlu0 %v4214_v1 }
0x1160   : > { %4247 = vrot.lane.b32.xlu1 %v6568_v48, %s6581_s10 }
0x1164   : > { %4249 = vrot.lane.b32.xlu1 %v6569_v13, %s6581_s10 }
0x1169   : > { %4245 = vrot.lane.b32.xlu0 %v6570_v7, %s6581_s10 }
0x11cc   : > { %v6013_v49 = vpop.f32.mrb[100].mxu1 }
0x11cd   : > { %v3922_v20 = vpop.f32.mrb[101].mxu1 }
0x11ce   : > { %v6014_v53 = vpop.f32.mrb[102].mxu1 }
0x11cf   : > { %v3954_v38 = vpack.c.bf16 %v6014_v53, %v6013_v49  ;;  %v3925_v41 = vpop.f32.mrb[103].mxu1 }
0x11d0   : > { %v4207_v29 = vpop.xlane.xlu1 %4206  ;;  %v3953_v52 = vpack.c.bf16 %v3925_v41, %v3922_v20  ;;  %v6298_v41 = vld [vmem:[%s7971_s1 + $0xfc] sm:$0xff]  }
0x11d2   : > { %6021 = vmatprep.mubr.msk.bf16.mxu1 %vm193_vm1, %v3953_v52  ;;  %v5222_v52 = vld [vmem:[%s7972_s2 + $0xb] ss:$0 sm:$0xff] }
0x11d3   : > { %6022 = vmatmul.mubr.msk.bf16.vlgmr.msra.gmra.mrb[76].mxu1 %vm193_vm1, %v3954_v38  ;;  %v6297_v38 = vld [vmem:[%s7971_s1 + $0xf4] sm:$0xff]  }
0x11d4   : > { %v4201_v17 = vpop.xlane.xlu1 %4200  ;;  %6046 = vmatpush3.bf16.msra.mxu1 %v4244_v31  ;;  %v4210_v15 = vpop.xlane.xlu0 %4209 }
0x11d5   : > { %v6017_v58 = vpop.f32.mrb[104].mxu1  ;;  %6547 = vrcp.f32 %v4201_v17 }
0x11d6   : > { %v3938_v4 = vpop.f32.mrb[105].mxu1 }
0x11d7   : > { %v6018_v47 = vpop.f32.mrb[106].mxu1 }
0x11d8   : > { %v3956_v26 = vpack.c.bf16 %v6018_v47, %v6017_v58  ;;  %v3941_v3 = vpop.f32.mrb[107].mxu1  ;;  %v4219_v12 = vpop.xlane.xlu1 %4218 }
0x11d9   : > { %v3955_v59 = vpack.c.bf16 %v3941_v3, %v3938_v4  ;;  %v4204_v19 = vpop.xlane.xlu0 %4203 }
0x11da   : > { %6549 = vrcp.f32 %v4204_v19 }
0x11db   : > { %6025 = vmatprep.mubr.msk.bf16.mxu1 %vm193_vm1, %v3955_v59  ;;  %6551 = vrcp.f32 %v4210_v15 }
0x11dc   : > { %6026 = vmatmul.mubr.msk.bf16.gmra.mrb[80].mxu1 %vm193_vm1, %v3956_v26  ;;  %v4213_v35 = vpop.xlane.xlu1 %4212  ;;  %6553 = vrcp.f32 %v4207_v29  ;;  %v6299_v29 = vld [vmem:[%s7971_s1 + $0x104] sm:$0xff]  }
0x11dd   : > { %v4222_v32 = vpop.xlane.xlu0 %4221  ;;  %6555 = vrcp.f32 %v4213_v35 }
0x11df   : > { %v6548_v62 = vpop.eup %6547 }
0x11e0   : > { %v4248_v45 = vpop.permute.xlu1 %4247  ;;  %v4231_v6 = vmul.f32 %v6548_v62, %v7798_v30  ;;  %v4350_v30 = vsel %vm206_vm0, %v4336_v22, 0 }
0x11e1   : > { %v4216_v5 = vpop.xlane.xlu0 %4215 }
0x11e2   : > { %6557 = vrcp.f32 %v4216_v5 }
0x11e3   : > { %6559 = vrcp.f32 %v4222_v32 }
0x11e4   : > { %v6550_v28 = vpop.eup %6549  ;;  %6561 = vrcp.f32 %v4219_v12  ;;  %v4250_v21 = vpop.permute.xlu1 %4249 }
0x11e5   : > { %v4246_v51 = vpop.permute.xlu0 %4245  ;;  %v4232_v8 = vmul.f32 %v6550_v28, %v6538_v55  ;;  %v6552_v24 = vpop.eup %6551 }
0x11e6   : > { %6047 = vmatprep.subr.bf16.mxu1 %v4246_v51  ;;  %v6554_v23 = vpop.eup %6553  ;;  %v4234_v31 = vmul.f32 %v6552_v24, %v7800_v27 }
0x11e7   : > { %6048 = vmatpush3.bf16.msra.mxu1 %v4246_v51  ;;  %v4239_v46 = vpack.c.bf16 %v4232_v8, %v4231_v6  ;;  %v6556_v44 = vpop.eup %6555  ;;  %v4233_v34 = vmul.f32 %v6554_v23, %v7794_v25 }
0x11e8   : > { %6049 = vmatprep.subr.bf16.mxu1 %v4248_v45  ;;  %v4235_v33 = vmul.f32 %v6556_v44, %v7810_v40  ;;  %v6295_v40 = vld [vmem:[%s7971_s1 + $0xe4] sm:$0xff]  }
0x11e9   : > { %6053 = vmatprep.mubr.msk.bf16.mxu1 %vm983_vm3, %v4239_v46  ;;  %v4240_v56 = vpack.c.bf16 %v4234_v31, %v4233_v34  ;;  %6071 = vmatprep.subr.bf16.mxu0 %v6295_v40  ;;  %v6300_v34 = vld [vmem:[%s7971_s1 + $0x10c] sm:$0xff]  }
0x11ea   : > { %6072 = vmatpush3.bf16.msra.mxu0 %v6295_v40 }
0x11eb   : > { %6050 = vmatpush3.bf16.msra.mxu1 %v4248_v45  ;;  %6073 = vmatprep.subr.bf16.mxu0 %v6296_v54 }
0x11ec   : > { %v6558_v63 = vpop.eup %6557  ;;  %6051 = vmatprep.subr.bf16.mxu1 %v4250_v21 }
0x11ed   : > { %v4236_v9 = vmul.f32 %v6558_v63, %v6546_v39  ;;  %v6560_v36 = vpop.eup %6559 }
0x11ee   : > { %v6562_v27 = vpop.eup %6561  ;;  %v4238_v55 = vmul.f32 %v6560_v36, %v7813_v57  ;;  %6074 = vmatpush3.bf16.msra.mxu0 %v6296_v54 }
0x11ef   : > { %6052 = vmatpush3.bf16.msra.mxu1 %v4250_v21  ;;  %v4241_v43 = vpack.c.bf16 %v4236_v9, %v4235_v33  ;;  %v4237_v25 = vmul.f32 %v6562_v27, %v7806_v16  ;;  %6075 = vmatprep.subr.bf16.mxu0 %v6297_v38  ;;  %v6301_v33 = vld [vmem:[%s7971_s1 + $0x124] sm:$0xff]  }
0x11f0   : > { %6258 = vmatprep.subr.msk.bf16.mxu1 %vm206_vm0, %v4336_v22 }
0x11f1   : > { %v4242_v50 = vpack.c.bf16 %v4238_v55, %v4237_v25 }
0x11f2   : > { %6054 = vmatmul.mubr.msk.bf16.vlgmr.msra.gmra.mrb[108].mxu1 %vm983_vm3, %v4240_v56  ;;  %6076 = vmatpush3.bf16.msra.mxu0 %v6297_v38  ;;  %v6303_v56 = vld [vmem:[%s7971_s1 + $0x114] sm:$0xff]  }
0x11f3   : > { %6057 = vmatprep.mubr.msk.bf16.mxu1 %vm983_vm3, %v4241_v43  ;;  %6062 = vmatpush3.bf16.msra.mxu1 %v4350_v30  ;;  %v5277_v30 = vld [vmem:[%s7972_s2 + $0xc] ss:$0 sm:$0xff] }
0x11f4   : > { %6077 = vmatprep.subr.bf16.mxu0 %v6298_v41  ;;  %6087 = vmatprep.subr.bf16.mxu1 %v6299_v29 }
0x11f6   : > { %6078 = vmatpush3.bf16.msra.mxu0 %v6298_v41 }
0x11f7   : > { %6099 = vmatprep.subr.bf16.mxu0 %v6303_v56 }
0x11fa   : > { %6058 = vmatmul.mubr.msk.bf16.gmra.mrb[112].mxu1 %vm983_vm3, %v4242_v50 }
0x12c5   : > { %v6055_v11 = vpop.f32.mrb[108].mxu1 }
0x12c6   : > { %v4301_v37 = vpop.f32.mrb[109].mxu1 }
0x12c7   : > { %v6056_v57 = vpop.f32.mrb[110].mxu1 }
0x12c8   : > { %v4333_v39 = vpack.c.bf16 %v6056_v57, %v6055_v11  ;;  %v4304_v16 = vpop.f32.mrb[111].mxu1 }
0x12c9   : > { %v4332_v1 = vpack.c.bf16 %v4304_v16, %v4301_v37 }
0x12cb   : > { %6063 = vmatprep.mubr.msk.bf16.mxu1 %vm193_vm1, %v4332_v1 }
0x12cc   : > { %6064 = vmatmul.mubr.msk.bf16.vlgmr.msra.gmra.mrb[76].mxu1 %vm193_vm1, %v4333_v39 }
0x12cd   : > { %v6059_v48 = vpop.f32.mrb[112].mxu1  ;;  %6088 = vmatpush3.bf16.msra.mxu1 %v6299_v29 }
0x12ce   : > { %v4317_v13 = vpop.f32.mrb[113].mxu1  ;;  %6089 = vmatprep.subr.bf16.mxu1 %v6300_v34 }
0x12cf   : > { %v6060_v7 = vpop.f32.mrb[114].mxu1 }
0x12d0   : > { %v4335_v49 = vpack.c.bf16 %v6060_v7, %v6059_v48  ;;  %v4320_v20 = vpop.f32.mrb[115].mxu1 }
0x12d1   : > { %v4334_v53 = vpack.c.bf16 %v4320_v20, %v4317_v13  ;;  %6090 = vmatpush3.bf16.msra.mxu1 %v6300_v34 }
0x12d2   : > { %6111 = vmatprep.subr.bf16.mxu1 %v6301_v33 }
0x12d3   : > { %6067 = vmatprep.mubr.msk.bf16.mxu1 %vm193_vm1, %v4334_v53 }
0x12d4   : > { %6068 = vmatmul.mubr.msk.bf16.gmra.mrb[80].mxu1 %vm193_vm1, %v4335_v49  ;;  %v6302_v49 = vld [vmem:[%s7971_s1 + $0x12c] sm:$0xff]  }
0x139f   : > { %v6065_v17 = vpop.f32.mrb[76].mxu1 }
0x13a0   : > { %v6145_v15 = vadd.f32 %v6065_v17, %v5222_v52  ;;  %v4386_v58 = vpop.f32.mrb[77].mxu1 }
0x13a1   : > { %v6146_v4 = vadd.f32 %v5222_v52, %v4386_v58  ;;  %v6066_v47 = vpop.f32.mrb[78].mxu1 }
0x13a2   : > { %v6147_v26 = vadd.f32 %v6066_v47, %v5222_v52  ;;  %v4389_v3 = vpop.f32.mrb[79].mxu1  ;;  %v4427_v59 = vmax.f32 %v6145_v15, 0.0 }
0x13a3   : > { %v6148_v12 = vadd.f32 %v5222_v52, %v4389_v3  ;;  %v4425_v32 = vmax.f32 %v6146_v4, 0.0 }
0x13a4   : > { %v4428_v19 = vmax.f32 %v6147_v26, 0.0 }
0x13a5   : > { %v4426_v35 = vmax.f32 %v6148_v12, 0.0 }
0x13a6   : > { %v4434_v5 = vpack.c.bf16 %v4428_v19, %v4427_v59 }
0x13a7   : > { %v4433_v62 = vpack.c.bf16 %v4426_v35, %v4425_v32  ;;  %v6069_v28 = vpop.f32.mrb[80].mxu1 }
0x13a8   : > { %v6149_v45 = vadd.f32 %v6069_v28, %v5222_v52  ;;  %v4402_v51 = vpop.f32.mrb[81].mxu1 }
0x13a9   : > { %v6150_v6 = vadd.f32 %v5222_v52, %v4402_v51  ;;  %v6070_v8 = vpop.f32.mrb[82].mxu1  ;;  %6079 = vmatprep.mubr.msk.bf16.mxu0 %vm983_vm3, %v4433_v62 }
0x13aa   : > { %v6151_v46 = vadd.f32 %v6070_v8, %v5222_v52  ;;  %v4405_v24 = vpop.f32.mrb[83].mxu1  ;;  %6080 = vmatmul.mubr.msk.bf16.vlgmr.msra.gmra.mrb[108].mxu0 %vm983_vm3, %v4434_v5  ;;  %v4431_v44 = vmax.f32 %v6149_v45, 0.0 }
0x13ab   : > { %v6152_v23 = vadd.f32 %v5222_v52, %v4405_v24  ;;  %v4429_v63 = vmax.f32 %v6150_v6, 0.0  ;;  %6100 = vmatpush3.bf16.msra.mxu0 %v6303_v56  ;;  %v6306_v6 = vld [vmem:[%s7971_s1 + $0x13c] sm:$0xff]  }
0x13ac   : > { %v4432_v21 = vmax.f32 %v6151_v46, 0.0 }
0x13ad   : > { %v4430_v31 = vmax.f32 %v6152_v23, 0.0 }
0x13ae   : > { %v4436_v9 = vpack.c.bf16 %v4432_v21, %v4431_v44 }
0x13af   : > { %v4435_v22 = vpack.c.bf16 %v4430_v31, %v4429_v63 }
0x13b1   : > { %6083 = vmatprep.mubr.msk.bf16.mxu0 %vm983_vm3, %v4435_v22  ;;  %v5300_v22 = vld [vmem:[%s7972_s2 + $0xf] ss:$0 sm:$0xff] }
0x13b2   : > { %6084 = vmatmul.mubr.msk.bf16.gmra.mrb[112].mxu0 %vm983_vm3, %v4436_v9 }
0x147d   : > { %v6081_v36 = vpop.f32.mrb[108].mxu0 }
0x147e   : > { %v4529_v43 = vadd.f32 %v6081_v36, %v5277_v30  ;;  %v4520_v27 = vpop.f32.mrb[109].mxu0 }
0x147f   : > { %v4521_v55 = vadd.f32 %v5277_v30, %v4520_v27  ;;  %v6082_v25 = vpop.f32.mrb[110].mxu0 }
0x1480   : > { %v4532_v50 = vadd.f32 %v6082_v25, %v5277_v30  ;;  %v4523_v40 = vpop.f32.mrb[111].mxu0  ;;  %v4553_v11 = vadd.f32 %v4529_v43, %v7289_v60 }
0x1481   : > { %v4524_v54 = vadd.f32 %v5277_v30, %v4523_v40  ;;  %v4551_v57 = vadd.f32 %v4521_v55, %v7283_v0 }
0x1482   : > { %v4554_v37 = vadd.f32 %v4532_v50, %v7280_v42 }
0x1483   : > { %v4552_v39 = vadd.f32 %v4524_v54, %v7286_v10 }
0x1484   : > { %v4560_v16 = vpack.c.bf16 %v4554_v37, %v4553_v11 }
0x1485   : > { %v4559_v1 = vpack.c.bf16 %v4552_v39, %v4551_v57  ;;  %v6085_v48 = vpop.f32.mrb[112].mxu0 }
0x1486   : > { %v4545_v13 = vadd.f32 %v6085_v48, %v5277_v30  ;;  %v4536_v7 = vpop.f32.mrb[113].mxu0 }
0x1487   : > { %v4537_v20 = vadd.f32 %v5277_v30, %v4536_v7  ;;  %v6086_v53 = vpop.f32.mrb[114].mxu0  ;;  %6091 = vmatprep.mubr.msk.bf16.mxu1 %vm308_vm2, %v4559_v1 }
0x1488   : > { %v4548_v60 = vadd.f32 %v6086_v53, %v5277_v30  ;;  %v4539_v38 = vpop.f32.mrb[115].mxu0  ;;  %6092 = vmatmul.mubr.msk.bf16.vlgmr.msra.gmra.mrb[116].mxu1 %vm308_vm2, %v4560_v16  ;;  %v4557_v0 = vadd.f32 %v4545_v13, %v7315_v61 }
0x1489   : > { %v4540_v42 = vadd.f32 %v5277_v30, %v4539_v38  ;;  %6112 = vmatpush3.bf16.msra.mxu1 %v6301_v33  ;;  %v4555_v41 = vadd.f32 %v4537_v20, %v7309_v18  ;;  %v6305_v18 = vld [vmem:[%s7971_s1 + $0x134] sm:$0xff]  }
0x148a   : > { %v4558_v10 = vadd.f32 %v4548_v60, %v7306_v14  ;;  %6113 = vmatprep.subr.bf16.mxu1 %v6302_v49  ;;  %v6304_v14 = vld [vmem:[%s7971_s1 + $0x11c] sm:$0xff]  }
0x148b   : > { %v4556_v29 = vadd.f32 %v4540_v42, %v7312_v2  ;;  %6101 = vmatprep.subr.bf16.mxu0 %v6304_v14  ;;  %v5286_v2 = vld [vmem:[%s7972_s2 + $0xd] ss:$0 sm:$0xff] }
0x148c   : > { %v4562_v52 = vpack.c.bf16 %v4558_v10, %v4557_v0  ;;  %6102 = vmatpush3.bf16.msra.mxu0 %v6304_v14 }
0x148d   : > { %v4561_v17 = vpack.c.bf16 %v4556_v29, %v4555_v41  ;;  %6114 = vmatpush3.bf16.msra.mxu1 %v6302_v49  ;;  %6123 = vmatprep.subr.bf16.mxu0 %v6305_v18  ;;  %v5293_v29 = vld [vmem:[%s7972_s2 + $0xe] ss:$0 sm:$0xff] }
0x148f   : > { %6095 = vmatprep.mubr.msk.bf16.mxu1 %vm308_vm2, %v4561_v17 }
0x1490   : > { %6096 = vmatmul.mubr.msk.bf16.gmra.mrb[120].mxu1 %vm308_vm2, %v4562_v52 }
0x1491   : > { %6115 = vmatprep.mubr.msk.bf16.mxu1 %vm308_vm2, %v4559_v1 }
0x1498   : > { %6116 = vmatmul.mubr.msk.bf16.vlgmr.msra.gmra.mrb[124].mxu1 %vm308_vm2, %v4560_v16 }
0x1499   : > { %6119 = vmatprep.mubr.msk.bf16.mxu1 %vm308_vm2, %v4561_v17 }
0x14a0   : > { %6120 = vmatmul.mubr.msk.bf16.gmra.mrb[128].mxu1 %vm308_vm2, %v4562_v52 }
0x155b   : > { %v6093_v61 = vpop.f32.mrb[116].mxu1 }
0x155c   : > { %v4639_v15 = vadd.f32 %v6093_v61, %v5286_v2  ;;  %v4630_v58 = vpop.f32.mrb[117].mxu1 }
0x155d   : > { %v4631_v4 = vadd.f32 %v5286_v2, %v4630_v58  ;;  %v6094_v47 = vpop.f32.mrb[118].mxu1 }
0x155e   : > { %v4642_v26 = vadd.f32 %v6094_v47, %v5286_v2  ;;  %v4633_v3 = vpop.f32.mrb[119].mxu1  ;;  %v4663_v59 = vmax.f32 %v4639_v15, 0.0 }
0x155f   : > { %v4634_v12 = vadd.f32 %v5286_v2, %v4633_v3  ;;  %v4661_v32 = vmax.f32 %v4631_v4, 0.0 }
0x1560   : > { %v4664_v19 = vmax.f32 %v4642_v26, 0.0 }
0x1561   : > { %v4662_v35 = vmax.f32 %v4634_v12, 0.0 }
0x1562   : > { %v4670_v5 = vpack.c.bf16 %v4664_v19, %v4663_v59 }
0x1563   : > { %v4669_v62 = vpack.c.bf16 %v4662_v35, %v4661_v32  ;;  %v6097_v28 = vpop.f32.mrb[120].mxu1 }
0x1564   : > { %v4655_v45 = vadd.f32 %v6097_v28, %v5286_v2  ;;  %v4646_v51 = vpop.f32.mrb[121].mxu1 }
0x1565   : > { %v4647_v8 = vadd.f32 %v5286_v2, %v4646_v51  ;;  %v6098_v46 = vpop.f32.mrb[122].mxu1  ;;  %6103 = vmatprep.mubr.msk.bf16.mxu0 %vm308_vm2, %v4669_v62 }
0x1566   : > { %v4658_v24 = vadd.f32 %v6098_v46, %v5286_v2  ;;  %v4649_v23 = vpop.f32.mrb[123].mxu1  ;;  %6104 = vmatmul.mubr.msk.bf16.vlgmr.msra.gmra.mrb[116].mxu0 %vm308_vm2, %v4670_v5  ;;  %v4667_v21 = vmax.f32 %v4655_v45, 0.0  ;;  %v5307_v46 = vld [vmem:[%s7972_s2 + $0x10] ss:$0 sm:$0xff] }
0x1567   : > { %v4650_v44 = vadd.f32 %v5286_v2, %v4649_v23  ;;  %6124 = vmatpush3.bf16.msra.mxu0 %v6305_v18  ;;  %v4665_v31 = vmax.f32 %v4647_v8, 0.0 }
0x1568   : > { %v4668_v63 = vmax.f32 %v4658_v24, 0.0  ;;  %6125 = vmatprep.subr.bf16.mxu0 %v6306_v6 }
0x1569   : > { %v4666_v9 = vmax.f32 %v4650_v44, 0.0 }
0x156a   : > { %v4672_v34 = vpack.c.bf16 %v4668_v63, %v4667_v21 }
0x156b   : > { %v4671_v33 = vpack.c.bf16 %v4666_v9, %v4665_v31  ;;  %v6117_v56 = vpop.f32.mrb[124].mxu1  ;;  %6126 = vmatpush3.bf16.msra.mxu0 %v6306_v6 }
0x156c   : > { %v4843_v30 = vadd.f32 %v6117_v56, %v5300_v22  ;;  %v4834_v36 = vpop.f32.mrb[125].mxu1 }
0x156d   : > { %v4835_v43 = vadd.f32 %v5300_v22, %v4834_v36  ;;  %6107 = vmatprep.mubr.msk.bf16.mxu0 %vm308_vm2, %v4671_v33  ;;  %v6118_v27 = vpop.f32.mrb[126].mxu1 }
0x156e   : > { %v4846_v55 = vadd.f32 %v6118_v27, %v5300_v22  ;;  %6108 = vmatmul.mubr.msk.bf16.gmra.mrb[120].mxu0 %vm308_vm2, %v4672_v34  ;;  %v4837_v25 = vpop.f32.mrb[127].mxu1  ;;  %v4867_v40 = vmax.f32 %v4843_v30, 0.0 }
0x156f   : > { %v4838_v50 = vadd.f32 %v5300_v22, %v4837_v25  ;;  %v4865_v11 = vmax.f32 %v4835_v43, 0.0 }
0x1570   : > { %v4868_v54 = vmax.f32 %v4846_v55, 0.0 }
0x1571   : > { %v4866_v37 = vmax.f32 %v4838_v50, 0.0 }
0x1572   : > { %v4874_v57 = vpack.c.bf16 %v4868_v54, %v4867_v40 }
0x1573   : > { %v4873_v39 = vpack.c.bf16 %v4866_v37, %v4865_v11  ;;  %v6121_v16 = vpop.f32.mrb[128].mxu1 }
0x1574   : > { %v4859_v1 = vadd.f32 %v6121_v16, %v5300_v22  ;;  %v4850_v48 = vpop.f32.mrb[129].mxu1 }
0x1575   : > { %v4851_v13 = vadd.f32 %v5300_v22, %v4850_v48  ;;  %v6122_v7 = vpop.f32.mrb[130].mxu1  ;;  %6127 = vmatprep.mubr.msk.bf16.mxu0 %vm308_vm2, %v4873_v39 }
0x1576   : > { %v4862_v49 = vadd.f32 %v6122_v7, %v5300_v22  ;;  %v4853_v20 = vpop.f32.mrb[131].mxu1  ;;  %6128 = vmatmul.mubr.msk.bf16.vlgmr.msra.gmra.mrb[124].mxu0 %vm308_vm2, %v4874_v57  ;;  %v4871_v60 = vmax.f32 %v4859_v1, 0.0 }
0x1577   : > { %v4854_v53 = vadd.f32 %v5300_v22, %v4853_v20  ;;  %v4869_v42 = vmax.f32 %v4851_v13, 0.0 }
0x1578   : > { %v4872_v38 = vmax.f32 %v4862_v49, 0.0 }
0x1579   : > { %v4870_v0 = vmax.f32 %v4854_v53, 0.0 }
0x157a   : > { %v4876_v10 = vpack.c.bf16 %v4872_v38, %v4871_v60 }
0x157b   : > { %v4875_v41 = vpack.c.bf16 %v4870_v0, %v4869_v42 }
0x157d   : > { %6131 = vmatprep.mubr.msk.bf16.mxu0 %vm308_vm2, %v4875_v41 }
0x157e   : > { %6132 = vmatmul.mubr.msk.bf16.gmra.mrb[128].mxu0 %vm308_vm2, %v4876_v10 }
0x1639   : > { %v6105_v52 = vpop.f32.mrb[116].mxu0 }
0x163a   : > { %v4749_v17 = vadd.f32 %v6105_v52, %v5293_v29  ;;  %v4740_v14 = vpop.f32.mrb[117].mxu0 }
0x163b   : > { %v4741_v18 = vadd.f32 %v5293_v29, %v4740_v14  ;;  %v6106_v2 = vpop.f32.mrb[118].mxu0 }
0x163c   : > { %v4773_v61 = vmax.f32 %v4749_v17, 0.0  ;;  %v4752_v15 = vadd.f32 %v6106_v2, %v5293_v29  ;;  %v4743_v58 = vpop.f32.mrb[119].mxu0 }
0x163d   : > { %v4771_v4 = vmax.f32 %v4741_v18, 0.0  ;;  %v4744_v47 = vadd.f32 %v5293_v29, %v4743_v58 }
0x163e   : > { %4985 = vst.msk [vmem:[%s7930_s29 + $0x10] sm:$0xff] %vm308_vm2, %v4773_v61  ;;  %v4774_v26 = vmax.f32 %v4752_v15, 0.0 }
0x163f   : > { %4983 = vst.msk [vmem:[%s7930_s29] sm:$0xff] %vm308_vm2, %v4771_v4  ;;  %v4772_v3 = vmax.f32 %v4744_v47, 0.0 }
0x1640   : > { %4986 = vst.msk [vmem:[%s7930_s29 + $0x18] sm:$0xff] %vm308_vm2, %v4774_v26 }
0x1641   : > { %4984 = vst.msk [vmem:[%s7930_s29 + $0x8] sm:$0xff] %vm308_vm2, %v4772_v3  ;;  %v6109_v12 = vpop.f32.mrb[120].mxu0 }
0x1642   : > { %v4765_v59 = vadd.f32 %v6109_v12, %v5293_v29  ;;  %v4756_v19 = vpop.f32.mrb[121].mxu0 }
0x1643   : > { %v4757_v32 = vadd.f32 %v5293_v29, %v4756_v19  ;;  %v6110_v35 = vpop.f32.mrb[122].mxu0 }
0x1644   : > { %v4777_v5 = vmax.f32 %v4765_v59, 0.0  ;;  %v4768_v62 = vadd.f32 %v6110_v35, %v5293_v29  ;;  %v4759_v28 = vpop.f32.mrb[123].mxu0 }
0x1645   : > { %v4775_v45 = vmax.f32 %v4757_v32, 0.0  ;;  %v4760_v51 = vadd.f32 %v5293_v29, %v4759_v28 }
0x1646   : > { %4989 = vst.msk [vmem:[%s7930_s29 + $0x30] sm:$0xff] %vm308_vm2, %v4777_v5  ;;  %v4778_v6 = vmax.f32 %v4768_v62, 0.0 }
0x1647   : > { %4987 = vst.msk [vmem:[%s7930_s29 + $0x20] sm:$0xff] %vm308_vm2, %v4775_v45  ;;  %v4776_v8 = vmax.f32 %v4760_v51, 0.0 }
0x1648   : > { %4990 = vst.msk [vmem:[%s7930_s29 + $0x38] sm:$0xff] %vm308_vm2, %v4778_v6 }
0x1649   : > { %4988 = vst.msk [vmem:[%s7930_s29 + $0x28] sm:$0xff] %vm308_vm2, %v4776_v8  ;;  %v6129_v24 = vpop.f32.mrb[124].mxu0 }
0x164a   : > { %v4953_v23 = vadd.f32 %v6129_v24, %v5307_v46  ;;  %v4944_v44 = vpop.f32.mrb[125].mxu0 }
0x164b   : > { %v6130_v21 = vpop.f32.mrb[126].mxu0  ;;  %v4945_v31 = vadd.f32 %v5307_v46, %v4944_v44 }
0x164c   : > { %v4977_v63 = vmax.f32 %v4953_v23, 0.0  ;;  %v4956_v9 = vadd.f32 %v6130_v21, %v5307_v46  ;;  %v4947_v22 = vpop.f32.mrb[127].mxu0 }
0x164d   : > { %v4948_v33 = vadd.f32 %v5307_v46, %v4947_v22  ;;  %v4975_v56 = vmax.f32 %v4945_v31, 0.0 }
0x164e   : > { %v4978_v34 = vmax.f32 %v4956_v9, 0.0  ;;  %5003 = vrot.lane.b32.xlu0 %v4977_v63, %s6582_s30 }
0x164f   : > { %v4976_v36 = vmax.f32 %v4948_v33, 0.0 }
0x1650   : > { %5005 = vrot.lane.b32.xlu1 %v4978_v34, %s6582_s30 }
0x1651   : > { %v6133_v30 = vpop.f32.mrb[128].mxu0 }
0x1652   : > { %v4960_v43 = vpop.f32.mrb[129].mxu0  ;;  %4999 = vrot.lane.b32.xlu0 %v4975_v56, %s6582_s30  ;;  %v4969_v50 = vadd.f32 %v6133_v30, %v5307_v46 }
0x1653   : > { %v4961_v27 = vadd.f32 %v5307_v46, %v4960_v43  ;;  %v6134_v55 = vpop.f32.mrb[130].mxu0 }
0x1654   : > { %v4963_v25 = vpop.f32.mrb[131].mxu0  ;;  %5001 = vrot.lane.b32.xlu1 %v4976_v36, %s6582_s30  ;;  %v4972_v11 = vadd.f32 %v6134_v55, %v5307_v46  ;;  %v4981_v57 = vmax.f32 %v4969_v50, 0.0 }
0x1655   : > { %v4979_v40 = vmax.f32 %v4961_v27, 0.0  ;;  %v4964_v54 = vadd.f32 %v5307_v46, %v4963_v25 }
0x1656   : > { %v4982_v39 = vmax.f32 %v4972_v11, 0.0 }
0x1657   : > { %v4980_v37 = vmax.f32 %v4964_v54, 0.0  ;;  %5007 = vrot.lane.b32.xlu0 %v4979_v40, %s6582_s30 }
0x1659   : > { %5009 = vrot.lane.b32.xlu1 %v4980_v37, %s6582_s30 }
0x165b   : > { %5011 = vrot.lane.b32.xlu0 %v4981_v57, %s6582_s30 }
0x165d   : > { %5013 = vrot.lane.b32.xlu1 %v4982_v39, %s6582_s30 }
0x16c0   : > { %v5004_v16 = vpop.permute.xlu0 %5003 }
0x16c1   : > { %5026 = vst.msk [vmem:[%s7930_s29 + $0x10] sm:$0xff] %vm5023_vm4, %v5004_v16 }
0x16c2   : > { %v5006_v1 = vpop.permute.xlu1 %5005 }
0x16c3   : > { %5027 = vst.msk [vmem:[%s7930_s29 + $0x18] sm:$0xff] %vm5023_vm4, %v5006_v1 }
0x16c4   : > { %v5000_v48 = vpop.permute.xlu0 %4999 }
0x16c5   : > { %5024 = vst.msk [vmem:[%s7930_s29] sm:$0xff] %vm5023_vm4, %v5000_v48 }
0x16c6   : > { %v5002_v13 = vpop.permute.xlu1 %5001 }
0x16c7   : > { %5025 = vst.msk [vmem:[%s7930_s29 + $0x8] sm:$0xff] %vm5023_vm4, %v5002_v13 }
0x16c9   : > { %v5008_v7 = vpop.permute.xlu0 %5007 }
0x16ca   : > { %5028 = vst.msk [vmem:[%s7930_s29 + $0x20] sm:$0xff] %vm5023_vm4, %v5008_v7 }
0x16cb   : > { %v5010_v49 = vpop.permute.xlu1 %5009 }
0x16cc   : > { %5029 = vst.msk [vmem:[%s7930_s29 + $0x28] sm:$0xff] %vm5023_vm4, %v5010_v49 }
0x16cd   : > { %v5012_v20 = vpop.permute.xlu0 %5011 }
0x16ce   : > { %5030 = vst.msk [vmem:[%s7930_s29 + $0x30] sm:$0xff] %vm5023_vm4, %v5012_v20 }
0x16cf   : > { %v5014_v53 = vpop.permute.xlu1 %5013 }
0x16d0   : > { %5031 = vst.msk [vmem:[%s7930_s29 + $0x38] sm:$0xff] %vm5023_vm4, %v5014_v53 }
0x16d1 PF: > { %s13_s12 = sadd.s32 1, %s6577_s12  }
0x16d2   : > { %p10_p4 = scmp.ge.s32.totalorder %s13_s12, 4  }
0x16d4   :  { %12 = sbr.rel (!%p10_p4) target bundleno = 1 (0x1), region = 64 }

</bundles_post_ra>
